<compile_context>
chip_gen: v6e
topology: v6e:2x2x1
jax: 0.10.0
libtpu: 0.0.40
codegen_flags: <defaults>
</compile_context>

<pallas_src>
import functools

import jax
import jax.numpy as jnp
from jax.experimental import pallas as pl
from jax.experimental.pallas import tpu as pltpu


CFG = dict(
    img_size=32, patch=16, in_ch=3, embed_dim=64, depth=2, heads=4,
    mlp_hidden=256, num_classes=100,
)
NC_PAD = 128  # lane-dense classifier head width (sliced back to num_classes in JAX)


# ----------------------------------------------------------------------------- fused kernel

def _vit_fused_kernel(px_ref, clspos_ref, pe_w_ref,
                      ln1_g_ref, ln1_b_ref,
                      wq_ref, wk_ref, wv_ref, bq_ref, bk_ref, bv_ref,
                      wp_ref, bp_ref, ln2_g_ref, ln2_b_ref,
                      fc1_w_ref, fc1_b_ref, fc2_w_ref, fc2_b_ref,
                      lnf_g_ref, lnf_b_ref, head_w_ref, head_b_ref,
                      out_ref, *, depth, heads, head_dim, eps):
    f32 = jnp.float32
    bf16 = jnp.bfloat16

    def mm(a_f32, w_bf16, b_f32):
        # bf16 MXU operands, f32 accumulation.
        y = jnp.dot(a_f32.astype(bf16), w_bf16, preferred_element_type=f32)
        return y + b_f32

    def layer_norm(a, g, b):
        mu = jnp.mean(a, axis=-1, keepdims=True)
        var = jnp.mean(jnp.square(a - mu), axis=-1, keepdims=True)
        return (a - mu) * jax.lax.rsqrt(var + f32(eps)) * g + b

    scale = f32(1.0 / (head_dim ** 0.5))

    # Patch embed + cls token + positional embedding (pe bias folded into clspos):
    #   row 0 of px is zeros (cls slot)  -> xt[0]  == cls + pos[0]
    #   rows 1: are bf16 patch pixels    -> xt[1:] == patches @ pe_w + pe_b + pos[1:]
    xt = jnp.dot(px_ref[0], pe_w_ref[...], preferred_element_type=f32)
    xt = xt + clspos_ref[...].astype(f32)                       # [S, D] f32

    for d in range(depth):                                      # static unroll (depth=2)
        # ---------------- attention branch
        h = layer_norm(xt, ln1_g_ref[d].astype(f32), ln1_b_ref[d].astype(f32))
        hb = h.astype(bf16)
        attn_acc = bp_ref[d].astype(f32)                        # start accumulator with proj bias
        for n in range(heads):                                  # static unroll (heads=4)
            q = jnp.dot(hb, wq_ref[d, n], preferred_element_type=f32) + bq_ref[d, n].astype(f32)
            k = jnp.dot(hb, wk_ref[d, n], preferred_element_type=f32) + bk_ref[d, n].astype(f32)
            v = jnp.dot(hb, wv_ref[d, n], preferred_element_type=f32) + bv_ref[d, n].astype(f32)
            # scores: contract last dims (no explicit k transpose)
            s = jax.lax.dot_general(q, k, (((1,), (1,)), ((), ())),
                                    preferred_element_type=f32) * scale      # [S, S]
            s = s - jnp.max(s, axis=-1, keepdims=True)
            p = jnp.exp(s)
            p = p * pl.reciprocal(jnp.sum(p, axis=-1, keepdims=True), approx=True)
            o = jnp.dot(p, v, preferred_element_type=f32)                    # [S, Dh]
            # per-head row-block of the projection matrix: [Dh, D]
            attn_acc = attn_acc + jnp.dot(o.astype(bf16), wp_ref[d, n],
                                          preferred_element_type=f32)        # [S, D]
        xt = xt + attn_acc                                      # residual folded in-kernel

        # ---------------- MLP branch
        h = layer_norm(xt, ln2_g_ref[d].astype(f32), ln2_b_ref[d].astype(f32))
        h = mm(h, fc1_w_ref[d], fc1_b_ref[d].astype(f32))       # [S, mlp_hidden]
        # exact GELU (erf form) in f32, matching torch.nn.GELU default used by timm ViT
        h = 0.5 * h * (1.0 + jax.lax.erf(h * f32(0.7071067811865476)))
        xt = xt + mm(h, fc2_w_ref[d], fc2_b_ref[d].astype(f32))  # residual folded in-kernel

    # ---------------- final LN + classifier head (lane-padded to 128)
    xt = layer_norm(xt, lnf_g_ref[...].astype(f32), lnf_b_ref[...].astype(f32))
    cls_tok = xt[0:1, :]                                        # [1, D]
    logits = mm(cls_tok, head_w_ref[...], head_b_ref[...].astype(f32))       # [1, NC_PAD]
    out_ref[0] = logits.astype(out_ref.dtype)


# ----------------------------------------------------------------------------- params

def init_params(key, cfg):
    """timm-layout parameters (qkv as a single [D, 3D] linear, etc.), PRNGKey-random."""
    D = cfg["embed_dim"]
    P = cfg["patch"]
    C = cfg["in_ch"]
    num_patches = (cfg["img_size"] // P) ** 2
    patch_dim = C * P * P

    keys = iter(jax.random.split(key, 8 + cfg["depth"] * 12))

    def nrm(shape, std=0.02):
        return (std * jax.random.normal(next(keys), shape)).astype(jnp.float32)

    params = dict(
        pe_w=nrm((patch_dim, D)), pe_b=jnp.zeros((D,), jnp.float32),
        cls=nrm((1, 1, D)),
        pos=nrm((1, num_patches + 1, D)),
        lnf_g=jnp.ones((D,), jnp.float32), lnf_b=jnp.zeros((D,), jnp.float32),
        head_w=nrm((D, cfg["num_classes"])),
        head_b=jnp.zeros((cfg["num_classes"],), jnp.float32),
        blocks=[],
    )
    for _ in range(cfg["depth"]):
        params["blocks"].append(dict(
            ln1_g=jnp.ones((D,), jnp.float32), ln1_b=jnp.zeros((D,), jnp.float32),
            qkv_w=nrm((D, 3 * D)), qkv_b=jnp.zeros((3 * D,), jnp.float32),
            proj_w=nrm((D, D)), proj_b=jnp.zeros((D,), jnp.float32),
            ln2_g=jnp.ones((D,), jnp.float32), ln2_b=jnp.zeros((D,), jnp.float32),
            fc1_w=nrm((D, cfg["mlp_hidden"])),
            fc1_b=jnp.zeros((cfg["mlp_hidden"],), jnp.float32),
            fc2_w=nrm((cfg["mlp_hidden"], D)), fc2_b=jnp.zeros((D,), jnp.float32),
        ))
    return params


def prepare_params(p, cfg):
    """Reorganize timm-layout params into the fused-kernel layout (one-time JAX precompute)."""
    D = cfg["embed_dim"]
    NH = cfg["heads"]
    Dh = D // NH
    depth = cfg["depth"]
    NC = cfg["num_classes"]
    bf16 = jnp.bfloat16

    def stack(name):
        return jnp.stack([blk[name] for blk in p["blocks"]], axis=0)

    # qkv column order in timm is (3, heads, head_dim) along the 3D output axis.
    qkv_w = stack("qkv_w")                                           # [depth, D, 3D]
    qkv_b = stack("qkv_b")                                           # [depth, 3D]
    wqkv = qkv_w.reshape(depth, D, 3, NH, Dh).transpose(2, 0, 3, 1, 4)   # [3, depth, NH, D, Dh]
    bqkv = qkv_b.reshape(depth, 3, NH, 1, Dh).transpose(1, 0, 2, 3, 4)   # [3, depth, NH, 1, Dh]
    proj_w = stack("proj_w").reshape(depth, NH, Dh, D)               # per-head row blocks

    # Fold cls token + positional embedding + patch-embed bias into a single [S, D] addend.
    # Kernel computes xt = (px_ext @ pe_w) + clspos with px_ext[0] == 0, so
    # clspos[0] = cls + pos[0] and clspos[1:] = pe_b + pos[1:].
    clspos = jnp.concatenate(
        [p["cls"][0] + p["pos"][0, :1], p["pe_b"][None, :] + p["pos"][0, 1:]], axis=0)

    # Lane-dense classifier head: pad num_classes -> 128 with zeros.
    head_w = jnp.pad(p["head_w"], ((0, 0), (0, NC_PAD - NC)))
    head_b = jnp.pad(p["head_b"], (0, NC_PAD - NC)).reshape(1, NC_PAD)

    return dict(
        clspos=clspos.astype(jnp.float32),
        pe_w=p["pe_w"].astype(bf16),
        ln1_g=stack("ln1_g").reshape(depth, 1, D), ln1_b=stack("ln1_b").reshape(depth, 1, D),
        wq=wqkv[0].astype(bf16), wk=wqkv[1].astype(bf16), wv=wqkv[2].astype(bf16),
        bq=bqkv[0], bk=bqkv[1], bv=bqkv[2],
        wp=proj_w.astype(bf16), bp=stack("proj_b").reshape(depth, 1, D),
        ln2_g=stack("ln2_g").reshape(depth, 1, D), ln2_b=stack("ln2_b").reshape(depth, 1, D),
        fc1_w=stack("fc1_w").astype(bf16), fc1_b=stack("fc1_b").reshape(depth, 1, -1),
        fc2_w=stack("fc2_w").astype(bf16), fc2_b=stack("fc2_b").reshape(depth, 1, D),
        lnf_g=p["lnf_g"].reshape(1, D), lnf_b=p["lnf_b"].reshape(1, D),
        head_w=head_w.astype(bf16), head_b=head_b,
    )


# ----------------------------------------------------------------------------- forward

def vit_forward(x, kp, cfg):
    """x: [B, C, H, W] (NCHW, like PyTorch) -> logits [B, num_classes]."""
    B, C, H, W = x.shape
    P = cfg["patch"]
    NH = cfg["heads"]
    Dh = cfg["embed_dim"] // NH
    gh, gw = H // P, W // P
    N = gh * gw
    S = N + 1
    Cpp = C * P * P

    # Patch extraction (glue): NCHW -> [B, N, C*P*P] (conv16x16/s16 == matmul), then prepend
    # a zero row for the cls-token slot so the kernel works on [S, *] rows throughout.
    # Cast to bf16 here — identical to the in-kernel cast before the MXU, half the DMA bytes.
    patches = x.reshape(B, C, gh, P, gw, P).transpose(0, 2, 4, 1, 3, 5).reshape(B, N, Cpp)
    px = jnp.concatenate([jnp.zeros((B, 1, Cpp), x.dtype), patches], axis=1)  # [B, S, Cpp]
    px = px.astype(jnp.bfloat16)

    weight_args = (kp["clspos"], kp["pe_w"],
                   kp["ln1_g"], kp["ln1_b"],
                   kp["wq"], kp["wk"], kp["wv"], kp["bq"], kp["bk"], kp["bv"],
                   kp["wp"], kp["bp"], kp["ln2_g"], kp["ln2_b"],
                   kp["fc1_w"], kp["fc1_b"], kp["fc2_w"], kp["fc2_b"],
                   kp["lnf_g"], kp["lnf_b"], kp["head_w"], kp["head_b"])

    def const_spec(a):
        nd = a.ndim
        return pl.BlockSpec(a.shape, lambda b, _nd=nd: (0,) * _nd)

    kernel = functools.partial(_vit_fused_kernel, depth=cfg["depth"], heads=NH,
                               head_dim=Dh, eps=1e-6)

    out = pl.pallas_call(
        kernel,
        out_shape=jax.ShapeDtypeStruct((B, 1, NC_PAD), jnp.float32),
        grid=(B,),
        in_specs=[pl.BlockSpec((1, S, Cpp), lambda b: (b, 0, 0))]
                 + [const_spec(a) for a in weight_args],
        out_specs=pl.BlockSpec((1, 1, NC_PAD), lambda b: (b, 0, 0)),
        compiler_params=pltpu.CompilerParams(
            dimension_semantics=("parallel",)),          # batch across TCs on v7x
    )(px, *weight_args)

    return out[:, 0, :cfg["num_classes"]]


if __name__ == "__main__":
    key = jax.random.PRNGKey(0)
    k_params, k_x = jax.random.split(key)

    params = init_params(k_params, CFG)
    kparams = prepare_params(params, CFG)
    x = jax.random.normal(k_x, (2, CFG["in_ch"], CFG["img_size"], CFG["img_size"]),
                          dtype=jnp.float32)

    fwd = jax.jit(lambda a: vit_forward(a, kparams, CFG))
    logits = jax.block_until_ready(fwd(x))

    assert logits.shape == (2, CFG["num_classes"]), logits.shape
    assert bool(jnp.all(jnp.isfinite(logits)))
    print("KERNEL_OK")
</pallas_src>

<mosaic_0001>
module attributes {stable_mosaic.version = 11 : i64} {
  func.func @_vit_fused_kernel(%arg0: i32, %arg1: memref<1x5x768xbf16, #tpu.memory_space<vmem>>, %arg2: memref<5x64xf32, #tpu.memory_space<vmem>>, %arg3: memref<768x64xbf16, #tpu.memory_space<vmem>>, %arg4: memref<2x1x64xf32, #tpu.memory_space<vmem>>, %arg5: memref<2x1x64xf32, #tpu.memory_space<vmem>>, %arg6: memref<2x4x64x16xbf16, #tpu.memory_space<vmem>>, %arg7: memref<2x4x64x16xbf16, #tpu.memory_space<vmem>>, %arg8: memref<2x4x64x16xbf16, #tpu.memory_space<vmem>>, %arg9: memref<2x4x1x16xf32, #tpu.memory_space<vmem>>, %arg10: memref<2x4x1x16xf32, #tpu.memory_space<vmem>>, %arg11: memref<2x4x1x16xf32, #tpu.memory_space<vmem>>, %arg12: memref<2x4x16x64xbf16, #tpu.memory_space<vmem>>, %arg13: memref<2x1x64xf32, #tpu.memory_space<vmem>>, %arg14: memref<2x1x64xf32, #tpu.memory_space<vmem>>, %arg15: memref<2x1x64xf32, #tpu.memory_space<vmem>>, %arg16: memref<2x64x256xbf16, #tpu.memory_space<vmem>>, %arg17: memref<2x1x256xf32, #tpu.memory_space<vmem>>, %arg18: memref<2x256x64xbf16, #tpu.memory_space<vmem>>, %arg19: memref<2x1x64xf32, #tpu.memory_space<vmem>>, %arg20: memref<1x64xf32, #tpu.memory_space<vmem>>, %arg21: memref<1x64xf32, #tpu.memory_space<vmem>>, %arg22: memref<64x128xbf16, #tpu.memory_space<vmem>>, %arg23: memref<1x128xf32, #tpu.memory_space<vmem>>, %arg24: memref<1x1x128xf32, #tpu.memory_space<vmem>>) attributes {dimension_semantics = [#tpu.dimension_semantics<parallel>], iteration_bounds = array<i64: 2>, scalar_prefetch = 0 : i64, scratch_operands = 0 : i64, tpu.core_type = #tpu.core_type<tc>, window_params = [{transform_indices = @transform_0, window_bounds = array<i64: 1, 5, 768>}, {pipeline_mode = #tpu.pipeline_mode<synchronous>, transform_indices = @transform_1, window_bounds = array<i64: 5, 64>}, {pipeline_mode = #tpu.pipeline_mode<synchronous>, transform_indices = @transform_2, window_bounds = array<i64: 768, 64>}, {pipeline_mode = #tpu.pipeline_mode<synchronous>, transform_indices = @transform_3, window_bounds = array<i64: 2, 1, 64>}, {pipeline_mode = #tpu.pipeline_mode<synchronous>, transform_indices = @transform_4, window_bounds = array<i64: 2, 1, 64>}, {pipeline_mode = #tpu.pipeline_mode<synchronous>, transform_indices = @transform_5, window_bounds = array<i64: 2, 4, 64, 16>}, {pipeline_mode = #tpu.pipeline_mode<synchronous>, transform_indices = @transform_6, window_bounds = array<i64: 2, 4, 64, 16>}, {pipeline_mode = #tpu.pipeline_mode<synchronous>, transform_indices = @transform_7, window_bounds = array<i64: 2, 4, 64, 16>}, {pipeline_mode = #tpu.pipeline_mode<synchronous>, transform_indices = @transform_8, window_bounds = array<i64: 2, 4, 1, 16>}, {pipeline_mode = #tpu.pipeline_mode<synchronous>, transform_indices = @transform_9, window_bounds = array<i64: 2, 4, 1, 16>}, {pipeline_mode = #tpu.pipeline_mode<synchronous>, transform_indices = @transform_10, window_bounds = array<i64: 2, 4, 1, 16>}, {pipeline_mode = #tpu.pipeline_mode<synchronous>, transform_indices = @transform_11, window_bounds = array<i64: 2, 4, 16, 64>}, {pipeline_mode = #tpu.pipeline_mode<synchronous>, transform_indices = @transform_12, window_bounds = array<i64: 2, 1, 64>}, {pipeline_mode = #tpu.pipeline_mode<synchronous>, transform_indices = @transform_13, window_bounds = array<i64: 2, 1, 64>}, {pipeline_mode = #tpu.pipeline_mode<synchronous>, transform_indices = @transform_14, window_bounds = array<i64: 2, 1, 64>}, {pipeline_mode = #tpu.pipeline_mode<synchronous>, transform_indices = @transform_15, window_bounds = array<i64: 2, 64, 256>}, {pipeline_mode = #tpu.pipeline_mode<synchronous>, transform_indices = @transform_16, window_bounds = array<i64: 2, 1, 256>}, {pipeline_mode = #tpu.pipeline_mode<synchronous>, transform_indices = @transform_17, window_bounds = array<i64: 2, 256, 64>}, {pipeline_mode = #tpu.pipeline_mode<synchronous>, transform_indices = @transform_18, window_bounds = array<i64: 2, 1, 64>}, {pipeline_mode = #tpu.pipeline_mode<synchronous>, transform_indices = @transform_19, window_bounds = array<i64: 1, 64>}, {pipeline_mode = #tpu.pipeline_mode<synchronous>, transform_indices = @transform_20, window_bounds = array<i64: 1, 64>}, {pipeline_mode = #tpu.pipeline_mode<synchronous>, transform_indices = @transform_21, window_bounds = array<i64: 64, 128>}, {pipeline_mode = #tpu.pipeline_mode<synchronous>, transform_indices = @transform_22, window_bounds = array<i64: 1, 128>}, {transform_indices = @transform_23, window_bounds = array<i64: 1, 1, 128>}]} {
    %c0 = arith.constant 0 : index
    %c0_0 = arith.constant 0 : index
    %c0_1 = arith.constant 0 : index
    %0 = vector.load %arg1[%c0, %c0_0, %c0_1] : memref<1x5x768xbf16, #tpu.memory_space<vmem>>, vector<1x5x768xbf16>
    %1 = vector.shape_cast %0 : vector<1x5x768xbf16> to vector<5x768xbf16>
    %c0_2 = arith.constant 0 : index
    %c0_3 = arith.constant 0 : index
    %2 = vector.load %arg3[%c0_2, %c0_3] : memref<768x64xbf16, #tpu.memory_space<vmem>>, vector<768x64xbf16>
    %cst = arith.constant dense<0.000000e+00> : vector<5x64xf32>
    %3 = tpu.matmul %1, %2, %cst {dimension_numbers = #tpu.dot_dimension_numbers<[1], [0], [0], [1], [0, 0, 1, 1], [], []>} : vector<5x768xbf16>, vector<768x64xbf16>, vector<5x64xf32> -> vector<5x64xf32>
    %c0_4 = arith.constant 0 : index
    %c0_5 = arith.constant 0 : index
    %4 = vector.load %arg2[%c0_4, %c0_5] : memref<5x64xf32, #tpu.memory_space<vmem>>, vector<5x64xf32>
    %5 = arith.addf %3, %4 : vector<5x64xf32>
    %c0_6 = arith.constant 0 : index
    %c0_7 = arith.constant 0 : index
    %c0_8 = arith.constant 0 : index
    %6 = vector.load %arg4[%c0_6, %c0_7, %c0_8] : memref<2x1x64xf32, #tpu.memory_space<vmem>>, vector<1x1x64xf32>
    %7 = vector.shape_cast %6 : vector<1x1x64xf32> to vector<1x64xf32>
    %c0_9 = arith.constant 0 : index
    %c0_10 = arith.constant 0 : index
    %c0_11 = arith.constant 0 : index
    %8 = vector.load %arg5[%c0_9, %c0_10, %c0_11] : memref<2x1x64xf32, #tpu.memory_space<vmem>>, vector<1x1x64xf32>
    %9 = vector.shape_cast %8 : vector<1x1x64xf32> to vector<1x64xf32>
    %cst_12 = arith.constant dense<0.000000e+00> : vector<5xf32>
    %10 = vector.multi_reduction <add>, %5, %cst_12 [1] : vector<5x64xf32> to vector<5xf32>
    %11 = vector.shape_cast %10 : vector<5xf32> to vector<5x1xf32>
    %cst_13 = arith.constant 6.400000e+01 : f32
    %12 = vector.broadcast %cst_13 : f32 to vector<5x1xf32>
    %13 = arith.divf %11, %12 : vector<5x1xf32>
    %14 = vector.broadcast %13 : vector<5x1xf32> to vector<5x64xf32>
    %15 = arith.subf %5, %14 : vector<5x64xf32>
    %16 = arith.mulf %15, %15 : vector<5x64xf32>
    %cst_14 = arith.constant dense<0.000000e+00> : vector<5xf32>
    %17 = vector.multi_reduction <add>, %16, %cst_14 [1] : vector<5x64xf32> to vector<5xf32>
    %18 = vector.shape_cast %17 : vector<5xf32> to vector<5x1xf32>
    %cst_15 = arith.constant 6.400000e+01 : f32
    %19 = vector.broadcast %cst_15 : f32 to vector<5x1xf32>
    %20 = arith.divf %18, %19 : vector<5x1xf32>
    %21 = vector.broadcast %13 : vector<5x1xf32> to vector<5x64xf32>
    %22 = arith.subf %5, %21 : vector<5x64xf32>
    %cst_16 = arith.constant 9.99999997E-7 : f32
    %23 = vector.broadcast %cst_16 : f32 to vector<5x1xf32>
    %24 = arith.addf %20, %23 : vector<5x1xf32>
    %25 = math.rsqrt %24 : vector<5x1xf32>
    %26 = vector.broadcast %25 : vector<5x1xf32> to vector<5x64xf32>
    %27 = arith.mulf %22, %26 : vector<5x64xf32>
    %28 = vector.broadcast %7 : vector<1x64xf32> to vector<5x64xf32>
    %29 = arith.mulf %27, %28 : vector<5x64xf32>
    %30 = vector.broadcast %9 : vector<1x64xf32> to vector<5x64xf32>
    %31 = arith.addf %29, %30 : vector<5x64xf32>
    %32 = arith.truncf %31 : vector<5x64xf32> to vector<5x64xbf16>
    %c0_17 = arith.constant 0 : index
    %c0_18 = arith.constant 0 : index
    %c0_19 = arith.constant 0 : index
    %33 = vector.load %arg13[%c0_17, %c0_18, %c0_19] : memref<2x1x64xf32, #tpu.memory_space<vmem>>, vector<1x1x64xf32>
    %34 = vector.shape_cast %33 : vector<1x1x64xf32> to vector<1x64xf32>
    %c0_20 = arith.constant 0 : index
    %c0_21 = arith.constant 0 : index
    %c0_22 = arith.constant 0 : index
    %c0_23 = arith.constant 0 : index
    %35 = vector.load %arg6[%c0_20, %c0_21, %c0_22, %c0_23] : memref<2x4x64x16xbf16, #tpu.memory_space<vmem>>, vector<1x1x64x16xbf16>
    %36 = vector.shape_cast %35 : vector<1x1x64x16xbf16> to vector<64x16xbf16>
    %cst_24 = arith.constant dense<0.000000e+00> : vector<5x16xf32>
    %37 = tpu.matmul %32, %36, %cst_24 {dimension_numbers = #tpu.dot_dimension_numbers<[1], [0], [0], [1], [0, 0, 1, 1], [], []>} : vector<5x64xbf16>, vector<64x16xbf16>, vector<5x16xf32> -> vector<5x16xf32>
    %c0_25 = arith.constant 0 : index
    %c0_26 = arith.constant 0 : index
    %c0_27 = arith.constant 0 : index
    %c0_28 = arith.constant 0 : index
    %38 = vector.load %arg9[%c0_25, %c0_26, %c0_27, %c0_28] : memref<2x4x1x16xf32, #tpu.memory_space<vmem>>, vector<1x1x1x16xf32>
    %39 = vector.shape_cast %38 : vector<1x1x1x16xf32> to vector<1x16xf32>
    %40 = vector.broadcast %39 : vector<1x16xf32> to vector<5x16xf32>
    %41 = arith.addf %37, %40 : vector<5x16xf32>
    %c0_29 = arith.constant 0 : index
    %c0_30 = arith.constant 0 : index
    %c0_31 = arith.constant 0 : index
    %c0_32 = arith.constant 0 : index
    %42 = vector.load %arg7[%c0_29, %c0_30, %c0_31, %c0_32] : memref<2x4x64x16xbf16, #tpu.memory_space<vmem>>, vector<1x1x64x16xbf16>
    %43 = vector.shape_cast %42 : vector<1x1x64x16xbf16> to vector<64x16xbf16>
    %cst_33 = arith.constant dense<0.000000e+00> : vector<5x16xf32>
    %44 = tpu.matmul %32, %43, %cst_33 {dimension_numbers = #tpu.dot_dimension_numbers<[1], [0], [0], [1], [0, 0, 1, 1], [], []>} : vector<5x64xbf16>, vector<64x16xbf16>, vector<5x16xf32> -> vector<5x16xf32>
    %c0_34 = arith.constant 0 : index
    %c0_35 = arith.constant 0 : index
    %c0_36 = arith.constant 0 : index
    %c0_37 = arith.constant 0 : index
    %45 = vector.load %arg10[%c0_34, %c0_35, %c0_36, %c0_37] : memref<2x4x1x16xf32, #tpu.memory_space<vmem>>, vector<1x1x1x16xf32>
    %46 = vector.shape_cast %45 : vector<1x1x1x16xf32> to vector<1x16xf32>
    %47 = vector.broadcast %46 : vector<1x16xf32> to vector<5x16xf32>
    %48 = arith.addf %44, %47 : vector<5x16xf32>
    %c0_38 = arith.constant 0 : index
    %c0_39 = arith.constant 0 : index
    %c0_40 = arith.constant 0 : index
    %c0_41 = arith.constant 0 : index
    %49 = vector.load %arg8[%c0_38, %c0_39, %c0_40, %c0_41] : memref<2x4x64x16xbf16, #tpu.memory_space<vmem>>, vector<1x1x64x16xbf16>
    %50 = vector.shape_cast %49 : vector<1x1x64x16xbf16> to vector<64x16xbf16>
    %cst_42 = arith.constant dense<0.000000e+00> : vector<5x16xf32>
    %51 = tpu.matmul %32, %50, %cst_42 {dimension_numbers = #tpu.dot_dimension_numbers<[1], [0], [0], [1], [0, 0, 1, 1], [], []>} : vector<5x64xbf16>, vector<64x16xbf16>, vector<5x16xf32> -> vector<5x16xf32>
    %c0_43 = arith.constant 0 : index
    %c0_44 = arith.constant 0 : index
    %c0_45 = arith.constant 0 : index
    %c0_46 = arith.constant 0 : index
    %52 = vector.load %arg11[%c0_43, %c0_44, %c0_45, %c0_46] : memref<2x4x1x16xf32, #tpu.memory_space<vmem>>, vector<1x1x1x16xf32>
    %53 = vector.shape_cast %52 : vector<1x1x1x16xf32> to vector<1x16xf32>
    %54 = vector.broadcast %53 : vector<1x16xf32> to vector<5x16xf32>
    %55 = arith.addf %51, %54 : vector<5x16xf32>
    %cst_47 = arith.constant dense<0.000000e+00> : vector<5x5xf32>
    %56 = tpu.matmul %41, %48, %cst_47 {dimension_numbers = #tpu.dot_dimension_numbers<[1], [1], [0], [0], [0, 0, 1, 0], [], []>} : vector<5x16xf32>, vector<5x16xf32>, vector<5x5xf32> -> vector<5x5xf32>
    %cst_48 = arith.constant 2.500000e-01 : f32
    %57 = vector.broadcast %cst_48 : f32 to vector<5x5xf32>
    %58 = arith.mulf %56, %57 : vector<5x5xf32>
    %cst_49 = arith.constant dense<0xFF800000> : vector<5xf32>
    %59 = vector.multi_reduction <maximumf>, %58, %cst_49 [1] : vector<5x5xf32> to vector<5xf32>
    %60 = vector.shape_cast %59 : vector<5xf32> to vector<5x1xf32>
    %61 = vector.broadcast %60 : vector<5x1xf32> to vector<5x5xf32>
    %62 = arith.subf %58, %61 : vector<5x5xf32>
    %63 = math.exp %62 : vector<5x5xf32>
    %cst_50 = arith.constant dense<0.000000e+00> : vector<5xf32>
    %64 = vector.multi_reduction <add>, %63, %cst_50 [1] : vector<5x5xf32> to vector<5xf32>
    %65 = vector.shape_cast %64 : vector<5xf32> to vector<5x1xf32>
    %66 = tpu.reciprocal %65 {approx = true} : vector<5x1xf32> -> vector<5x1xf32>
    %67 = vector.broadcast %66 : vector<5x1xf32> to vector<5x5xf32>
    %68 = arith.mulf %63, %67 : vector<5x5xf32>
    %cst_51 = arith.constant dense<0.000000e+00> : vector<5x16xf32>
    %69 = tpu.matmul %68, %55, %cst_51 {dimension_numbers = #tpu.dot_dimension_numbers<[1], [0], [0], [1], [0, 0, 1, 1], [], []>} : vector<5x5xf32>, vector<5x16xf32>, vector<5x16xf32> -> vector<5x16xf32>
    %70 = arith.truncf %69 : vector<5x16xf32> to vector<5x16xbf16>
    %c0_52 = arith.constant 0 : index
    %c0_53 = arith.constant 0 : index
    %c0_54 = arith.constant 0 : index
    %c0_55 = arith.constant 0 : index
    %71 = vector.load %arg12[%c0_52, %c0_53, %c0_54, %c0_55] : memref<2x4x16x64xbf16, #tpu.memory_space<vmem>>, vector<1x1x16x64xbf16>
    %72 = vector.shape_cast %71 : vector<1x1x16x64xbf16> to vector<16x64xbf16>
    %cst_56 = arith.constant dense<0.000000e+00> : vector<5x64xf32>
    %73 = tpu.matmul %70, %72, %cst_56 {dimension_numbers = #tpu.dot_dimension_numbers<[1], [0], [0], [1], [0, 0, 1, 1], [], []>} : vector<5x16xbf16>, vector<16x64xbf16>, vector<5x64xf32> -> vector<5x64xf32>
    %74 = vector.broadcast %34 : vector<1x64xf32> to vector<5x64xf32>
    %75 = arith.addf %74, %73 : vector<5x64xf32>
    %c0_57 = arith.constant 0 : index
    %c1 = arith.constant 1 : index
    %c0_58 = arith.constant 0 : index
    %c0_59 = arith.constant 0 : index
    %76 = vector.load %arg6[%c0_57, %c1, %c0_58, %c0_59] : memref<2x4x64x16xbf16, #tpu.memory_space<vmem>>, vector<1x1x64x16xbf16>
    %77 = vector.shape_cast %76 : vector<1x1x64x16xbf16> to vector<64x16xbf16>
    %cst_60 = arith.constant dense<0.000000e+00> : vector<5x16xf32>
    %78 = tpu.matmul %32, %77, %cst_60 {dimension_numbers = #tpu.dot_dimension_numbers<[1], [0], [0], [1], [0, 0, 1, 1], [], []>} : vector<5x64xbf16>, vector<64x16xbf16>, vector<5x16xf32> -> vector<5x16xf32>
    %c0_61 = arith.constant 0 : index
    %c1_62 = arith.constant 1 : index
    %c0_63 = arith.constant 0 : index
    %c0_64 = arith.constant 0 : index
    %79 = vector.load %arg9[%c0_61, %c1_62, %c0_63, %c0_64] : memref<2x4x1x16xf32, #tpu.memory_space<vmem>>, vector<1x1x1x16xf32>
    %80 = vector.shape_cast %79 : vector<1x1x1x16xf32> to vector<1x16xf32>
    %81 = vector.broadcast %80 : vector<1x16xf32> to vector<5x16xf32>
    %82 = arith.addf %78, %81 : vector<5x16xf32>
    %c0_65 = arith.constant 0 : index
    %c1_66 = arith.constant 1 : index
    %c0_67 = arith.constant 0 : index
    %c0_68 = arith.constant 0 : index
    %83 = vector.load %arg7[%c0_65, %c1_66, %c0_67, %c0_68] : memref<2x4x64x16xbf16, #tpu.memory_space<vmem>>, vector<1x1x64x16xbf16>
    %84 = vector.shape_cast %83 : vector<1x1x64x16xbf16> to vector<64x16xbf16>
    %cst_69 = arith.constant dense<0.000000e+00> : vector<5x16xf32>
    %85 = tpu.matmul %32, %84, %cst_69 {dimension_numbers = #tpu.dot_dimension_numbers<[1], [0], [0], [1], [0, 0, 1, 1], [], []>} : vector<5x64xbf16>, vector<64x16xbf16>, vector<5x16xf32> -> vector<5x16xf32>
    %c0_70 = arith.constant 0 : index
    %c1_71 = arith.constant 1 : index
    %c0_72 = arith.constant 0 : index
    %c0_73 = arith.constant 0 : index
    %86 = vector.load %arg10[%c0_70, %c1_71, %c0_72, %c0_73] : memref<2x4x1x16xf32, #tpu.memory_space<vmem>>, vector<1x1x1x16xf32>
    %87 = vector.shape_cast %86 : vector<1x1x1x16xf32> to vector<1x16xf32>
    %88 = vector.broadcast %87 : vector<1x16xf32> to vector<5x16xf32>
    %89 = arith.addf %85, %88 : vector<5x16xf32>
    %c0_74 = arith.constant 0 : index
    %c1_75 = arith.constant 1 : index
    %c0_76 = arith.constant 0 : index
    %c0_77 = arith.constant 0 : index
    %90 = vector.load %arg8[%c0_74, %c1_75, %c0_76, %c0_77] : memref<2x4x64x16xbf16, #tpu.memory_space<vmem>>, vector<1x1x64x16xbf16>
    %91 = vector.shape_cast %90 : vector<1x1x64x16xbf16> to vector<64x16xbf16>
    %cst_78 = arith.constant dense<0.000000e+00> : vector<5x16xf32>
    %92 = tpu.matmul %32, %91, %cst_78 {dimension_numbers = #tpu.dot_dimension_numbers<[1], [0], [0], [1], [0, 0, 1, 1], [], []>} : vector<5x64xbf16>, vector<64x16xbf16>, vector<5x16xf32> -> vector<5x16xf32>
    %c0_79 = arith.constant 0 : index
    %c1_80 = arith.constant 1 : index
    %c0_81 = arith.constant 0 : index
    %c0_82 = arith.constant 0 : index
    %93 = vector.load %arg11[%c0_79, %c1_80, %c0_81, %c0_82] : memref<2x4x1x16xf32, #tpu.memory_space<vmem>>, vector<1x1x1x16xf32>
    %94 = vector.shape_cast %93 : vector<1x1x1x16xf32> to vector<1x16xf32>
    %95 = vector.broadcast %94 : vector<1x16xf32> to vector<5x16xf32>
    %96 = arith.addf %92, %95 : vector<5x16xf32>
    %cst_83 = arith.constant dense<0.000000e+00> : vector<5x5xf32>
    %97 = tpu.matmul %82, %89, %cst_83 {dimension_numbers = #tpu.dot_dimension_numbers<[1], [1], [0], [0], [0, 0, 1, 0], [], []>} : vector<5x16xf32>, vector<5x16xf32>, vector<5x5xf32> -> vector<5x5xf32>
    %cst_84 = arith.constant 2.500000e-01 : f32
    %98 = vector.broadcast %cst_84 : f32 to vector<5x5xf32>
    %99 = arith.mulf %97, %98 : vector<5x5xf32>
    %cst_85 = arith.constant dense<0xFF800000> : vector<5xf32>
    %100 = vector.multi_reduction <maximumf>, %99, %cst_85 [1] : vector<5x5xf32> to vector<5xf32>
    %101 = vector.shape_cast %100 : vector<5xf32> to vector<5x1xf32>
    %102 = vector.broadcast %101 : vector<5x1xf32> to vector<5x5xf32>
    %103 = arith.subf %99, %102 : vector<5x5xf32>
    %104 = math.exp %103 : vector<5x5xf32>
    %cst_86 = arith.constant dense<0.000000e+00> : vector<5xf32>
    %105 = vector.multi_reduction <add>, %104, %cst_86 [1] : vector<5x5xf32> to vector<5xf32>
    %106 = vector.shape_cast %105 : vector<5xf32> to vector<5x1xf32>
    %107 = tpu.reciprocal %106 {approx = true} : vector<5x1xf32> -> vector<5x1xf32>
    %108 = vector.broadcast %107 : vector<5x1xf32> to vector<5x5xf32>
    %109 = arith.mulf %104, %108 : vector<5x5xf32>
    %cst_87 = arith.constant dense<0.000000e+00> : vector<5x16xf32>
    %110 = tpu.matmul %109, %96, %cst_87 {dimension_numbers = #tpu.dot_dimension_numbers<[1], [0], [0], [1], [0, 0, 1, 1], [], []>} : vector<5x5xf32>, vector<5x16xf32>, vector<5x16xf32> -> vector<5x16xf32>
    %111 = arith.truncf %110 : vector<5x16xf32> to vector<5x16xbf16>
    %c0_88 = arith.constant 0 : index
    %c1_89 = arith.constant 1 : index
    %c0_90 = arith.constant 0 : index
    %c0_91 = arith.constant 0 : index
    %112 = vector.load %arg12[%c0_88, %c1_89, %c0_90, %c0_91] : memref<2x4x16x64xbf16, #tpu.memory_space<vmem>>, vector<1x1x16x64xbf16>
    %113 = vector.shape_cast %112 : vector<1x1x16x64xbf16> to vector<16x64xbf16>
    %cst_92 = arith.constant dense<0.000000e+00> : vector<5x64xf32>
    %114 = tpu.matmul %111, %113, %cst_92 {dimension_numbers = #tpu.dot_dimension_numbers<[1], [0], [0], [1], [0, 0, 1, 1], [], []>} : vector<5x16xbf16>, vector<16x64xbf16>, vector<5x64xf32> -> vector<5x64xf32>
    %115 = arith.addf %75, %114 : vector<5x64xf32>
    %c0_93 = arith.constant 0 : index
    %c2 = arith.constant 2 : index
    %c0_94 = arith.constant 0 : index
    %c0_95 = arith.constant 0 : index
    %116 = vector.load %arg6[%c0_93, %c2, %c0_94, %c0_95] : memref<2x4x64x16xbf16, #tpu.memory_space<vmem>>, vector<1x1x64x16xbf16>
    %117 = vector.shape_cast %116 : vector<1x1x64x16xbf16> to vector<64x16xbf16>
    %cst_96 = arith.constant dense<0.000000e+00> : vector<5x16xf32>
    %118 = tpu.matmul %32, %117, %cst_96 {dimension_numbers = #tpu.dot_dimension_numbers<[1], [0], [0], [1], [0, 0, 1, 1], [], []>} : vector<5x64xbf16>, vector<64x16xbf16>, vector<5x16xf32> -> vector<5x16xf32>
    %c0_97 = arith.constant 0 : index
    %c2_98 = arith.constant 2 : index
    %c0_99 = arith.constant 0 : index
    %c0_100 = arith.constant 0 : index
    %119 = vector.load %arg9[%c0_97, %c2_98, %c0_99, %c0_100] : memref<2x4x1x16xf32, #tpu.memory_space<vmem>>, vector<1x1x1x16xf32>
    %120 = vector.shape_cast %119 : vector<1x1x1x16xf32> to vector<1x16xf32>
    %121 = vector.broadcast %120 : vector<1x16xf32> to vector<5x16xf32>
    %122 = arith.addf %118, %121 : vector<5x16xf32>
    %c0_101 = arith.constant 0 : index
    %c2_102 = arith.constant 2 : index
    %c0_103 = arith.constant 0 : index
    %c0_104 = arith.constant 0 : index
    %123 = vector.load %arg7[%c0_101, %c2_102, %c0_103, %c0_104] : memref<2x4x64x16xbf16, #tpu.memory_space<vmem>>, vector<1x1x64x16xbf16>
    %124 = vector.shape_cast %123 : vector<1x1x64x16xbf16> to vector<64x16xbf16>
    %cst_105 = arith.constant dense<0.000000e+00> : vector<5x16xf32>
    %125 = tpu.matmul %32, %124, %cst_105 {dimension_numbers = #tpu.dot_dimension_numbers<[1], [0], [0], [1], [0, 0, 1, 1], [], []>} : vector<5x64xbf16>, vector<64x16xbf16>, vector<5x16xf32> -> vector<5x16xf32>
    %c0_106 = arith.constant 0 : index
    %c2_107 = arith.constant 2 : index
    %c0_108 = arith.constant 0 : index
    %c0_109 = arith.constant 0 : index
    %126 = vector.load %arg10[%c0_106, %c2_107, %c0_108, %c0_109] : memref<2x4x1x16xf32, #tpu.memory_space<vmem>>, vector<1x1x1x16xf32>
    %127 = vector.shape_cast %126 : vector<1x1x1x16xf32> to vector<1x16xf32>
    %128 = vector.broadcast %127 : vector<1x16xf32> to vector<5x16xf32>
    %129 = arith.addf %125, %128 : vector<5x16xf32>
    %c0_110 = arith.constant 0 : index
    %c2_111 = arith.constant 2 : index
    %c0_112 = arith.constant 0 : index
    %c0_113 = arith.constant 0 : index
    %130 = vector.load %arg8[%c0_110, %c2_111, %c0_112, %c0_113] : memref<2x4x64x16xbf16, #tpu.memory_space<vmem>>, vector<1x1x64x16xbf16>
    %131 = vector.shape_cast %130 : vector<1x1x64x16xbf16> to vector<64x16xbf16>
    %cst_114 = arith.constant dense<0.000000e+00> : vector<5x16xf32>
    %132 = tpu.matmul %32, %131, %cst_114 {dimension_numbers = #tpu.dot_dimension_numbers<[1], [0], [0], [1], [0, 0, 1, 1], [], []>} : vector<5x64xbf16>, vector<64x16xbf16>, vector<5x16xf32> -> vector<5x16xf32>
    %c0_115 = arith.constant 0 : index
    %c2_116 = arith.constant 2 : index
    %c0_117 = arith.constant 0 : index
    %c0_118 = arith.constant 0 : index
    %133 = vector.load %arg11[%c0_115, %c2_116, %c0_117, %c0_118] : memref<2x4x1x16xf32, #tpu.memory_space<vmem>>, vector<1x1x1x16xf32>
    %134 = vector.shape_cast %133 : vector<1x1x1x16xf32> to vector<1x16xf32>
    %135 = vector.broadcast %134 : vector<1x16xf32> to vector<5x16xf32>
    %136 = arith.addf %132, %135 : vector<5x16xf32>
    %cst_119 = arith.constant dense<0.000000e+00> : vector<5x5xf32>
    %137 = tpu.matmul %122, %129, %cst_119 {dimension_numbers = #tpu.dot_dimension_numbers<[1], [1], [0], [0], [0, 0, 1, 0], [], []>} : vector<5x16xf32>, vector<5x16xf32>, vector<5x5xf32> -> vector<5x5xf32>
    %cst_120 = arith.constant 2.500000e-01 : f32
    %138 = vector.broadcast %cst_120 : f32 to vector<5x5xf32>
    %139 = arith.mulf %137, %138 : vector<5x5xf32>
    %cst_121 = arith.constant dense<0xFF800000> : vector<5xf32>
    %140 = vector.multi_reduction <maximumf>, %139, %cst_121 [1] : vector<5x5xf32> to vector<5xf32>
    %141 = vector.shape_cast %140 : vector<5xf32> to vector<5x1xf32>
    %142 = vector.broadcast %141 : vector<5x1xf32> to vector<5x5xf32>
    %143 = arith.subf %139, %142 : vector<5x5xf32>
    %144 = math.exp %143 : vector<5x5xf32>
    %cst_122 = arith.constant dense<0.000000e+00> : vector<5xf32>
    %145 = vector.multi_reduction <add>, %144, %cst_122 [1] : vector<5x5xf32> to vector<5xf32>
    %146 = vector.shape_cast %145 : vector<5xf32> to vector<5x1xf32>
    %147 = tpu.reciprocal %146 {approx = true} : vector<5x1xf32> -> vector<5x1xf32>
    %148 = vector.broadcast %147 : vector<5x1xf32> to vector<5x5xf32>
    %149 = arith.mulf %144, %148 : vector<5x5xf32>
    %cst_123 = arith.constant dense<0.000000e+00> : vector<5x16xf32>
    %150 = tpu.matmul %149, %136, %cst_123 {dimension_numbers = #tpu.dot_dimension_numbers<[1], [0], [0], [1], [0, 0, 1, 1], [], []>} : vector<5x5xf32>, vector<5x16xf32>, vector<5x16xf32> -> vector<5x16xf32>
    %151 = arith.truncf %150 : vector<5x16xf32> to vector<5x16xbf16>
    %c0_124 = arith.constant 0 : index
    %c2_125 = arith.constant 2 : index
    %c0_126 = arith.constant 0 : index
    %c0_127 = arith.constant 0 : index
    %152 = vector.load %arg12[%c0_124, %c2_125, %c0_126, %c0_127] : memref<2x4x16x64xbf16, #tpu.memory_space<vmem>>, vector<1x1x16x64xbf16>
    %153 = vector.shape_cast %152 : vector<1x1x16x64xbf16> to vector<16x64xbf16>
    %cst_128 = arith.constant dense<0.000000e+00> : vector<5x64xf32>
    %154 = tpu.matmul %151, %153, %cst_128 {dimension_numbers = #tpu.dot_dimension_numbers<[1], [0], [0], [1], [0, 0, 1, 1], [], []>} : vector<5x16xbf16>, vector<16x64xbf16>, vector<5x64xf32> -> vector<5x64xf32>
    %155 = arith.addf %115, %154 : vector<5x64xf32>
    %c0_129 = arith.constant 0 : index
    %c3 = arith.constant 3 : index
    %c0_130 = arith.constant 0 : index
    %c0_131 = arith.constant 0 : index
    %156 = vector.load %arg6[%c0_129, %c3, %c0_130, %c0_131] : memref<2x4x64x16xbf16, #tpu.memory_space<vmem>>, vector<1x1x64x16xbf16>
    %157 = vector.shape_cast %156 : vector<1x1x64x16xbf16> to vector<64x16xbf16>
    %cst_132 = arith.constant dense<0.000000e+00> : vector<5x16xf32>
    %158 = tpu.matmul %32, %157, %cst_132 {dimension_numbers = #tpu.dot_dimension_numbers<[1], [0], [0], [1], [0, 0, 1, 1], [], []>} : vector<5x64xbf16>, vector<64x16xbf16>, vector<5x16xf32> -> vector<5x16xf32>
    %c0_133 = arith.constant 0 : index
    %c3_134 = arith.constant 3 : index
    %c0_135 = arith.constant 0 : index
    %c0_136 = arith.constant 0 : index
    %159 = vector.load %arg9[%c0_133, %c3_134, %c0_135, %c0_136] : memref<2x4x1x16xf32, #tpu.memory_space<vmem>>, vector<1x1x1x16xf32>
    %160 = vector.shape_cast %159 : vector<1x1x1x16xf32> to vector<1x16xf32>
    %161 = vector.broadcast %160 : vector<1x16xf32> to vector<5x16xf32>
    %162 = arith.addf %158, %161 : vector<5x16xf32>
    %c0_137 = arith.constant 0 : index
    %c3_138 = arith.constant 3 : index
    %c0_139 = arith.constant 0 : index
    %c0_140 = arith.constant 0 : index
    %163 = vector.load %arg7[%c0_137, %c3_138, %c0_139, %c0_140] : memref<2x4x64x16xbf16, #tpu.memory_space<vmem>>, vector<1x1x64x16xbf16>
    %164 = vector.shape_cast %163 : vector<1x1x64x16xbf16> to vector<64x16xbf16>
    %cst_141 = arith.constant dense<0.000000e+00> : vector<5x16xf32>
    %165 = tpu.matmul %32, %164, %cst_141 {dimension_numbers = #tpu.dot_dimension_numbers<[1], [0], [0], [1], [0, 0, 1, 1], [], []>} : vector<5x64xbf16>, vector<64x16xbf16>, vector<5x16xf32> -> vector<5x16xf32>
    %c0_142 = arith.constant 0 : index
    %c3_143 = arith.constant 3 : index
    %c0_144 = arith.constant 0 : index
    %c0_145 = arith.constant 0 : index
    %166 = vector.load %arg10[%c0_142, %c3_143, %c0_144, %c0_145] : memref<2x4x1x16xf32, #tpu.memory_space<vmem>>, vector<1x1x1x16xf32>
    %167 = vector.shape_cast %166 : vector<1x1x1x16xf32> to vector<1x16xf32>
    %168 = vector.broadcast %167 : vector<1x16xf32> to vector<5x16xf32>
    %169 = arith.addf %165, %168 : vector<5x16xf32>
    %c0_146 = arith.constant 0 : index
    %c3_147 = arith.constant 3 : index
    %c0_148 = arith.constant 0 : index
    %c0_149 = arith.constant 0 : index
    %170 = vector.load %arg8[%c0_146, %c3_147, %c0_148, %c0_149] : memref<2x4x64x16xbf16, #tpu.memory_space<vmem>>, vector<1x1x64x16xbf16>
    %171 = vector.shape_cast %170 : vector<1x1x64x16xbf16> to vector<64x16xbf16>
    %cst_150 = arith.constant dense<0.000000e+00> : vector<5x16xf32>
    %172 = tpu.matmul %32, %171, %cst_150 {dimension_numbers = #tpu.dot_dimension_numbers<[1], [0], [0], [1], [0, 0, 1, 1], [], []>} : vector<5x64xbf16>, vector<64x16xbf16>, vector<5x16xf32> -> vector<5x16xf32>
    %c0_151 = arith.constant 0 : index
    %c3_152 = arith.constant 3 : index
    %c0_153 = arith.constant 0 : index
    %c0_154 = arith.constant 0 : index
    %173 = vector.load %arg11[%c0_151, %c3_152, %c0_153, %c0_154] : memref<2x4x1x16xf32, #tpu.memory_space<vmem>>, vector<1x1x1x16xf32>
    %174 = vector.shape_cast %173 : vector<1x1x1x16xf32> to vector<1x16xf32>
    %175 = vector.broadcast %174 : vector<1x16xf32> to vector<5x16xf32>
    %176 = arith.addf %172, %175 : vector<5x16xf32>
    %cst_155 = arith.constant dense<0.000000e+00> : vector<5x5xf32>
    %177 = tpu.matmul %162, %169, %cst_155 {dimension_numbers = #tpu.dot_dimension_numbers<[1], [1], [0], [0], [0, 0, 1, 0], [], []>} : vector<5x16xf32>, vector<5x16xf32>, vector<5x5xf32> -> vector<5x5xf32>
    %cst_156 = arith.constant 2.500000e-01 : f32
    %178 = vector.broadcast %cst_156 : f32 to vector<5x5xf32>
    %179 = arith.mulf %177, %178 : vector<5x5xf32>
    %cst_157 = arith.constant dense<0xFF800000> : vector<5xf32>
    %180 = vector.multi_reduction <maximumf>, %179, %cst_157 [1] : vector<5x5xf32> to vector<5xf32>
    %181 = vector.shape_cast %180 : vector<5xf32> to vector<5x1xf32>
    %182 = vector.broadcast %181 : vector<5x1xf32> to vector<5x5xf32>
    %183 = arith.subf %179, %182 : vector<5x5xf32>
    %184 = math.exp %183 : vector<5x5xf32>
    %cst_158 = arith.constant dense<0.000000e+00> : vector<5xf32>
    %185 = vector.multi_reduction <add>, %184, %cst_158 [1] : vector<5x5xf32> to vector<5xf32>
    %186 = vector.shape_cast %185 : vector<5xf32> to vector<5x1xf32>
    %187 = tpu.reciprocal %186 {approx = true} : vector<5x1xf32> -> vector<5x1xf32>
    %188 = vector.broadcast %187 : vector<5x1xf32> to vector<5x5xf32>
    %189 = arith.mulf %184, %188 : vector<5x5xf32>
    %cst_159 = arith.constant dense<0.000000e+00> : vector<5x16xf32>
    %190 = tpu.matmul %189, %176, %cst_159 {dimension_numbers = #tpu.dot_dimension_numbers<[1], [0], [0], [1], [0, 0, 1, 1], [], []>} : vector<5x5xf32>, vector<5x16xf32>, vector<5x16xf32> -> vector<5x16xf32>
    %191 = arith.truncf %190 : vector<5x16xf32> to vector<5x16xbf16>
    %c0_160 = arith.constant 0 : index
    %c3_161 = arith.constant 3 : index
    %c0_162 = arith.constant 0 : index
    %c0_163 = arith.constant 0 : index
    %192 = vector.load %arg12[%c0_160, %c3_161, %c0_162, %c0_163] : memref<2x4x16x64xbf16, #tpu.memory_space<vmem>>, vector<1x1x16x64xbf16>
    %193 = vector.shape_cast %192 : vector<1x1x16x64xbf16> to vector<16x64xbf16>
    %cst_164 = arith.constant dense<0.000000e+00> : vector<5x64xf32>
    %194 = tpu.matmul %191, %193, %cst_164 {dimension_numbers = #tpu.dot_dimension_numbers<[1], [0], [0], [1], [0, 0, 1, 1], [], []>} : vector<5x16xbf16>, vector<16x64xbf16>, vector<5x64xf32> -> vector<5x64xf32>
    %195 = arith.addf %155, %194 : vector<5x64xf32>
    %196 = arith.addf %5, %195 : vector<5x64xf32>
    %c0_165 = arith.constant 0 : index
    %c0_166 = arith.constant 0 : index
    %c0_167 = arith.constant 0 : index
    %197 = vector.load %arg14[%c0_165, %c0_166, %c0_167] : memref<2x1x64xf32, #tpu.memory_space<vmem>>, vector<1x1x64xf32>
    %198 = vector.shape_cast %197 : vector<1x1x64xf32> to vector<1x64xf32>
    %c0_168 = arith.constant 0 : index
    %c0_169 = arith.constant 0 : index
    %c0_170 = arith.constant 0 : index
    %199 = vector.load %arg15[%c0_168, %c0_169, %c0_170] : memref<2x1x64xf32, #tpu.memory_space<vmem>>, vector<1x1x64xf32>
    %200 = vector.shape_cast %199 : vector<1x1x64xf32> to vector<1x64xf32>
    %cst_171 = arith.constant dense<0.000000e+00> : vector<5xf32>
    %201 = vector.multi_reduction <add>, %196, %cst_171 [1] : vector<5x64xf32> to vector<5xf32>
    %202 = vector.shape_cast %201 : vector<5xf32> to vector<5x1xf32>
    %cst_172 = arith.constant 6.400000e+01 : f32
    %203 = vector.broadcast %cst_172 : f32 to vector<5x1xf32>
    %204 = arith.divf %202, %203 : vector<5x1xf32>
    %205 = vector.broadcast %204 : vector<5x1xf32> to vector<5x64xf32>
    %206 = arith.subf %196, %205 : vector<5x64xf32>
    %207 = arith.mulf %206, %206 : vector<5x64xf32>
    %cst_173 = arith.constant dense<0.000000e+00> : vector<5xf32>
    %208 = vector.multi_reduction <add>, %207, %cst_173 [1] : vector<5x64xf32> to vector<5xf32>
    %209 = vector.shape_cast %208 : vector<5xf32> to vector<5x1xf32>
    %cst_174 = arith.constant 6.400000e+01 : f32
    %210 = vector.broadcast %cst_174 : f32 to vector<5x1xf32>
    %211 = arith.divf %209, %210 : vector<5x1xf32>
    %212 = vector.broadcast %204 : vector<5x1xf32> to vector<5x64xf32>
    %213 = arith.subf %196, %212 : vector<5x64xf32>
    %cst_175 = arith.constant 9.99999997E-7 : f32
    %214 = vector.broadcast %cst_175 : f32 to vector<5x1xf32>
    %215 = arith.addf %211, %214 : vector<5x1xf32>
    %216 = math.rsqrt %215 : vector<5x1xf32>
    %217 = vector.broadcast %216 : vector<5x1xf32> to vector<5x64xf32>
    %218 = arith.mulf %213, %217 : vector<5x64xf32>
    %219 = vector.broadcast %198 : vector<1x64xf32> to vector<5x64xf32>
    %220 = arith.mulf %218, %219 : vector<5x64xf32>
    %221 = vector.broadcast %200 : vector<1x64xf32> to vector<5x64xf32>
    %222 = arith.addf %220, %221 : vector<5x64xf32>
    %c0_176 = arith.constant 0 : index
    %c0_177 = arith.constant 0 : index
    %c0_178 = arith.constant 0 : index
    %223 = vector.load %arg16[%c0_176, %c0_177, %c0_178] : memref<2x64x256xbf16, #tpu.memory_space<vmem>>, vector<1x64x256xbf16>
    %224 = vector.shape_cast %223 : vector<1x64x256xbf16> to vector<64x256xbf16>
    %c0_179 = arith.constant 0 : index
    %c0_180 = arith.constant 0 : index
    %c0_181 = arith.constant 0 : index
    %225 = vector.load %arg17[%c0_179, %c0_180, %c0_181] : memref<2x1x256xf32, #tpu.memory_space<vmem>>, vector<1x1x256xf32>
    %226 = vector.shape_cast %225 : vector<1x1x256xf32> to vector<1x256xf32>
    %227 = arith.truncf %222 : vector<5x64xf32> to vector<5x64xbf16>
    %cst_182 = arith.constant dense<0.000000e+00> : vector<5x256xf32>
    %228 = tpu.matmul %227, %224, %cst_182 {dimension_numbers = #tpu.dot_dimension_numbers<[1], [0], [0], [1], [0, 0, 1, 1], [], []>} : vector<5x64xbf16>, vector<64x256xbf16>, vector<5x256xf32> -> vector<5x256xf32>
    %229 = vector.broadcast %226 : vector<1x256xf32> to vector<5x256xf32>
    %230 = arith.addf %228, %229 : vector<5x256xf32>
    %cst_183 = arith.constant 5.000000e-01 : f32
    %231 = vector.broadcast %cst_183 : f32 to vector<5x256xf32>
    %232 = arith.mulf %231, %230 : vector<5x256xf32>
    %cst_184 = arith.constant 0.707106769 : f32
    %233 = vector.broadcast %cst_184 : f32 to vector<5x256xf32>
    %234 = arith.mulf %230, %233 : vector<5x256xf32>
    %235 = math.erf %234 : vector<5x256xf32>
    %cst_185 = arith.constant 1.000000e+00 : f32
    %236 = vector.broadcast %cst_185 : f32 to vector<5x256xf32>
    %237 = arith.addf %236, %235 : vector<5x256xf32>
    %238 = arith.mulf %232, %237 : vector<5x256xf32>
    %c0_186 = arith.constant 0 : index
    %c0_187 = arith.constant 0 : index
    %c0_188 = arith.constant 0 : index
    %239 = vector.load %arg18[%c0_186, %c0_187, %c0_188] : memref<2x256x64xbf16, #tpu.memory_space<vmem>>, vector<1x256x64xbf16>
    %240 = vector.shape_cast %239 : vector<1x256x64xbf16> to vector<256x64xbf16>
    %c0_189 = arith.constant 0 : index
    %c0_190 = arith.constant 0 : index
    %c0_191 = arith.constant 0 : index
    %241 = vector.load %arg19[%c0_189, %c0_190, %c0_191] : memref<2x1x64xf32, #tpu.memory_space<vmem>>, vector<1x1x64xf32>
    %242 = vector.shape_cast %241 : vector<1x1x64xf32> to vector<1x64xf32>
    %243 = arith.truncf %238 : vector<5x256xf32> to vector<5x256xbf16>
    %cst_192 = arith.constant dense<0.000000e+00> : vector<5x64xf32>
    %244 = tpu.matmul %243, %240, %cst_192 {dimension_numbers = #tpu.dot_dimension_numbers<[1], [0], [0], [1], [0, 0, 1, 1], [], []>} : vector<5x256xbf16>, vector<256x64xbf16>, vector<5x64xf32> -> vector<5x64xf32>
    %245 = vector.broadcast %242 : vector<1x64xf32> to vector<5x64xf32>
    %246 = arith.addf %244, %245 : vector<5x64xf32>
    %247 = arith.addf %196, %246 : vector<5x64xf32>
    %c1_193 = arith.constant 1 : index
    %c0_194 = arith.constant 0 : index
    %c0_195 = arith.constant 0 : index
    %248 = vector.load %arg4[%c1_193, %c0_194, %c0_195] : memref<2x1x64xf32, #tpu.memory_space<vmem>>, vector<1x1x64xf32>
    %249 = vector.shape_cast %248 : vector<1x1x64xf32> to vector<1x64xf32>
    %c1_196 = arith.constant 1 : index
    %c0_197 = arith.constant 0 : index
    %c0_198 = arith.constant 0 : index
    %250 = vector.load %arg5[%c1_196, %c0_197, %c0_198] : memref<2x1x64xf32, #tpu.memory_space<vmem>>, vector<1x1x64xf32>
    %251 = vector.shape_cast %250 : vector<1x1x64xf32> to vector<1x64xf32>
    %cst_199 = arith.constant dense<0.000000e+00> : vector<5xf32>
    %252 = vector.multi_reduction <add>, %247, %cst_199 [1] : vector<5x64xf32> to vector<5xf32>
    %253 = vector.shape_cast %252 : vector<5xf32> to vector<5x1xf32>
    %cst_200 = arith.constant 6.400000e+01 : f32
    %254 = vector.broadcast %cst_200 : f32 to vector<5x1xf32>
    %255 = arith.divf %253, %254 : vector<5x1xf32>
    %256 = vector.broadcast %255 : vector<5x1xf32> to vector<5x64xf32>
    %257 = arith.subf %247, %256 : vector<5x64xf32>
    %258 = arith.mulf %257, %257 : vector<5x64xf32>
    %cst_201 = arith.constant dense<0.000000e+00> : vector<5xf32>
    %259 = vector.multi_reduction <add>, %258, %cst_201 [1] : vector<5x64xf32> to vector<5xf32>
    %260 = vector.shape_cast %259 : vector<5xf32> to vector<5x1xf32>
    %cst_202 = arith.constant 6.400000e+01 : f32
    %261 = vector.broadcast %cst_202 : f32 to vector<5x1xf32>
    %262 = arith.divf %260, %261 : vector<5x1xf32>
    %263 = vector.broadcast %255 : vector<5x1xf32> to vector<5x64xf32>
    %264 = arith.subf %247, %263 : vector<5x64xf32>
    %cst_203 = arith.constant 9.99999997E-7 : f32
    %265 = vector.broadcast %cst_203 : f32 to vector<5x1xf32>
    %266 = arith.addf %262, %265 : vector<5x1xf32>
    %267 = math.rsqrt %266 : vector<5x1xf32>
    %268 = vector.broadcast %267 : vector<5x1xf32> to vector<5x64xf32>
    %269 = arith.mulf %264, %268 : vector<5x64xf32>
    %270 = vector.broadcast %249 : vector<1x64xf32> to vector<5x64xf32>
    %271 = arith.mulf %269, %270 : vector<5x64xf32>
    %272 = vector.broadcast %251 : vector<1x64xf32> to vector<5x64xf32>
    %273 = arith.addf %271, %272 : vector<5x64xf32>
    %274 = arith.truncf %273 : vector<5x64xf32> to vector<5x64xbf16>
    %c1_204 = arith.constant 1 : index
    %c0_205 = arith.constant 0 : index
    %c0_206 = arith.constant 0 : index
    %275 = vector.load %arg13[%c1_204, %c0_205, %c0_206] : memref<2x1x64xf32, #tpu.memory_space<vmem>>, vector<1x1x64xf32>
    %276 = vector.shape_cast %275 : vector<1x1x64xf32> to vector<1x64xf32>
    %c1_207 = arith.constant 1 : index
    %c0_208 = arith.constant 0 : index
    %c0_209 = arith.constant 0 : index
    %c0_210 = arith.constant 0 : index
    %277 = vector.load %arg6[%c1_207, %c0_208, %c0_209, %c0_210] : memref<2x4x64x16xbf16, #tpu.memory_space<vmem>>, vector<1x1x64x16xbf16>
    %278 = vector.shape_cast %277 : vector<1x1x64x16xbf16> to vector<64x16xbf16>
    %cst_211 = arith.constant dense<0.000000e+00> : vector<5x16xf32>
    %279 = tpu.matmul %274, %278, %cst_211 {dimension_numbers = #tpu.dot_dimension_numbers<[1], [0], [0], [1], [0, 0, 1, 1], [], []>} : vector<5x64xbf16>, vector<64x16xbf16>, vector<5x16xf32> -> vector<5x16xf32>
    %c1_212 = arith.constant 1 : index
    %c0_213 = arith.constant 0 : index
    %c0_214 = arith.constant 0 : index
    %c0_215 = arith.constant 0 : index
    %280 = vector.load %arg9[%c1_212, %c0_213, %c0_214, %c0_215] : memref<2x4x1x16xf32, #tpu.memory_space<vmem>>, vector<1x1x1x16xf32>
    %281 = vector.shape_cast %280 : vector<1x1x1x16xf32> to vector<1x16xf32>
    %282 = vector.broadcast %281 : vector<1x16xf32> to vector<5x16xf32>
    %283 = arith.addf %279, %282 : vector<5x16xf32>
    %c1_216 = arith.constant 1 : index
    %c0_217 = arith.constant 0 : index
    %c0_218 = arith.constant 0 : index
    %c0_219 = arith.constant 0 : index
    %284 = vector.load %arg7[%c1_216, %c0_217, %c0_218, %c0_219] : memref<2x4x64x16xbf16, #tpu.memory_space<vmem>>, vector<1x1x64x16xbf16>
    %285 = vector.shape_cast %284 : vector<1x1x64x16xbf16> to vector<64x16xbf16>
    %cst_220 = arith.constant dense<0.000000e+00> : vector<5x16xf32>
    %286 = tpu.matmul %274, %285, %cst_220 {dimension_numbers = #tpu.dot_dimension_numbers<[1], [0], [0], [1], [0, 0, 1, 1], [], []>} : vector<5x64xbf16>, vector<64x16xbf16>, vector<5x16xf32> -> vector<5x16xf32>
    %c1_221 = arith.constant 1 : index
    %c0_222 = arith.constant 0 : index
    %c0_223 = arith.constant 0 : index
    %c0_224 = arith.constant 0 : index
    %287 = vector.load %arg10[%c1_221, %c0_222, %c0_223, %c0_224] : memref<2x4x1x16xf32, #tpu.memory_space<vmem>>, vector<1x1x1x16xf32>
    %288 = vector.shape_cast %287 : vector<1x1x1x16xf32> to vector<1x16xf32>
    %289 = vector.broadcast %288 : vector<1x16xf32> to vector<5x16xf32>
    %290 = arith.addf %286, %289 : vector<5x16xf32>
    %c1_225 = arith.constant 1 : index
    %c0_226 = arith.constant 0 : index
    %c0_227 = arith.constant 0 : index
    %c0_228 = arith.constant 0 : index
    %291 = vector.load %arg8[%c1_225, %c0_226, %c0_227, %c0_228] : memref<2x4x64x16xbf16, #tpu.memory_space<vmem>>, vector<1x1x64x16xbf16>
    %292 = vector.shape_cast %291 : vector<1x1x64x16xbf16> to vector<64x16xbf16>
    %cst_229 = arith.constant dense<0.000000e+00> : vector<5x16xf32>
    %293 = tpu.matmul %274, %292, %cst_229 {dimension_numbers = #tpu.dot_dimension_numbers<[1], [0], [0], [1], [0, 0, 1, 1], [], []>} : vector<5x64xbf16>, vector<64x16xbf16>, vector<5x16xf32> -> vector<5x16xf32>
    %c1_230 = arith.constant 1 : index
    %c0_231 = arith.constant 0 : index
    %c0_232 = arith.constant 0 : index
    %c0_233 = arith.constant 0 : index
    %294 = vector.load %arg11[%c1_230, %c0_231, %c0_232, %c0_233] : memref<2x4x1x16xf32, #tpu.memory_space<vmem>>, vector<1x1x1x16xf32>
    %295 = vector.shape_cast %294 : vector<1x1x1x16xf32> to vector<1x16xf32>
    %296 = vector.broadcast %295 : vector<1x16xf32> to vector<5x16xf32>
    %297 = arith.addf %293, %296 : vector<5x16xf32>
    %cst_234 = arith.constant dense<0.000000e+00> : vector<5x5xf32>
    %298 = tpu.matmul %283, %290, %cst_234 {dimension_numbers = #tpu.dot_dimension_numbers<[1], [1], [0], [0], [0, 0, 1, 0], [], []>} : vector<5x16xf32>, vector<5x16xf32>, vector<5x5xf32> -> vector<5x5xf32>
    %cst_235 = arith.constant 2.500000e-01 : f32
    %299 = vector.broadcast %cst_235 : f32 to vector<5x5xf32>
    %300 = arith.mulf %298, %299 : vector<5x5xf32>
    %cst_236 = arith.constant dense<0xFF800000> : vector<5xf32>
    %301 = vector.multi_reduction <maximumf>, %300, %cst_236 [1] : vector<5x5xf32> to vector<5xf32>
    %302 = vector.shape_cast %301 : vector<5xf32> to vector<5x1xf32>
    %303 = vector.broadcast %302 : vector<5x1xf32> to vector<5x5xf32>
    %304 = arith.subf %300, %303 : vector<5x5xf32>
    %305 = math.exp %304 : vector<5x5xf32>
    %cst_237 = arith.constant dense<0.000000e+00> : vector<5xf32>
    %306 = vector.multi_reduction <add>, %305, %cst_237 [1] : vector<5x5xf32> to vector<5xf32>
    %307 = vector.shape_cast %306 : vector<5xf32> to vector<5x1xf32>
    %308 = tpu.reciprocal %307 {approx = true} : vector<5x1xf32> -> vector<5x1xf32>
    %309 = vector.broadcast %308 : vector<5x1xf32> to vector<5x5xf32>
    %310 = arith.mulf %305, %309 : vector<5x5xf32>
    %cst_238 = arith.constant dense<0.000000e+00> : vector<5x16xf32>
    %311 = tpu.matmul %310, %297, %cst_238 {dimension_numbers = #tpu.dot_dimension_numbers<[1], [0], [0], [1], [0, 0, 1, 1], [], []>} : vector<5x5xf32>, vector<5x16xf32>, vector<5x16xf32> -> vector<5x16xf32>
    %312 = arith.truncf %311 : vector<5x16xf32> to vector<5x16xbf16>
    %c1_239 = arith.constant 1 : index
    %c0_240 = arith.constant 0 : index
    %c0_241 = arith.constant 0 : index
    %c0_242 = arith.constant 0 : index
    %313 = vector.load %arg12[%c1_239, %c0_240, %c0_241, %c0_242] : memref<2x4x16x64xbf16, #tpu.memory_space<vmem>>, vector<1x1x16x64xbf16>
    %314 = vector.shape_cast %313 : vector<1x1x16x64xbf16> to vector<16x64xbf16>
    %cst_243 = arith.constant dense<0.000000e+00> : vector<5x64xf32>
    %315 = tpu.matmul %312, %314, %cst_243 {dimension_numbers = #tpu.dot_dimension_numbers<[1], [0], [0], [1], [0, 0, 1, 1], [], []>} : vector<5x16xbf16>, vector<16x64xbf16>, vector<5x64xf32> -> vector<5x64xf32>
    %316 = vector.broadcast %276 : vector<1x64xf32> to vector<5x64xf32>
    %317 = arith.addf %316, %315 : vector<5x64xf32>
    %c1_244 = arith.constant 1 : index
    %c1_245 = arith.constant 1 : index
    %c0_246 = arith.constant 0 : index
    %c0_247 = arith.constant 0 : index
    %318 = vector.load %arg6[%c1_244, %c1_245, %c0_246, %c0_247] : memref<2x4x64x16xbf16, #tpu.memory_space<vmem>>, vector<1x1x64x16xbf16>
    %319 = vector.shape_cast %318 : vector<1x1x64x16xbf16> to vector<64x16xbf16>
    %cst_248 = arith.constant dense<0.000000e+00> : vector<5x16xf32>
    %320 = tpu.matmul %274, %319, %cst_248 {dimension_numbers = #tpu.dot_dimension_numbers<[1], [0], [0], [1], [0, 0, 1, 1], [], []>} : vector<5x64xbf16>, vector<64x16xbf16>, vector<5x16xf32> -> vector<5x16xf32>
    %c1_249 = arith.constant 1 : index
    %c1_250 = arith.constant 1 : index
    %c0_251 = arith.constant 0 : index
    %c0_252 = arith.constant 0 : index
    %321 = vector.load %arg9[%c1_249, %c1_250, %c0_251, %c0_252] : memref<2x4x1x16xf32, #tpu.memory_space<vmem>>, vector<1x1x1x16xf32>
    %322 = vector.shape_cast %321 : vector<1x1x1x16xf32> to vector<1x16xf32>
    %323 = vector.broadcast %322 : vector<1x16xf32> to vector<5x16xf32>
    %324 = arith.addf %320, %323 : vector<5x16xf32>
    %c1_253 = arith.constant 1 : index
    %c1_254 = arith.constant 1 : index
    %c0_255 = arith.constant 0 : index
    %c0_256 = arith.constant 0 : index
    %325 = vector.load %arg7[%c1_253, %c1_254, %c0_255, %c0_256] : memref<2x4x64x16xbf16, #tpu.memory_space<vmem>>, vector<1x1x64x16xbf16>
    %326 = vector.shape_cast %325 : vector<1x1x64x16xbf16> to vector<64x16xbf16>
    %cst_257 = arith.constant dense<0.000000e+00> : vector<5x16xf32>
    %327 = tpu.matmul %274, %326, %cst_257 {dimension_numbers = #tpu.dot_dimension_numbers<[1], [0], [0], [1], [0, 0, 1, 1], [], []>} : vector<5x64xbf16>, vector<64x16xbf16>, vector<5x16xf32> -> vector<5x16xf32>
    %c1_258 = arith.constant 1 : index
    %c1_259 = arith.constant 1 : index
    %c0_260 = arith.constant 0 : index
    %c0_261 = arith.constant 0 : index
    %328 = vector.load %arg10[%c1_258, %c1_259, %c0_260, %c0_261] : memref<2x4x1x16xf32, #tpu.memory_space<vmem>>, vector<1x1x1x16xf32>
    %329 = vector.shape_cast %328 : vector<1x1x1x16xf32> to vector<1x16xf32>
    %330 = vector.broadcast %329 : vector<1x16xf32> to vector<5x16xf32>
    %331 = arith.addf %327, %330 : vector<5x16xf32>
    %c1_262 = arith.constant 1 : index
    %c1_263 = arith.constant 1 : index
    %c0_264 = arith.constant 0 : index
    %c0_265 = arith.constant 0 : index
    %332 = vector.load %arg8[%c1_262, %c1_263, %c0_264, %c0_265] : memref<2x4x64x16xbf16, #tpu.memory_space<vmem>>, vector<1x1x64x16xbf16>
    %333 = vector.shape_cast %332 : vector<1x1x64x16xbf16> to vector<64x16xbf16>
    %cst_266 = arith.constant dense<0.000000e+00> : vector<5x16xf32>
    %334 = tpu.matmul %274, %333, %cst_266 {dimension_numbers = #tpu.dot_dimension_numbers<[1], [0], [0], [1], [0, 0, 1, 1], [], []>} : vector<5x64xbf16>, vector<64x16xbf16>, vector<5x16xf32> -> vector<5x16xf32>
    %c1_267 = arith.constant 1 : index
    %c1_268 = arith.constant 1 : index
    %c0_269 = arith.constant 0 : index
    %c0_270 = arith.constant 0 : index
    %335 = vector.load %arg11[%c1_267, %c1_268, %c0_269, %c0_270] : memref<2x4x1x16xf32, #tpu.memory_space<vmem>>, vector<1x1x1x16xf32>
    %336 = vector.shape_cast %335 : vector<1x1x1x16xf32> to vector<1x16xf32>
    %337 = vector.broadcast %336 : vector<1x16xf32> to vector<5x16xf32>
    %338 = arith.addf %334, %337 : vector<5x16xf32>
    %cst_271 = arith.constant dense<0.000000e+00> : vector<5x5xf32>
    %339 = tpu.matmul %324, %331, %cst_271 {dimension_numbers = #tpu.dot_dimension_numbers<[1], [1], [0], [0], [0, 0, 1, 0], [], []>} : vector<5x16xf32>, vector<5x16xf32>, vector<5x5xf32> -> vector<5x5xf32>
    %cst_272 = arith.constant 2.500000e-01 : f32
    %340 = vector.broadcast %cst_272 : f32 to vector<5x5xf32>
    %341 = arith.mulf %339, %340 : vector<5x5xf32>
    %cst_273 = arith.constant dense<0xFF800000> : vector<5xf32>
    %342 = vector.multi_reduction <maximumf>, %341, %cst_273 [1] : vector<5x5xf32> to vector<5xf32>
    %343 = vector.shape_cast %342 : vector<5xf32> to vector<5x1xf32>
    %344 = vector.broadcast %343 : vector<5x1xf32> to vector<5x5xf32>
    %345 = arith.subf %341, %344 : vector<5x5xf32>
    %346 = math.exp %345 : vector<5x5xf32>
    %cst_274 = arith.constant dense<0.000000e+00> : vector<5xf32>
    %347 = vector.multi_reduction <add>, %346, %cst_274 [1] : vector<5x5xf32> to vector<5xf32>
    %348 = vector.shape_cast %347 : vector<5xf32> to vector<5x1xf32>
    %349 = tpu.reciprocal %348 {approx = true} : vector<5x1xf32> -> vector<5x1xf32>
    %350 = vector.broadcast %349 : vector<5x1xf32> to vector<5x5xf32>
    %351 = arith.mulf %346, %350 : vector<5x5xf32>
    %cst_275 = arith.constant dense<0.000000e+00> : vector<5x16xf32>
    %352 = tpu.matmul %351, %338, %cst_275 {dimension_numbers = #tpu.dot_dimension_numbers<[1], [0], [0], [1], [0, 0, 1, 1], [], []>} : vector<5x5xf32>, vector<5x16xf32>, vector<5x16xf32> -> vector<5x16xf32>
    %353 = arith.truncf %352 : vector<5x16xf32> to vector<5x16xbf16>
    %c1_276 = arith.constant 1 : index
    %c1_277 = arith.constant 1 : index
    %c0_278 = arith.constant 0 : index
    %c0_279 = arith.constant 0 : index
    %354 = vector.load %arg12[%c1_276, %c1_277, %c0_278, %c0_279] : memref<2x4x16x64xbf16, #tpu.memory_space<vmem>>, vector<1x1x16x64xbf16>
    %355 = vector.shape_cast %354 : vector<1x1x16x64xbf16> to vector<16x64xbf16>
    %cst_280 = arith.constant dense<0.000000e+00> : vector<5x64xf32>
    %356 = tpu.matmul %353, %355, %cst_280 {dimension_numbers = #tpu.dot_dimension_numbers<[1], [0], [0], [1], [0, 0, 1, 1], [], []>} : vector<5x16xbf16>, vector<16x64xbf16>, vector<5x64xf32> -> vector<5x64xf32>
    %357 = arith.addf %317, %356 : vector<5x64xf32>
    %c1_281 = arith.constant 1 : index
    %c2_282 = arith.constant 2 : index
    %c0_283 = arith.constant 0 : index
    %c0_284 = arith.constant 0 : index
    %358 = vector.load %arg6[%c1_281, %c2_282, %c0_283, %c0_284] : memref<2x4x64x16xbf16, #tpu.memory_space<vmem>>, vector<1x1x64x16xbf16>
    %359 = vector.shape_cast %358 : vector<1x1x64x16xbf16> to vector<64x16xbf16>
    %cst_285 = arith.constant dense<0.000000e+00> : vector<5x16xf32>
    %360 = tpu.matmul %274, %359, %cst_285 {dimension_numbers = #tpu.dot_dimension_numbers<[1], [0], [0], [1], [0, 0, 1, 1], [], []>} : vector<5x64xbf16>, vector<64x16xbf16>, vector<5x16xf32> -> vector<5x16xf32>
    %c1_286 = arith.constant 1 : index
    %c2_287 = arith.constant 2 : index
    %c0_288 = arith.constant 0 : index
    %c0_289 = arith.constant 0 : index
    %361 = vector.load %arg9[%c1_286, %c2_287, %c0_288, %c0_289] : memref<2x4x1x16xf32, #tpu.memory_space<vmem>>, vector<1x1x1x16xf32>
    %362 = vector.shape_cast %361 : vector<1x1x1x16xf32> to vector<1x16xf32>
    %363 = vector.broadcast %362 : vector<1x16xf32> to vector<5x16xf32>
    %364 = arith.addf %360, %363 : vector<5x16xf32>
    %c1_290 = arith.constant 1 : index
    %c2_291 = arith.constant 2 : index
    %c0_292 = arith.constant 0 : index
    %c0_293 = arith.constant 0 : index
    %365 = vector.load %arg7[%c1_290, %c2_291, %c0_292, %c0_293] : memref<2x4x64x16xbf16, #tpu.memory_space<vmem>>, vector<1x1x64x16xbf16>
    %366 = vector.shape_cast %365 : vector<1x1x64x16xbf16> to vector<64x16xbf16>
    %cst_294 = arith.constant dense<0.000000e+00> : vector<5x16xf32>
    %367 = tpu.matmul %274, %366, %cst_294 {dimension_numbers = #tpu.dot_dimension_numbers<[1], [0], [0], [1], [0, 0, 1, 1], [], []>} : vector<5x64xbf16>, vector<64x16xbf16>, vector<5x16xf32> -> vector<5x16xf32>
    %c1_295 = arith.constant 1 : index
    %c2_296 = arith.constant 2 : index
    %c0_297 = arith.constant 0 : index
    %c0_298 = arith.constant 0 : index
    %368 = vector.load %arg10[%c1_295, %c2_296, %c0_297, %c0_298] : memref<2x4x1x16xf32, #tpu.memory_space<vmem>>, vector<1x1x1x16xf32>
    %369 = vector.shape_cast %368 : vector<1x1x1x16xf32> to vector<1x16xf32>
    %370 = vector.broadcast %369 : vector<1x16xf32> to vector<5x16xf32>
    %371 = arith.addf %367, %370 : vector<5x16xf32>
    %c1_299 = arith.constant 1 : index
    %c2_300 = arith.constant 2 : index
    %c0_301 = arith.constant 0 : index
    %c0_302 = arith.constant 0 : index
    %372 = vector.load %arg8[%c1_299, %c2_300, %c0_301, %c0_302] : memref<2x4x64x16xbf16, #tpu.memory_space<vmem>>, vector<1x1x64x16xbf16>
    %373 = vector.shape_cast %372 : vector<1x1x64x16xbf16> to vector<64x16xbf16>
    %cst_303 = arith.constant dense<0.000000e+00> : vector<5x16xf32>
    %374 = tpu.matmul %274, %373, %cst_303 {dimension_numbers = #tpu.dot_dimension_numbers<[1], [0], [0], [1], [0, 0, 1, 1], [], []>} : vector<5x64xbf16>, vector<64x16xbf16>, vector<5x16xf32> -> vector<5x16xf32>
    %c1_304 = arith.constant 1 : index
    %c2_305 = arith.constant 2 : index
    %c0_306 = arith.constant 0 : index
    %c0_307 = arith.constant 0 : index
    %375 = vector.load %arg11[%c1_304, %c2_305, %c0_306, %c0_307] : memref<2x4x1x16xf32, #tpu.memory_space<vmem>>, vector<1x1x1x16xf32>
    %376 = vector.shape_cast %375 : vector<1x1x1x16xf32> to vector<1x16xf32>
    %377 = vector.broadcast %376 : vector<1x16xf32> to vector<5x16xf32>
    %378 = arith.addf %374, %377 : vector<5x16xf32>
    %cst_308 = arith.constant dense<0.000000e+00> : vector<5x5xf32>
    %379 = tpu.matmul %364, %371, %cst_308 {dimension_numbers = #tpu.dot_dimension_numbers<[1], [1], [0], [0], [0, 0, 1, 0], [], []>} : vector<5x16xf32>, vector<5x16xf32>, vector<5x5xf32> -> vector<5x5xf32>
    %cst_309 = arith.constant 2.500000e-01 : f32
    %380 = vector.broadcast %cst_309 : f32 to vector<5x5xf32>
    %381 = arith.mulf %379, %380 : vector<5x5xf32>
    %cst_310 = arith.constant dense<0xFF800000> : vector<5xf32>
    %382 = vector.multi_reduction <maximumf>, %381, %cst_310 [1] : vector<5x5xf32> to vector<5xf32>
    %383 = vector.shape_cast %382 : vector<5xf32> to vector<5x1xf32>
    %384 = vector.broadcast %383 : vector<5x1xf32> to vector<5x5xf32>
    %385 = arith.subf %381, %384 : vector<5x5xf32>
    %386 = math.exp %385 : vector<5x5xf32>
    %cst_311 = arith.constant dense<0.000000e+00> : vector<5xf32>
    %387 = vector.multi_reduction <add>, %386, %cst_311 [1] : vector<5x5xf32> to vector<5xf32>
    %388 = vector.shape_cast %387 : vector<5xf32> to vector<5x1xf32>
    %389 = tpu.reciprocal %388 {approx = true} : vector<5x1xf32> -> vector<5x1xf32>
    %390 = vector.broadcast %389 : vector<5x1xf32> to vector<5x5xf32>
    %391 = arith.mulf %386, %390 : vector<5x5xf32>
    %cst_312 = arith.constant dense<0.000000e+00> : vector<5x16xf32>
    %392 = tpu.matmul %391, %378, %cst_312 {dimension_numbers = #tpu.dot_dimension_numbers<[1], [0], [0], [1], [0, 0, 1, 1], [], []>} : vector<5x5xf32>, vector<5x16xf32>, vector<5x16xf32> -> vector<5x16xf32>
    %393 = arith.truncf %392 : vector<5x16xf32> to vector<5x16xbf16>
    %c1_313 = arith.constant 1 : index
    %c2_314 = arith.constant 2 : index
    %c0_315 = arith.constant 0 : index
    %c0_316 = arith.constant 0 : index
    %394 = vector.load %arg12[%c1_313, %c2_314, %c0_315, %c0_316] : memref<2x4x16x64xbf16, #tpu.memory_space<vmem>>, vector<1x1x16x64xbf16>
    %395 = vector.shape_cast %394 : vector<1x1x16x64xbf16> to vector<16x64xbf16>
    %cst_317 = arith.constant dense<0.000000e+00> : vector<5x64xf32>
    %396 = tpu.matmul %393, %395, %cst_317 {dimension_numbers = #tpu.dot_dimension_numbers<[1], [0], [0], [1], [0, 0, 1, 1], [], []>} : vector<5x16xbf16>, vector<16x64xbf16>, vector<5x64xf32> -> vector<5x64xf32>
    %397 = arith.addf %357, %396 : vector<5x64xf32>
    %c1_318 = arith.constant 1 : index
    %c3_319 = arith.constant 3 : index
    %c0_320 = arith.constant 0 : index
    %c0_321 = arith.constant 0 : index
    %398 = vector.load %arg6[%c1_318, %c3_319, %c0_320, %c0_321] : memref<2x4x64x16xbf16, #tpu.memory_space<vmem>>, vector<1x1x64x16xbf16>
    %399 = vector.shape_cast %398 : vector<1x1x64x16xbf16> to vector<64x16xbf16>
    %cst_322 = arith.constant dense<0.000000e+00> : vector<5x16xf32>
    %400 = tpu.matmul %274, %399, %cst_322 {dimension_numbers = #tpu.dot_dimension_numbers<[1], [0], [0], [1], [0, 0, 1, 1], [], []>} : vector<5x64xbf16>, vector<64x16xbf16>, vector<5x16xf32> -> vector<5x16xf32>
    %c1_323 = arith.constant 1 : index
    %c3_324 = arith.constant 3 : index
    %c0_325 = arith.constant 0 : index
    %c0_326 = arith.constant 0 : index
    %401 = vector.load %arg9[%c1_323, %c3_324, %c0_325, %c0_326] : memref<2x4x1x16xf32, #tpu.memory_space<vmem>>, vector<1x1x1x16xf32>
    %402 = vector.shape_cast %401 : vector<1x1x1x16xf32> to vector<1x16xf32>
    %403 = vector.broadcast %402 : vector<1x16xf32> to vector<5x16xf32>
    %404 = arith.addf %400, %403 : vector<5x16xf32>
    %c1_327 = arith.constant 1 : index
    %c3_328 = arith.constant 3 : index
    %c0_329 = arith.constant 0 : index
    %c0_330 = arith.constant 0 : index
    %405 = vector.load %arg7[%c1_327, %c3_328, %c0_329, %c0_330] : memref<2x4x64x16xbf16, #tpu.memory_space<vmem>>, vector<1x1x64x16xbf16>
    %406 = vector.shape_cast %405 : vector<1x1x64x16xbf16> to vector<64x16xbf16>
    %cst_331 = arith.constant dense<0.000000e+00> : vector<5x16xf32>
    %407 = tpu.matmul %274, %406, %cst_331 {dimension_numbers = #tpu.dot_dimension_numbers<[1], [0], [0], [1], [0, 0, 1, 1], [], []>} : vector<5x64xbf16>, vector<64x16xbf16>, vector<5x16xf32> -> vector<5x16xf32>
    %c1_332 = arith.constant 1 : index
    %c3_333 = arith.constant 3 : index
    %c0_334 = arith.constant 0 : index
    %c0_335 = arith.constant 0 : index
    %408 = vector.load %arg10[%c1_332, %c3_333, %c0_334, %c0_335] : memref<2x4x1x16xf32, #tpu.memory_space<vmem>>, vector<1x1x1x16xf32>
    %409 = vector.shape_cast %408 : vector<1x1x1x16xf32> to vector<1x16xf32>
    %410 = vector.broadcast %409 : vector<1x16xf32> to vector<5x16xf32>
    %411 = arith.addf %407, %410 : vector<5x16xf32>
    %c1_336 = arith.constant 1 : index
    %c3_337 = arith.constant 3 : index
    %c0_338 = arith.constant 0 : index
    %c0_339 = arith.constant 0 : index
    %412 = vector.load %arg8[%c1_336, %c3_337, %c0_338, %c0_339] : memref<2x4x64x16xbf16, #tpu.memory_space<vmem>>, vector<1x1x64x16xbf16>
    %413 = vector.shape_cast %412 : vector<1x1x64x16xbf16> to vector<64x16xbf16>
    %cst_340 = arith.constant dense<0.000000e+00> : vector<5x16xf32>
    %414 = tpu.matmul %274, %413, %cst_340 {dimension_numbers = #tpu.dot_dimension_numbers<[1], [0], [0], [1], [0, 0, 1, 1], [], []>} : vector<5x64xbf16>, vector<64x16xbf16>, vector<5x16xf32> -> vector<5x16xf32>
    %c1_341 = arith.constant 1 : index
    %c3_342 = arith.constant 3 : index
    %c0_343 = arith.constant 0 : index
    %c0_344 = arith.constant 0 : index
    %415 = vector.load %arg11[%c1_341, %c3_342, %c0_343, %c0_344] : memref<2x4x1x16xf32, #tpu.memory_space<vmem>>, vector<1x1x1x16xf32>
    %416 = vector.shape_cast %415 : vector<1x1x1x16xf32> to vector<1x16xf32>
    %417 = vector.broadcast %416 : vector<1x16xf32> to vector<5x16xf32>
    %418 = arith.addf %414, %417 : vector<5x16xf32>
    %cst_345 = arith.constant dense<0.000000e+00> : vector<5x5xf32>
    %419 = tpu.matmul %404, %411, %cst_345 {dimension_numbers = #tpu.dot_dimension_numbers<[1], [1], [0], [0], [0, 0, 1, 0], [], []>} : vector<5x16xf32>, vector<5x16xf32>, vector<5x5xf32> -> vector<5x5xf32>
    %cst_346 = arith.constant 2.500000e-01 : f32
    %420 = vector.broadcast %cst_346 : f32 to vector<5x5xf32>
    %421 = arith.mulf %419, %420 : vector<5x5xf32>
    %cst_347 = arith.constant dense<0xFF800000> : vector<5xf32>
    %422 = vector.multi_reduction <maximumf>, %421, %cst_347 [1] : vector<5x5xf32> to vector<5xf32>
    %423 = vector.shape_cast %422 : vector<5xf32> to vector<5x1xf32>
    %424 = vector.broadcast %423 : vector<5x1xf32> to vector<5x5xf32>
    %425 = arith.subf %421, %424 : vector<5x5xf32>
    %426 = math.exp %425 : vector<5x5xf32>
    %cst_348 = arith.constant dense<0.000000e+00> : vector<5xf32>
    %427 = vector.multi_reduction <add>, %426, %cst_348 [1] : vector<5x5xf32> to vector<5xf32>
    %428 = vector.shape_cast %427 : vector<5xf32> to vector<5x1xf32>
    %429 = tpu.reciprocal %428 {approx = true} : vector<5x1xf32> -> vector<5x1xf32>
    %430 = vector.broadcast %429 : vector<5x1xf32> to vector<5x5xf32>
    %431 = arith.mulf %426, %430 : vector<5x5xf32>
    %cst_349 = arith.constant dense<0.000000e+00> : vector<5x16xf32>
    %432 = tpu.matmul %431, %418, %cst_349 {dimension_numbers = #tpu.dot_dimension_numbers<[1], [0], [0], [1], [0, 0, 1, 1], [], []>} : vector<5x5xf32>, vector<5x16xf32>, vector<5x16xf32> -> vector<5x16xf32>
    %433 = arith.truncf %432 : vector<5x16xf32> to vector<5x16xbf16>
    %c1_350 = arith.constant 1 : index
    %c3_351 = arith.constant 3 : index
    %c0_352 = arith.constant 0 : index
    %c0_353 = arith.constant 0 : index
    %434 = vector.load %arg12[%c1_350, %c3_351, %c0_352, %c0_353] : memref<2x4x16x64xbf16, #tpu.memory_space<vmem>>, vector<1x1x16x64xbf16>
    %435 = vector.shape_cast %434 : vector<1x1x16x64xbf16> to vector<16x64xbf16>
    %cst_354 = arith.constant dense<0.000000e+00> : vector<5x64xf32>
    %436 = tpu.matmul %433, %435, %cst_354 {dimension_numbers = #tpu.dot_dimension_numbers<[1], [0], [0], [1], [0, 0, 1, 1], [], []>} : vector<5x16xbf16>, vector<16x64xbf16>, vector<5x64xf32> -> vector<5x64xf32>
    %437 = arith.addf %397, %436 : vector<5x64xf32>
    %438 = arith.addf %247, %437 : vector<5x64xf32>
    %c1_355 = arith.constant 1 : index
    %c0_356 = arith.constant 0 : index
    %c0_357 = arith.constant 0 : index
    %439 = vector.load %arg14[%c1_355, %c0_356, %c0_357] : memref<2x1x64xf32, #tpu.memory_space<vmem>>, vector<1x1x64xf32>
    %440 = vector.shape_cast %439 : vector<1x1x64xf32> to vector<1x64xf32>
    %c1_358 = arith.constant 1 : index
    %c0_359 = arith.constant 0 : index
    %c0_360 = arith.constant 0 : index
    %441 = vector.load %arg15[%c1_358, %c0_359, %c0_360] : memref<2x1x64xf32, #tpu.memory_space<vmem>>, vector<1x1x64xf32>
    %442 = vector.shape_cast %441 : vector<1x1x64xf32> to vector<1x64xf32>
    %cst_361 = arith.constant dense<0.000000e+00> : vector<5xf32>
    %443 = vector.multi_reduction <add>, %438, %cst_361 [1] : vector<5x64xf32> to vector<5xf32>
    %444 = vector.shape_cast %443 : vector<5xf32> to vector<5x1xf32>
    %cst_362 = arith.constant 6.400000e+01 : f32
    %445 = vector.broadcast %cst_362 : f32 to vector<5x1xf32>
    %446 = arith.divf %444, %445 : vector<5x1xf32>
    %447 = vector.broadcast %446 : vector<5x1xf32> to vector<5x64xf32>
    %448 = arith.subf %438, %447 : vector<5x64xf32>
    %449 = arith.mulf %448, %448 : vector<5x64xf32>
    %cst_363 = arith.constant dense<0.000000e+00> : vector<5xf32>
    %450 = vector.multi_reduction <add>, %449, %cst_363 [1] : vector<5x64xf32> to vector<5xf32>
    %451 = vector.shape_cast %450 : vector<5xf32> to vector<5x1xf32>
    %cst_364 = arith.constant 6.400000e+01 : f32
    %452 = vector.broadcast %cst_364 : f32 to vector<5x1xf32>
    %453 = arith.divf %451, %452 : vector<5x1xf32>
    %454 = vector.broadcast %446 : vector<5x1xf32> to vector<5x64xf32>
    %455 = arith.subf %438, %454 : vector<5x64xf32>
    %cst_365 = arith.constant 9.99999997E-7 : f32
    %456 = vector.broadcast %cst_365 : f32 to vector<5x1xf32>
    %457 = arith.addf %453, %456 : vector<5x1xf32>
    %458 = math.rsqrt %457 : vector<5x1xf32>
    %459 = vector.broadcast %458 : vector<5x1xf32> to vector<5x64xf32>
    %460 = arith.mulf %455, %459 : vector<5x64xf32>
    %461 = vector.broadcast %440 : vector<1x64xf32> to vector<5x64xf32>
    %462 = arith.mulf %460, %461 : vector<5x64xf32>
    %463 = vector.broadcast %442 : vector<1x64xf32> to vector<5x64xf32>
    %464 = arith.addf %462, %463 : vector<5x64xf32>
    %c1_366 = arith.constant 1 : index
    %c0_367 = arith.constant 0 : index
    %c0_368 = arith.constant 0 : index
    %465 = vector.load %arg16[%c1_366, %c0_367, %c0_368] : memref<2x64x256xbf16, #tpu.memory_space<vmem>>, vector<1x64x256xbf16>
    %466 = vector.shape_cast %465 : vector<1x64x256xbf16> to vector<64x256xbf16>
    %c1_369 = arith.constant 1 : index
    %c0_370 = arith.constant 0 : index
    %c0_371 = arith.constant 0 : index
    %467 = vector.load %arg17[%c1_369, %c0_370, %c0_371] : memref<2x1x256xf32, #tpu.memory_space<vmem>>, vector<1x1x256xf32>
    %468 = vector.shape_cast %467 : vector<1x1x256xf32> to vector<1x256xf32>
    %469 = arith.truncf %464 : vector<5x64xf32> to vector<5x64xbf16>
    %cst_372 = arith.constant dense<0.000000e+00> : vector<5x256xf32>
    %470 = tpu.matmul %469, %466, %cst_372 {dimension_numbers = #tpu.dot_dimension_numbers<[1], [0], [0], [1], [0, 0, 1, 1], [], []>} : vector<5x64xbf16>, vector<64x256xbf16>, vector<5x256xf32> -> vector<5x256xf32>
    %471 = vector.broadcast %468 : vector<1x256xf32> to vector<5x256xf32>
    %472 = arith.addf %470, %471 : vector<5x256xf32>
    %cst_373 = arith.constant 5.000000e-01 : f32
    %473 = vector.broadcast %cst_373 : f32 to vector<5x256xf32>
    %474 = arith.mulf %473, %472 : vector<5x256xf32>
    %cst_374 = arith.constant 0.707106769 : f32
    %475 = vector.broadcast %cst_374 : f32 to vector<5x256xf32>
    %476 = arith.mulf %472, %475 : vector<5x256xf32>
    %477 = math.erf %476 : vector<5x256xf32>
    %cst_375 = arith.constant 1.000000e+00 : f32
    %478 = vector.broadcast %cst_375 : f32 to vector<5x256xf32>
    %479 = arith.addf %478, %477 : vector<5x256xf32>
    %480 = arith.mulf %474, %479 : vector<5x256xf32>
    %c1_376 = arith.constant 1 : index
    %c0_377 = arith.constant 0 : index
    %c0_378 = arith.constant 0 : index
    %481 = vector.load %arg18[%c1_376, %c0_377, %c0_378] : memref<2x256x64xbf16, #tpu.memory_space<vmem>>, vector<1x256x64xbf16>
    %482 = vector.shape_cast %481 : vector<1x256x64xbf16> to vector<256x64xbf16>
    %c1_379 = arith.constant 1 : index
    %c0_380 = arith.constant 0 : index
    %c0_381 = arith.constant 0 : index
    %483 = vector.load %arg19[%c1_379, %c0_380, %c0_381] : memref<2x1x64xf32, #tpu.memory_space<vmem>>, vector<1x1x64xf32>
    %484 = vector.shape_cast %483 : vector<1x1x64xf32> to vector<1x64xf32>
    %485 = arith.truncf %480 : vector<5x256xf32> to vector<5x256xbf16>
    %cst_382 = arith.constant dense<0.000000e+00> : vector<5x64xf32>
    %486 = tpu.matmul %485, %482, %cst_382 {dimension_numbers = #tpu.dot_dimension_numbers<[1], [0], [0], [1], [0, 0, 1, 1], [], []>} : vector<5x256xbf16>, vector<256x64xbf16>, vector<5x64xf32> -> vector<5x64xf32>
    %487 = vector.broadcast %484 : vector<1x64xf32> to vector<5x64xf32>
    %488 = arith.addf %486, %487 : vector<5x64xf32>
    %489 = arith.addf %438, %488 : vector<5x64xf32>
    %c0_383 = arith.constant 0 : index
    %c0_384 = arith.constant 0 : index
    %490 = vector.load %arg20[%c0_383, %c0_384] : memref<1x64xf32, #tpu.memory_space<vmem>>, vector<1x64xf32>
    %c0_385 = arith.constant 0 : index
    %c0_386 = arith.constant 0 : index
    %491 = vector.load %arg21[%c0_385, %c0_386] : memref<1x64xf32, #tpu.memory_space<vmem>>, vector<1x64xf32>
    %cst_387 = arith.constant dense<0.000000e+00> : vector<5xf32>
    %492 = vector.multi_reduction <add>, %489, %cst_387 [1] : vector<5x64xf32> to vector<5xf32>
    %493 = vector.shape_cast %492 : vector<5xf32> to vector<5x1xf32>
    %cst_388 = arith.constant 6.400000e+01 : f32
    %494 = vector.broadcast %cst_388 : f32 to vector<5x1xf32>
    %495 = arith.divf %493, %494 : vector<5x1xf32>
    %496 = vector.broadcast %495 : vector<5x1xf32> to vector<5x64xf32>
    %497 = arith.subf %489, %496 : vector<5x64xf32>
    %498 = arith.mulf %497, %497 : vector<5x64xf32>
    %cst_389 = arith.constant dense<0.000000e+00> : vector<5xf32>
    %499 = vector.multi_reduction <add>, %498, %cst_389 [1] : vector<5x64xf32> to vector<5xf32>
    %500 = vector.shape_cast %499 : vector<5xf32> to vector<5x1xf32>
    %cst_390 = arith.constant 6.400000e+01 : f32
    %501 = vector.broadcast %cst_390 : f32 to vector<5x1xf32>
    %502 = arith.divf %500, %501 : vector<5x1xf32>
    %503 = vector.broadcast %495 : vector<5x1xf32> to vector<5x64xf32>
    %504 = arith.subf %489, %503 : vector<5x64xf32>
    %cst_391 = arith.constant 9.99999997E-7 : f32
    %505 = vector.broadcast %cst_391 : f32 to vector<5x1xf32>
    %506 = arith.addf %502, %505 : vector<5x1xf32>
    %507 = math.rsqrt %506 : vector<5x1xf32>
    %508 = vector.broadcast %507 : vector<5x1xf32> to vector<5x64xf32>
    %509 = arith.mulf %504, %508 : vector<5x64xf32>
    %510 = vector.broadcast %490 : vector<1x64xf32> to vector<5x64xf32>
    %511 = arith.mulf %509, %510 : vector<5x64xf32>
    %512 = vector.broadcast %491 : vector<1x64xf32> to vector<5x64xf32>
    %513 = arith.addf %511, %512 : vector<5x64xf32>
    %514 = vector.extract_strided_slice %513 {offsets = [0, 0], sizes = [1, 64], strides = [1, 1]} : vector<5x64xf32> to vector<1x64xf32>
    %c0_392 = arith.constant 0 : index
    %c0_393 = arith.constant 0 : index
    %515 = vector.load %arg22[%c0_392, %c0_393] : memref<64x128xbf16, #tpu.memory_space<vmem>>, vector<64x128xbf16>
    %c0_394 = arith.constant 0 : index
    %c0_395 = arith.constant 0 : index
    %516 = vector.load %arg23[%c0_394, %c0_395] : memref<1x128xf32, #tpu.memory_space<vmem>>, vector<1x128xf32>
    %517 = arith.truncf %514 : vector<1x64xf32> to vector<1x64xbf16>
    %cst_396 = arith.constant dense<0.000000e+00> : vector<1x128xf32>
    %518 = tpu.matmul %517, %515, %cst_396 {dimension_numbers = #tpu.dot_dimension_numbers<[1], [0], [0], [1], [0, 0, 1, 1], [], []>} : vector<1x64xbf16>, vector<64x128xbf16>, vector<1x128xf32> -> vector<1x128xf32>
    %519 = arith.addf %518, %516 : vector<1x128xf32>
    %c0_397 = arith.constant 0 : index
    %c0_398 = arith.constant 0 : index
    %c0_399 = arith.constant 0 : index
    %520 = vector.load %arg24[%c0_397, %c0_398, %c0_399] : memref<1x1x128xf32, #tpu.memory_space<vmem>>, vector<1x1x128xf32>
    %521 = vector.shape_cast %520 : vector<1x1x128xf32> to vector<1x128xf32>
    %522 = vector.shape_cast %519 : vector<1x128xf32> to vector<1x1x128xf32>
    tpu.vector_store %arg24[%c0_397, %c0_398, %c0_399], %522 {strides = array<i32>} : memref<1x1x128xf32, #tpu.memory_space<vmem>>, vector<1x1x128xf32>,
    return
  }
  func.func @transform_0(%arg0: i32) -> (i32, i32, i32) {
    %c0_i32 = arith.constant 0 : i32
    %c0_i32_0 = arith.constant 0 : i32
    %c0_i32_1 = arith.constant 0 : i32
    return %arg0, %c0_i32, %c0_i32_0 : i32, i32, i32
  }
  func.func @transform_1(%arg0: i32) -> (i32, i32) {
    %c0_i32 = arith.constant 0 : i32
    %c0_i32_0 = arith.constant 0 : i32
    %c0_i32_1 = arith.constant 0 : i32
    return %c0_i32, %c0_i32_0 : i32, i32
  }
  func.func @transform_2(%arg0: i32) -> (i32, i32) {
    %c0_i32 = arith.constant 0 : i32
    %c0_i32_0 = arith.constant 0 : i32
    %c0_i32_1 = arith.constant 0 : i32
    return %c0_i32, %c0_i32_0 : i32, i32
  }
  func.func @transform_3(%arg0: i32) -> (i32, i32, i32) {
    %c0_i32 = arith.constant 0 : i32
    %c0_i32_0 = arith.constant 0 : i32
    %c0_i32_1 = arith.constant 0 : i32
    %c0_i32_2 = arith.constant 0 : i32
    return %c0_i32, %c0_i32_0, %c0_i32_1 : i32, i32, i32
  }
  func.func @transform_4(%arg0: i32) -> (i32, i32, i32) {
    %c0_i32 = arith.constant 0 : i32
    %c0_i32_0 = arith.constant 0 : i32
    %c0_i32_1 = arith.constant 0 : i32
    %c0_i32_2 = arith.constant 0 : i32
    return %c0_i32, %c0_i32_0, %c0_i32_1 : i32, i32, i32
  }
  func.func @transform_5(%arg0: i32) -> (i32, i32, i32, i32) {
    %c0_i32 = arith.constant 0 : i32
    %c0_i32_0 = arith.constant 0 : i32
    %c0_i32_1 = arith.constant 0 : i32
    %c0_i32_2 = arith.constant 0 : i32
    %c0_i32_3 = arith.constant 0 : i32
    return %c0_i32, %c0_i32_0, %c0_i32_1, %c0_i32_2 : i32, i32, i32, i32
  }
  func.func @transform_6(%arg0: i32) -> (i32, i32, i32, i32) {
    %c0_i32 = arith.constant 0 : i32
    %c0_i32_0 = arith.constant 0 : i32
    %c0_i32_1 = arith.constant 0 : i32
    %c0_i32_2 = arith.constant 0 : i32
    %c0_i32_3 = arith.constant 0 : i32
    return %c0_i32, %c0_i32_0, %c0_i32_1, %c0_i32_2 : i32, i32, i32, i32
  }
  func.func @transform_7(%arg0: i32) -> (i32, i32, i32, i32) {
    %c0_i32 = arith.constant 0 : i32
    %c0_i32_0 = arith.constant 0 : i32
    %c0_i32_1 = arith.constant 0 : i32
    %c0_i32_2 = arith.constant 0 : i32
    %c0_i32_3 = arith.constant 0 : i32
    return %c0_i32, %c0_i32_0, %c0_i32_1, %c0_i32_2 : i32, i32, i32, i32
  }
  func.func @transform_8(%arg0: i32) -> (i32, i32, i32, i32) {
    %c0_i32 = arith.constant 0 : i32
    %c0_i32_0 = arith.constant 0 : i32
    %c0_i32_1 = arith.constant 0 : i32
    %c0_i32_2 = arith.constant 0 : i32
    %c0_i32_3 = arith.constant 0 : i32
    return %c0_i32, %c0_i32_0, %c0_i32_1, %c0_i32_2 : i32, i32, i32, i32
  }
  func.func @transform_9(%arg0: i32) -> (i32, i32, i32, i32) {
    %c0_i32 = arith.constant 0 : i32
    %c0_i32_0 = arith.constant 0 : i32
    %c0_i32_1 = arith.constant 0 : i32
    %c0_i32_2 = arith.constant 0 : i32
    %c0_i32_3 = arith.constant 0 : i32
    return %c0_i32, %c0_i32_0, %c0_i32_1, %c0_i32_2 : i32, i32, i32, i32
  }
  func.func @transform_10(%arg0: i32) -> (i32, i32, i32, i32) {
    %c0_i32 = arith.constant 0 : i32
    %c0_i32_0 = arith.constant 0 : i32
    %c0_i32_1 = arith.constant 0 : i32
    %c0_i32_2 = arith.constant 0 : i32
    %c0_i32_3 = arith.constant 0 : i32
    return %c0_i32, %c0_i32_0, %c0_i32_1, %c0_i32_2 : i32, i32, i32, i32
  }
  func.func @transform_11(%arg0: i32) -> (i32, i32, i32, i32) {
    %c0_i32 = arith.constant 0 : i32
    %c0_i32_0 = arith.constant 0 : i32
    %c0_i32_1 = arith.constant 0 : i32
    %c0_i32_2 = arith.constant 0 : i32
    %c0_i32_3 = arith.constant 0 : i32
    return %c0_i32, %c0_i32_0, %c0_i32_1, %c0_i32_2 : i32, i32, i32, i32
  }
  func.func @transform_12(%arg0: i32) -> (i32, i32, i32) {
    %c0_i32 = arith.constant 0 : i32
    %c0_i32_0 = arith.constant 0 : i32
    %c0_i32_1 = arith.constant 0 : i32
    %c0_i32_2 = arith.constant 0 : i32
    return %c0_i32, %c0_i32_0, %c0_i32_1 : i32, i32, i32
  }
  func.func @transform_13(%arg0: i32) -> (i32, i32, i32) {
    %c0_i32 = arith.constant 0 : i32
    %c0_i32_0 = arith.constant 0 : i32
    %c0_i32_1 = arith.constant 0 : i32
    %c0_i32_2 = arith.constant 0 : i32
    return %c0_i32, %c0_i32_0, %c0_i32_1 : i32, i32, i32
  }
  func.func @transform_14(%arg0: i32) -> (i32, i32, i32) {
    %c0_i32 = arith.constant 0 : i32
    %c0_i32_0 = arith.constant 0 : i32
    %c0_i32_1 = arith.constant 0 : i32
    %c0_i32_2 = arith.constant 0 : i32
    return %c0_i32, %c0_i32_0, %c0_i32_1 : i32, i32, i32
  }
  func.func @transform_15(%arg0: i32) -> (i32, i32, i32) {
    %c0_i32 = arith.constant 0 : i32
    %c0_i32_0 = arith.constant 0 : i32
    %c0_i32_1 = arith.constant 0 : i32
    %c0_i32_2 = arith.constant 0 : i32
    return %c0_i32, %c0_i32_0, %c0_i32_1 : i32, i32, i32
  }
  func.func @transform_16(%arg0: i32) -> (i32, i32, i32) {
    %c0_i32 = arith.constant 0 : i32
    %c0_i32_0 = arith.constant 0 : i32
    %c0_i32_1 = arith.constant 0 : i32
    %c0_i32_2 = arith.constant 0 : i32
    return %c0_i32, %c0_i32_0, %c0_i32_1 : i32, i32, i32
  }
  func.func @transform_17(%arg0: i32) -> (i32, i32, i32) {
    %c0_i32 = arith.constant 0 : i32
    %c0_i32_0 = arith.constant 0 : i32
    %c0_i32_1 = arith.constant 0 : i32
    %c0_i32_2 = arith.constant 0 : i32
    return %c0_i32, %c0_i32_0, %c0_i32_1 : i32, i32, i32
  }
  func.func @transform_18(%arg0: i32) -> (i32, i32, i32) {
    %c0_i32 = arith.constant 0 : i32
    %c0_i32_0 = arith.constant 0 : i32
    %c0_i32_1 = arith.constant 0 : i32
    %c0_i32_2 = arith.constant 0 : i32
    return %c0_i32, %c0_i32_0, %c0_i32_1 : i32, i32, i32
  }
  func.func @transform_19(%arg0: i32) -> (i32, i32) {
    %c0_i32 = arith.constant 0 : i32
    %c0_i32_0 = arith.constant 0 : i32
    %c0_i32_1 = arith.constant 0 : i32
    return %c0_i32, %c0_i32_0 : i32, i32
  }
  func.func @transform_20(%arg0: i32) -> (i32, i32) {
    %c0_i32 = arith.constant 0 : i32
    %c0_i32_0 = arith.constant 0 : i32
    %c0_i32_1 = arith.constant 0 : i32
    return %c0_i32, %c0_i32_0 : i32, i32
  }
  func.func @transform_21(%arg0: i32) -> (i32, i32) {
    %c0_i32 = arith.constant 0 : i32
    %c0_i32_0 = arith.constant 0 : i32
    %c0_i32_1 = arith.constant 0 : i32
    return %c0_i32, %c0_i32_0 : i32, i32
  }
  func.func @transform_22(%arg0: i32) -> (i32, i32) {
    %c0_i32 = arith.constant 0 : i32
    %c0_i32_0 = arith.constant 0 : i32
    %c0_i32_1 = arith.constant 0 : i32
    return %c0_i32, %c0_i32_0 : i32, i32
  }
  func.func @transform_23(%arg0: i32) -> (i32, i32, i32) {
    %c0_i32 = arith.constant 0 : i32
    %c0_i32_0 = arith.constant 0 : i32
    %c0_i32_1 = arith.constant 0 : i32
    return %arg0, %c0_i32, %c0_i32_0 : i32, i32, i32
  }
}

</mosaic_0001>

<bundles_post_ra>
// kernel: _lambda_.1
= control target key start
LH: loop header
LB: loop body
LE: loop exit
PB: predicated region body
PF: predicated region fallthrough
CT: control target
= control target key end

     0   :  { %s8870_s0 = inlined_call_operand.vmem [shape: bf16[2,5,768], index: 0, kind: input, shape index: {}]   ;;  %s8871_s1 = inlined_call_operand.vmem [shape: f32[5,64], index: 1, kind: input, shape index: {}]   ;;  %s8872_s2 = inlined_call_operand.vmem [shape: bf16[768,64], index: 2, kind: input, shape index: {}]   ;;  %s8873_s3 = inlined_call_operand.vmem [shape: f32[2,1,64], index: 3, kind: input, shape index: {}, may-alias: {3,13}]   ;;  %s8874_s4 = inlined_call_operand.vmem [shape: f32[2,1,64], index: 4, kind: input, shape index: {}, may-alias: {4,12,14,18}]   ;;  %s8875_s5 = inlined_call_operand.vmem [shape: bf16[2,4,64,16], index: 5, kind: input, shape index: {}]   ;;  %s8876_s6 = inlined_call_operand.vmem [shape: bf16[2,4,64,16], index: 6, kind: input, shape index: {}]   ;;  %s8877_s7 = inlined_call_operand.vmem [shape: bf16[2,4,64,16], index: 7, kind: input, shape index: {}]   ;;  %s8878_s8 = inlined_call_operand.vmem [shape: f32[2,4,1,16], index: 8, kind: input, shape index: {}, may-alias: {8,9,10}]   ;;  %s8879_s9 = inlined_call_operand.vmem [shape: f32[2,4,1,16], index: 9, kind: input, shape index: {}, may-alias: {8,9,10}]   ;;  %s8880_s10 = inlined_call_operand.vmem [shape: f32[2,4,1,16], index: 10, kind: input, shape index: {}, may-alias: {8,9,10}]   ;;  %s8881_s11 = inlined_call_operand.vmem [shape: bf16[2,4,16,64], index: 11, kind: input, shape index: {}]   ;;  %s8882_s12 = inlined_call_operand.vmem [shape: f32[2,1,64], index: 12, kind: input, shape index: {}, may-alias: {4,12,14,18}]   ;;  %s8883_s13 = inlined_call_operand.vmem [shape: f32[2,1,64], index: 13, kind: input, shape index: {}, may-alias: {3,13}]   ;;  %s8884_s14 = inlined_call_operand.vmem [shape: f32[2,1,64], index: 14, kind: input, shape index: {}, may-alias: {4,12,14,18}]   ;;  %s8885_s15 = inlined_call_operand.hbm [shape: bf16[2,64,256], index: 15, kind: input, shape index: {}]   ;;  %s8886_s16 = inlined_call_operand.vmem [shape: f32[2,1,256], index: 16, kind: input, shape index: {}]   ;;  %s8887_s17 = inlined_call_operand.hbm [shape: bf16[2,256,64], index: 17, kind: input, shape index: {}]   ;;  %s8888_s18 = inlined_call_operand.vmem [shape: f32[2,1,64], index: 18, kind: input, shape index: {}, may-alias: {4,12,14,18}]   ;;  %s8889_s19 = inlined_call_operand.vmem [shape: f32[1,64], index: 19, kind: input, shape index: {}]   ;;  %s8890_s20 = inlined_call_operand.vmem [shape: f32[1,64], index: 20, kind: input, shape index: {}]   ;;  %s8891_s21 = inlined_call_operand.vmem [shape: bf16[64,128], index: 21, kind: input, shape index: {}]   ;;  %s8892_s22 = inlined_call_operand.vmem [shape: f32[1,128], index: 22, kind: input, shape index: {}]   ;;  %s8893_s23 = inlined_call_operand.hbm [shape: f32[2,1,128], index: 23, kind: output, shape index: {}]  }
   0x1   :  { %8910 = sst [smem:[#allocation17_spill]] %s8870_s0 }
   0x2   :  { %8911 = sst [smem:[#allocation18_spill]] %s8871_s1 }
   0x3   :  { %8912 = sst [smem:[#allocation19_spill]] %s8872_s2 }
   0x4   :  { %8913 = sst [smem:[#allocation20_spill]] %s8873_s3 }
   0x5   :  { %8914 = sst [smem:[#allocation21_spill]] %s8874_s4 }
   0x6   :  { %8915 = sst [smem:[#allocation22_spill]] %s8875_s5 }
   0x7   :  { %8916 = sst [smem:[#allocation23_spill]] %s8876_s6 }
   0x8   :  { %8917 = sst [smem:[#allocation24_spill]] %s8877_s7 }
   0x9   :  { %8918 = sst [smem:[#allocation25_spill]] %s8878_s8 }
   0xa   :  { %8919 = sst [smem:[#allocation26_spill]] %s8885_s15 }
   0xb   :  { %8920 = sst [smem:[#allocation27_spill]] %s8887_s17 }
   0xc   :  { %8921 = sst [smem:[#allocation28_spill]] %s8893_s23 }
   0xd   :  { %28 = vsyncpa [#allocation3], 0 }
   0xe   :  { %29 = vsyncpa [#allocation6], 0 }
   0xf   :  { %30 = vsyncpa [#allocation4], 0 }
  0x10   :  { %32 = vsyncpa [#allocation4 + $0x1], 0  ;;  %s7724_s4 = smov 0   ;;  %s7726_s30 = smov 0  }
  0x11   :  { %s7728_s24 = smov 0   ;;  %s7730_s25 = smov 0  }
  0x12 LB: > { %8922 = sst [smem:[#allocation11_spill]] %s7580_s4  ;;  %s7745_s5 = sadd.s32 4294967295, %s7592_s25   ;;  %s7592_s25 = sphi %s7730_s25, %s8954_s25   ;;  %s7588_s24 = sphi %s7728_s24, %s8956_s24   ;;  %s7584_s30 = sphi %s7726_s30, %s8958_s30   ;;  %s7580_s4 = sphi %s7724_s4, %s8957_s4  }
  0x13   : > { %8923 = sst [smem:[#allocation12_spill]] %s7588_s24  ;;  %s5888_s1 = sadd.s32 4294967294, %s7592_s25  }
  0x14   : > { %8924 = sst [smem:[#allocation13_spill]] %s7592_s25  ;;  %s7749_s26 = sadd.s32 1, %s7592_s25  }
  0x15   : > { %8925 = sst [smem:[#allocation14_spill]] %s7749_s26  ;;  %s533_s2 = sadd.s32 1, %s7588_s24 }
  0x16   : > { %s530_s6 = ssub.s32 %s7592_s25, %s7749_s26  ;;  %p543_p0 = scmp.ne.s32.totalorder %s7588_s24, %s7584_s30 }
  0x17   : > { %p531_p1 = scmp.eq.s32.totalorder %s530_s6, 0  ;;  %p544_p2 = scmp.eq.s32.totalorder %s7745_s5, 1 }
  0x18   : > { %p549_p3 = scmp.ne.s32.totalorder %s7584_s30, %s7580_s4  ;;  %p550_p4 = scmp.eq.s32.totalorder %s5888_s1, 1 }
  0x19   : > { %s7760_s27 = scalar_select %p531_p1, %s7588_s24, %s533_s2  }
  0x1a   : > { %p7762_p5 = por %p544_p2, %p543_p0  ;;  %p7766_p6 = por %p550_p4, %p549_p3 }
  0x1b   : > { %8926 = sst [smem:[#allocation15_spill]] %s7760_s27  ;;  %p5889_p7 = scmp.ge.s32.totalorder %s7592_s25, 1 }
  0x1c   : > { %s8928_s28 = scalar_select %p7766_p6, 1, 0 }
  0x1d   : > { %p557_p8 = scmp.lt.s32.totalorder %s7592_s25, 3  ;;  %p8904_p9 = scmp.eq.s32.totalorder %s7745_s5, 0 }
  0x1e   : > { %8929 = sst [smem:[#allocation16_spill]] %s8928_s28  ;;  %s7594_s3 = smov [#allocation2]  }
  0x1f   : > { %p7773_p10 = pnand %p5889_p7, %p557_p8  ;;  %s611_s0 = sshll.u32 %s7594_s3, 4  ;;  %s612_s0 = int_to_ptr.vmem [resolvable:$true] %s611_s0 }
  0x20   : > { %s7595_s2 = smov [#allocation5]   ;;  %s7483_s27 = scalar_lea.vmem %s612_s0, 2048 }
  0x21   : > { %p7147_p11 = pneg %p7773_p10  ;;  %s627_s6 = sshll.u32 %s7595_s2, 4  ;;  %s628_s6 = int_to_ptr.vmem [resolvable:$true] %s627_s6 }
  0x22   : > { %p7484_p0 = scmp.ne.s32.totalorder %s612_s0, %s7483_s27  ;;  %p7491_p3 = scmp.lt.s32.totalorder %s612_s0, %s612_s0 }
  0x23   : > { %p7781_p12 = pnand %p8904_p9, %p7147_p11  ;;  %p7492_p4 = scmp.lt.s32.totalorder %s7483_s27, %s7483_s27 }
  0x25   : > { %p7474_p13 = pneg %p7781_p12  ;;  %p7493_p7 = por %p7492_p4, %p7491_p3 }
  0x27   : > { %p7486_p1 = pnand %p7484_p0, %p7474_p13 }
  0x29   : > { %p7487_p2 = pneg %p7486_p1 }
  0x2b   : > { %p7494_p8 = pnand %p7493_p7, %p7487_p2 }
  0x2d   : > { %7497 = shalt.err (!%p7494_p8)
}
  0x2e   : > { %s7596_s3 = smov 128   ;;  %s7597_s24 = smov 8  }
  0x2f   : > { %s8932_s15 = sld [smem:[#allocation26_spill]]  ;;  %s7509_s28 = scalar_lea.vmem %s628_s6, 4096 }
  0x30   : > { %p7510_p11 = scmp.ne.s32.totalorder %s628_s6, %s7509_s28  ;;  %p7517_p9 = scmp.lt.s32.totalorder %s628_s6, %s628_s6 }
  0x31   : > { %p7518_p6 = scmp.lt.s32.totalorder %s7509_s28, %s7509_s28 }
  0x32   : > { %p7512_p0 = pnand %p7510_p11, %p7474_p13 }
  0x33   : > { %p7519_p3 = por %p7518_p6, %p7517_p9 }
  0x34   : > { %p7513_p1 = pneg %p7512_p0 }
  0x35   : > { %7150 = dma.hbm_to_vmem [thread:$0]  (!%p7781_p12), %s8932_s15, 2048, %s612_s0, [#allocation3], %s7596_s3, %s7596_s3, %s7597_s24  }
  0x36   : > { %p7520_p2 = pnand %p7519_p3, %p7513_p1 }
  0x38   : > { %7523 = shalt.err (!%p7520_p2)
}
  0x39   : > { %s7598_s27 = smov 64   ;;  %s7599_s4 = smov 4  }
  0x3a   : > { %s8933_s17 = sld [smem:[#allocation27_spill]]  ;;  %p8934_p4 = scmp.eq.s32.totalorder (!%p7773_p10), %s7745_s5, 0 }
  0x3c   : > { %666 = sbr.rel (%p7773_p10) target bundleno = 10662 (0x29a6), region = 112 }
  0x40   : > { %7153 = dma.hbm_to_vmem [thread:$0]  (!%p7781_p12), %s8933_s17, 4096, %s628_s6, [#allocation6], %s7598_s27, %s7598_s27, %s7599_s4  }
  0x41   : > { %7567 = dma.done.wait (%p8934_p4), [#allocation3], 2048   ;;  %p8935_p13 = pmov %p8934_p4 }
  0x42   : > { %p8936_p6 = pmov %p8934_p4 }
  0x43   : > { %7569 = vsyncadd (%p8935_p13), [#allocation3], 4294965248 }
  0x44   : > { %7571 = dma.done.wait (%p8936_p6), [#allocation6], 4096   ;;  %p8937_p9 = pmov %p8934_p4 }
  0x45   : > { %s8938_s28 = sld [smem:[#allocation19_spill]]  ;;  %p733_p10 = scmp.lt.s32.totalorder %s7745_s5, 1  ;;  %vm1270_vm0 = vcmask 520192   ;;  %vm7601_vm1 = vmmov 0   ;;  %vm1340_vm2 = vcmask 523264   ;;  %vm1542_vm3 = vcmask 130048  }
  0x46   : > { %7573 = vsyncadd (%p8937_p9), [#allocation6], 4294963200  ;;  %s8939_s23 = sld [smem:[#allocation17_spill]]  ;;  %vm1636_vm4 = vcmask 1044480   ;;  %vm1620_vm5 = vcmask 36864   ;;  %vm1632_vm6 = vcmask 39936  }
  0x47   : > { %s734_s0 = scalar_select %p733_p10, %s7745_s5, 1 }
  0x48   : > { %s8940_s27 = sld [smem:[#allocation18_spill]] }
  0x49   : > { %s7136_s4 = smul.u32 24, %s734_s0  ;;  %s8941_s26 = sld [smem:[#allocation22_spill]] }
  0x4a   : > { %s8942_s1 = sld [smem:[#allocation24_spill]] }
  0x4b   : > { %v7204_v0 = vld [vmem:[%s8938_s28 + $0x78] sm:$0xff]   ;;  %v7208_v4 = vld [vmem:[%s8938_s28 + $0x70] sm:$0xff]   ;;  %v7212_v8 = vld [vmem:[%s8938_s28 + $0x68] sm:$0xff]   ;;  %s8948_s8 = sld [smem:[#allocation25_spill]] }
  0x4c   : > { %v7205_v1 = vld [vmem:[%s8938_s28 + $0x38] sm:$0xff]   ;;  %6425 = vmatprep.subr.bf16.mxu0 %v7204_v0  ;;  %v7209_v5 = vld [vmem:[%s8938_s28 + $0x30] sm:$0xff]   ;;  %v7213_v9 = vld [vmem:[%s8938_s28 + $0x28] sm:$0xff]   ;;  %s7905_s25 = scalar_lea.vmem %s8939_s23, %s7136_s4  ;;  %s8943_s4 = sld [smem:[#allocation20_spill]] }
  0x4d   : > { %v7206_v2 = vld [vmem:[%s8938_s28 + $0xf8] sm:$0xff]   ;;  %6426 = vmatpush3.bf16.msra.mxu0 %v7205_v1  ;;  %v7210_v6 = vld [vmem:[%s8938_s28 + $0xf0] sm:$0xff]   ;;  %v7214_v10 = vld [vmem:[%s8938_s28 + $0xe8] sm:$0xff]   ;;  %s8945_s23 = sld [smem:[#allocation21_spill]] }
  0x4e   : > { %v7207_v3 = vld [vmem:[%s8938_s28 + $0xb8] sm:$0xff]   ;;  %6447 = vmatprep.subr.bf16.mxu1 %v7206_v2  ;;  %6427 = vmatprep.subr.bf16.mxu0 %v7208_v4  ;;  %v7211_v7 = vld [vmem:[%s8938_s28 + $0xb0] sm:$0xff]   ;;  %v7215_v11 = vld [vmem:[%s8938_s28 + $0xa8] sm:$0xff]   ;;  %s8949_s3 = sld [smem:[#allocation28_spill]] }
  0x4f   : > { %6448 = vmatpush3.bf16.msra.mxu1 %v7207_v3  ;;  %v7216_v12 = vld [vmem:[%s8938_s28 + $0x60] sm:$0xff]   ;;  %v7220_v16 = vld [vmem:[%s8938_s28 + $0x58] sm:$0xff]   ;;  %v7224_v20 = vld [vmem:[%s8938_s28 + $0x50] sm:$0xff]  }
  0x50   : > { %6449 = vmatprep.subr.bf16.mxu1 %v7210_v6  ;;  %v7217_v13 = vld [vmem:[%s8938_s28 + $0x20] sm:$0xff]   ;;  %v7221_v17 = vld [vmem:[%s8938_s28 + $0x18] sm:$0xff]   ;;  %v7225_v21 = vld [vmem:[%s8938_s28 + $0x10] sm:$0xff]  }
  0x51   : > { %6428 = vmatpush3.bf16.msra.mxu0 %v7209_v5  ;;  %v7218_v14 = vld [vmem:[%s8938_s28 + $0xe0] sm:$0xff]   ;;  %v7222_v18 = vld [vmem:[%s8938_s28 + $0xd8] sm:$0xff]   ;;  %v7226_v22 = vld [vmem:[%s8938_s28 + $0xd0] sm:$0xff]  }
  0x52   : > { %6429 = vmatprep.subr.bf16.mxu0 %v7212_v8  ;;  %v7219_v15 = vld [vmem:[%s8938_s28 + $0xa0] sm:$0xff]   ;;  %v7223_v19 = vld [vmem:[%s8938_s28 + $0x98] sm:$0xff]   ;;  %v7227_v23 = vld [vmem:[%s8938_s28 + $0x90] sm:$0xff]  }
  0x53   : > { %6450 = vmatpush3.bf16.msra.mxu1 %v7211_v7  ;;  %v7228_v24 = vld [vmem:[%s8938_s28 + $0x48] sm:$0xff]   ;;  %v7232_v28 = vld [vmem:[%s8938_s28 + $0x40] sm:$0xff]   ;;  %v7238_v35 = vld [vmem:[%s8938_s28 + $0x178] sm:$0xff]  }
  0x54   : > { %6451 = vmatprep.subr.bf16.mxu1 %v7214_v10  ;;  %v7229_v25 = vld [vmem:[%s8938_s28 + $0x8] sm:$0xff]   ;;  %v7233_v29 = vld [vmem:[%s8938_s28] sm:$0xff]   ;;  %v7241_v39 = vld [vmem:[%s8938_s28 + $0x138] sm:$0xff]  }
  0x55   : > { %6430 = vmatpush3.bf16.msra.mxu0 %v7213_v9  ;;  %v7230_v26 = vld [vmem:[%s8938_s28 + $0xc8] sm:$0xff]   ;;  %v7234_v30 = vld [vmem:[%s8938_s28 + $0xc0] sm:$0xff]   ;;  %v7242_v40 = vld [vmem:[%s8938_s28 + $0x170] sm:$0xff]  }
  0x56   : > { %6431 = vmatprep.subr.bf16.mxu0 %v7216_v12  ;;  %v7231_v27 = vld [vmem:[%s8938_s28 + $0x88] sm:$0xff]   ;;  %v739_v31 = vld [vmem:[%s7905_s25] sm:$0x77]  ;;  %v7243_v41 = vld [vmem:[%s8938_s28 + $0x130] sm:$0xff]  }
  0x57   : > { %6452 = vmatpush3.bf16.msra.mxu1 %v7215_v11  ;;  %v5897_v32 = vcombine.low %v739_v31, %v739_v31  ;;  %v5898_v33 = vcombine.high %v739_v31, %v739_v31  ;;  %v7237_v34 = vld [vmem:[%s8938_s28 + $0x80] sm:$0xff]   ;;  %v740_v36 = vld [vmem:[%s7905_s25 + $0x8] sm:$0x77]  ;;  %v7248_v46 = vld [vmem:[%s8938_s28 + $0x158] sm:$0xff]  }
  0x58   : > { %6453 = vmatprep.subr.bf16.mxu1 %v7218_v14  ;;  %v5899_v37 = vcombine.low %v740_v36, %v740_v36  ;;  %v5900_v38 = vcombine.high %v740_v36, %v740_v36  ;;  %v7244_v42 = vld [vmem:[%s8938_s28 + $0x168] sm:$0xff]   ;;  %v7246_v44 = vld [vmem:[%s8938_s28 + $0x160] sm:$0xff]   ;;  %v7249_v47 = vld [vmem:[%s8938_s28 + $0x118] sm:$0xff]  }
  0x59   : > { %6432 = vmatpush3.bf16.msra.mxu0 %v7217_v13  ;;  %1180 = vmatprep.mubr.bf16.mxu0 %v5898_v33  ;;  %v7245_v43 = vld [vmem:[%s8938_s28 + $0x128] sm:$0xff]   ;;  %v7247_v45 = vld [vmem:[%s8938_s28 + $0x120] sm:$0xff]   ;;  %v7250_v48 = vld [vmem:[%s8938_s28 + $0x150] sm:$0xff]  }
  0x5a   : > { %6433 = vmatprep.subr.bf16.mxu0 %v7220_v16  ;;  %1220 = vmatprep.mubr.bf16.mxu1 %v5900_v38  ;;  %v741_v49 = vld [vmem:[%s7905_s25 + $0x10] sm:$0x77]  ;;  %v7252_v52 = vld [vmem:[%s8938_s28 + $0x148] sm:$0xff]   ;;  %v7254_v54 = vld [vmem:[%s8938_s28 + $0x140] sm:$0xff]   ;;  %s8946_s25 = sld [smem:[#allocation23_spill]] }
  0x5b   : > { %6454 = vmatpush3.bf16.msra.mxu1 %v7219_v15  ;;  %v5902_v50 = vcombine.high %v741_v49, %v741_v49  ;;  %v7251_v51 = vld [vmem:[%s8938_s28 + $0x110] sm:$0xff]   ;;  %v7253_v53 = vld [vmem:[%s8938_s28 + $0x108] sm:$0xff]   ;;  %v7255_v55 = vld [vmem:[%s8938_s28 + $0x100] sm:$0xff]   ;;  %v5901_v56 = vcombine.low %v741_v49, %v741_v49  ;;  %s6422_s28 = sshll.u32 %s7745_s5, 4  ;;  %s7603_s5 = smov [#allocation7]  }
  0x5c   : > { %6455 = vmatprep.subr.bf16.mxu1 %v7222_v18  ;;  %v838_v2 = vld [vmem:[%s8940_s27] sm:$0x1f]  ;;  %v7258_v18 = vld [vmem:[%s8941_s26 + $0x18] sm:$0xff]   ;;  %s8944_s27 = smov %s8943_s4  ;;  %s8829_s2 = scalar_lea.hbm %s8949_s3, %s6422_s28 }
  0x5d   : > { %6434 = vmatpush3.bf16.msra.mxu0 %v7221_v17  ;;  %v5951_v31 = vld [vmem:[%s8943_s4] ss:$0 sm:$0xff]  ;;  %v7278_v49 = vld [vmem:[%s8941_s26 + $0x58] sm:$0xff]   ;;  %s731_s4 = sand.u32 1, %s7584_s30  }
  0x5e   : > { %6435 = vmatprep.subr.bf16.mxu0 %v7224_v20  ;;  %v7600_v20 = vmov 0.0   ;;  %v5952_v33 = vld [vmem:[%s8945_s23] ss:$0 sm:$0xff]  ;;  %s732_s0 = scalar_lea.vmem [#allocation7], %s731_s4  ;;  %s5799_s24 = scalar_lea.sflag [#allocation4], %s731_s4 }
  0x5f   : > { %6456 = vmatpush3.bf16.msra.mxu1 %v7223_v19  ;;  %v7259_v19 = vld [vmem:[%s8942_s1 + $0x18] sm:$0xff]   ;;  %s5811_s29 = sshll.u32 %s732_s0, 4  ;;  %s8831_s29 = int_to_ptr.vmem [resolvable:$true] %s5811_s29 }
  0x60   : > { %6457 = vmatprep.subr.bf16.mxu1 %v7226_v22  ;;  %v7261_v22 = vld [vmem:[%s8942_s1 + $0x10] sm:$0xff]   ;;  %s8947_s15 = smov %s8946_s25  ;;  %v7266_v36 = vld [vmem:[%s8946_s25 + $0x18] sm:$0xff]   ;;  %s7524_s17 = scalar_lea.vmem %s8831_s29, 16 }
  0x61   : > { %6436 = vmatpush3.bf16.msra.mxu0 %v7225_v21  ;;  %v7260_v21 = vld [vmem:[%s8941_s26 + $0x10] sm:$0xff]   ;;  %p7525_p12 = scmp.ne.s32.totalorder %s8831_s29, %s7524_s17 }
  0x62   : > { %6437 = vmatprep.subr.bf16.mxu0 %v7228_v24  ;;  %v7263_v24 = vld [vmem:[%s8942_s1 + $0x8] sm:$0xff]  }
  0x63   : > { %6458 = vmatpush3.bf16.msra.mxu1 %v7227_v23  ;;  %v7262_v23 = vld [vmem:[%s8941_s26 + $0x8] sm:$0xff]   ;;  %p7526_p7 = pnand %p7525_p12, %p7762_p5 }
  0x64   : > { %6459 = vmatprep.subr.bf16.mxu1 %v7230_v26  ;;  %v7265_v26 = vld [vmem:[%s8942_s1] sm:$0xff]  }
  0x65   : > { %6438 = vmatpush3.bf16.msra.mxu0 %v7229_v25  ;;  %v7264_v25 = vld [vmem:[%s8941_s26] sm:$0xff]   ;;  %p7527_p8 = pneg %p7526_p7 }
  0x66   : > { %6439 = vmatprep.subr.bf16.mxu0 %v7232_v28 }
  0x67   : > { %6460 = vmatpush3.bf16.msra.mxu1 %v7231_v27 }
  0x68   : > { %6461 = vmatprep.subr.bf16.mxu1 %v7234_v30 }
  0x69   : > { %6440 = vmatpush3.bf16.msra.mxu0 %v7233_v29 }
  0x6a   : > { %6469 = vmatprep.subr.bf16.mxu0 %v7238_v35 }
  0x6b   : > { %6462 = vmatpush3.bf16.msra.mxu1 %v7237_v34 }
  0x6c   : > { %1181 = vmatmul.mubr.bf16.vlgmr.msra.gmra.mxu0 %v5897_v32  ;;  %6708 = vmatprep.subr.bf16.mxu1 %v7600_v20 }
  0x6d   : > { %6470 = vmatpush3.bf16.msra.mxu0 %v7241_v39  ;;  %1260 = vmatprep.mubr.bf16.mxu0 %v5902_v50  ;;  %v7268_v39 = vld [vmem:[%s8947_s15 + $0x10] sm:$0xff]  }
  0x6e   : > { %1221 = vmatmul.mubr.bf16.vlgmr.msra.gmra.mxu1 %v5899_v37  ;;  %6471 = vmatprep.subr.bf16.mxu0 %v7242_v40  ;;  %v7267_v37 = vld [vmem:[%s8941_s26 + $0x38] sm:$0xff]   ;;  %v7269_v40 = vld [vmem:[%s8941_s26 + $0x30] sm:$0xff]  }
  0x6f   : > { %6709 = vmatpush3.bf16.msra.mxu1 %v7258_v18  ;;  %6716 = vmatprep.mubr.msk.bf16.mxu1 %vm7601_vm1, %v7600_v20  ;;  %v7279_v50 = vld [vmem:[%s8941_s26 + $0x50] sm:$0xff]  }
  0x70   : > { %6710 = vmatprep.subr.bf16.mxu1 %v7600_v20 }
  0x71   : > { %6472 = vmatpush3.bf16.msra.mxu0 %v7243_v41  ;;  %v7270_v41 = vld [vmem:[%s8947_s15 + $0x8] sm:$0xff]  }
  0x72   : > { %6473 = vmatprep.subr.bf16.mxu0 %v7244_v42  ;;  %v7271_v42 = vld [vmem:[%s8941_s26 + $0x28] sm:$0xff]  }
  0x73   : > { %6711 = vmatpush3.bf16.msra.mxu1 %v7260_v21 }
  0x74   : > { %6712 = vmatprep.subr.bf16.mxu1 %v7600_v20 }
  0x75   : > { %6474 = vmatpush3.bf16.msra.mxu0 %v7245_v43  ;;  %v7272_v43 = vld [vmem:[%s8947_s15] sm:$0xff]  }
  0x76   : > { %6475 = vmatprep.subr.bf16.mxu0 %v7246_v44  ;;  %v7273_v44 = vld [vmem:[%s8941_s26 + $0x20] sm:$0xff]  }
  0x77   : > { %6713 = vmatpush3.bf16.msra.mxu1 %v7262_v23 }
  0x78   : > { %6714 = vmatprep.subr.bf16.mxu1 %v7600_v20 }
  0x79   : > { %6476 = vmatpush3.bf16.msra.mxu0 %v7247_v45  ;;  %v7274_v45 = vld [vmem:[%s8942_s1 + $0x38] sm:$0xff]  }
  0x7a   : > { %6477 = vmatprep.subr.bf16.mxu0 %v7248_v46  ;;  %v7275_v46 = vld [vmem:[%s8942_s1 + $0x30] sm:$0xff]  }
  0x7b   : > { %6715 = vmatpush3.bf16.msra.mxu1 %v7264_v25 }
  0x7c   : > { %6720 = vmatprep.subr.bf16.mxu1 %v7600_v20 }
  0x7d   : > { %6478 = vmatpush3.bf16.msra.mxu0 %v7249_v47  ;;  %v7276_v47 = vld [vmem:[%s8942_s1 + $0x28] sm:$0xff]  }
  0x7e   : > { %6479 = vmatprep.subr.bf16.mxu0 %v7250_v48  ;;  %v7277_v48 = vld [vmem:[%s8942_s1 + $0x20] sm:$0xff]  }
  0x81   : > { %6480 = vmatpush3.bf16.msra.mxu0 %v7251_v51  ;;  %v7280_v51 = vld [vmem:[%s8941_s26 + $0x48] sm:$0xff]  }
  0x82   : > { %6481 = vmatprep.subr.bf16.mxu0 %v7252_v52  ;;  %v7281_v52 = vld [vmem:[%s8941_s26 + $0x40] sm:$0xff]  }
  0x85   : > { %6482 = vmatpush3.bf16.msra.mxu0 %v7253_v53  ;;  %v7282_v53 = vld [vmem:[%s8942_s1 + $0x58] sm:$0xff]  }
  0x86   : > { %6483 = vmatprep.subr.bf16.mxu0 %v7254_v54  ;;  %v7283_v54 = vld [vmem:[%s8942_s1 + $0x50] sm:$0xff]  }
  0x89   : > { %6484 = vmatpush3.bf16.msra.mxu0 %v7255_v55  ;;  %v7284_v55 = vld [vmem:[%s8942_s1 + $0x48] sm:$0xff]  }
  0x8a   : > { %6732 = vmatprep.subr.bf16.mxu0 %v7600_v20 }
  0x8c   : > { %1261 = vmatmul.mubr.bf16.vlgmr.msra.gmra.mxu0 %v5901_v56  ;;  %v7285_v56 = vld [vmem:[%s8942_s1 + $0x40] sm:$0xff]  }
  0x8d   : > { %6733 = vmatpush3.bf16.msra.mxu0 %v7259_v19  ;;  %6740 = vmatprep.mubr.msk.bf16.mxu0 %vm7601_vm1, %v7600_v20 }
  0x8e   : > { %6734 = vmatprep.subr.bf16.mxu0 %v7600_v20 }
  0x91   : > { %6735 = vmatpush3.bf16.msra.mxu0 %v7261_v22 }
  0x92   : > { %6736 = vmatprep.subr.bf16.mxu0 %v7600_v20 }
  0x95   : > { %6737 = vmatpush3.bf16.msra.mxu0 %v7263_v24 }
  0x96   : > { %6738 = vmatprep.subr.bf16.mxu0 %v7600_v20 }
  0x99   : > { %6739 = vmatpush3.bf16.msra.mxu0 %v7265_v26 }
  0x9a   : > { %6760 = vmatprep.subr.bf16.mxu0 %v7600_v20 }
 0x12c   : > { %v6441_v57 = vpop.f32.mrf.mxu0 }
 0x12e   : > { %v6442_v58 = vpop.f32.mrf.mxu0  ;;  %v6463_v59 = vpop.f32.mrf.mxu1 }
 0x12f   : > { %v6443_v1 = vadd.f32 %v6442_v58, %v6441_v57  ;;  %v7286_v57 = vld [vmem:[%s8941_s26 + $0x78] sm:$0xff]   ;;  %v7287_v58 = vld [vmem:[%s8941_s26 + $0x70] sm:$0xff]  }
 0x130   : > { %v6444_v60 = vpop.f32.mrf.mxu0  ;;  %v6464_v61 = vpop.f32.mrf.mxu1 }
 0x131   : > { %v1183_v3 = vadd.f32 %v6443_v1, %v838_v2  ;;  %v6465_v4 = vadd.f32 %v6464_v61, %v6463_v59  ;;  %v7288_v59 = vld [vmem:[%s8941_s26 + $0x68] sm:$0xff]   ;;  %v7289_v60 = vld [vmem:[%s8941_s26 + $0x60] sm:$0xff]   ;;  %v7290_v61 = vld [vmem:[%s8942_s1 + $0x78] sm:$0xff]  }
 0x132   : > { %v6445_v62 = vpop.f32.mrf.mxu0  ;;  %v6466_v63 = vpop.f32.mrf.mxu1 }
 0x133   : > { %v1223_v7 = vadd.f32 %v6465_v4, %v1183_v3  ;;  %v7291_v62 = vld [vmem:[%s8942_s1 + $0x70] sm:$0xff]   ;;  %v7292_v63 = vld [vmem:[%s8942_s1 + $0x68] sm:$0xff]  }
 0x134   : > { %v6467_v0 = vpop.f32.mrf.mxu1 }
 0x135   : > { %v7293_v0 = vld [vmem:[%s8942_s1 + $0x60] sm:$0xff]  }
 0x14c   : > { %v6485_v5 = vpop.f32.mrf.mxu0 }
 0x14e   : > { %v6486_v6 = vpop.f32.mrf.mxu0 }
 0x14f   : > { %v6487_v8 = vadd.f32 %v6486_v6, %v6485_v5 }
 0x150   : > { %v6488_v9 = vpop.f32.mrf.mxu0 }
 0x151   : > { %v7970_v10 = vadd.f32 %v6487_v8, %v1223_v7  ;;  %v5959_v9 = vld [vmem:[%s8879_s9] ss:$0 sm:$0xff] }
 0x152   : > { %v6489_v11 = vpop.f32.mrf.mxu0 }
 0x153   : > { %v1271_v12 = vsel %vm1270_vm0, %v7970_v10, 0.0 }
 0x154   : > { %1272 = vadd.xlane.f32.xlu0 %v1271_v12 }
 0x1dd   : > { %v1273_v13 = vpop.xlane.xlu0 %1272 }
 0x1de   : > { %v1275_v14 = vmul.f32 0.015625, %v1273_v13  ;;  %v5953_v13 = vld [vmem:[%s8948_s8] ss:$0 sm:$0xff] }
 0x1e0   : > { %v1276_v15 = vsub.f32 %v7970_v10, %v1275_v14 }
 0x1e2   : > { %v1277_v16 = vmul.f32 %v1276_v15, %v1276_v15 }
 0x1e4   : > { %v1278_v17 = vsel %vm1270_vm0, %v1277_v16, 0.0 }
 0x1e5   : > { %1279 = vadd.xlane.f32.xlu0 %v1278_v17 }
 0x26e   : > { %v1280_v27 = vpop.xlane.xlu0 %1279 }
 0x26f   : > { %v1281_v28 = vmul.f32 0.015625, %v1280_v27 }
 0x271   : > { %v1282_v29 = vadd.f32 1e-06, %v1281_v28 }
 0x273   : > { %7422 = vrsqrt.f32 %v1282_v29 }
 0x280   : > { %v7423_v30 = vpop.eup %7422 }
 0x281   : > { %v1284_v32 = vmul.f32 %v7423_v30, %v1276_v15  ;;  %v5965_v15 = vld [vmem:[%s8880_s10] ss:$0 sm:$0xff] }
 0x283   : > { %v1291_v34 = vmul.f32 %v5951_v31, %v1284_v32 }
 0x285   : > { %v1298_v35 = vadd.f32 %v5952_v33, %v1291_v34 }
 0x287   : > { %v8026_v38 = vpack.c.bf16 %v1298_v35, %v1298_v35 }
 0x289   : > { %6717 = vmatmul.mubr.msk.bf16.vlgmr.msra.gmra.mxu1 %vm1340_vm2, %v8026_v38  ;;  %6741 = vmatmul.mubr.msk.bf16.vlgmr.msra.gmra.mxu0 %vm1340_vm2, %v8026_v38 }
 0x28a   : > { %6721 = vmatpush3.bf16.msra.mxu1 %v7266_v36  ;;  %6761 = vmatpush3.bf16.msra.mxu0 %v7267_v37 }
 0x28b   : > { %6722 = vmatprep.subr.bf16.mxu1 %v7600_v20  ;;  %6762 = vmatprep.subr.bf16.mxu0 %v7600_v20 }
 0x28c   : > { %6728 = vmatprep.mubr.msk.bf16.mxu1 %vm7601_vm1, %v7600_v20  ;;  %6768 = vmatprep.mubr.msk.bf16.mxu0 %vm7601_vm1, %v7600_v20 }
 0x28e   : > { %6723 = vmatpush3.bf16.msra.mxu1 %v7268_v39  ;;  %6763 = vmatpush3.bf16.msra.mxu0 %v7269_v40 }
 0x28f   : > { %6724 = vmatprep.subr.bf16.mxu1 %v7600_v20  ;;  %6764 = vmatprep.subr.bf16.mxu0 %v7600_v20 }
 0x292   : > { %6725 = vmatpush3.bf16.msra.mxu1 %v7270_v41  ;;  %6765 = vmatpush3.bf16.msra.mxu0 %v7271_v42 }
 0x293   : > { %6726 = vmatprep.subr.bf16.mxu1 %v7600_v20  ;;  %6766 = vmatprep.subr.bf16.mxu0 %v7600_v20 }
 0x296   : > { %6727 = vmatpush3.bf16.msra.mxu1 %v7272_v43  ;;  %6767 = vmatpush3.bf16.msra.mxu0 %v7273_v44 }
 0x297   : > { %6784 = vmatprep.subr.bf16.mxu0 %v7600_v20  ;;  %6744 = vmatprep.subr.mxu1 %v7600_v20 }
 0x299   : > { %6729 = vmatmul.mubr.msk.bf16.vlgmr.msra.gmra.mxu1 %vm1340_vm2, %v8026_v38  ;;  %6769 = vmatmul.mubr.msk.bf16.vlgmr.msra.gmra.mxu0 %vm1340_vm2, %v8026_v38 }
 0x29a   : > { %6785 = vmatpush3.bf16.msra.mxu0 %v7274_v45  ;;  %6792 = vmatprep.mubr.msk.bf16.mxu0 %vm7601_vm1, %v7600_v20 }
 0x29b   : > { %6786 = vmatprep.subr.bf16.mxu0 %v7600_v20  ;;  %6746 = vmatprep.mubr.msk.f32.mxu1 %vm7601_vm1, %v7600_v20 }
 0x29e   : > { %6787 = vmatpush3.bf16.msra.mxu0 %v7275_v46 }
 0x29f   : > { %6788 = vmatprep.subr.bf16.mxu0 %v7600_v20 }
 0x2a2   : > { %6789 = vmatpush3.bf16.msra.mxu0 %v7276_v47 }
 0x2a3   : > { %6790 = vmatprep.subr.bf16.mxu0 %v7600_v20 }
 0x2a6   : > { %6791 = vmatpush3.bf16.msra.mxu0 %v7277_v48 }
 0x2a7   : > { %6812 = vmatprep.subr.bf16.mxu0 %v7600_v20 }
 0x2a9   : > { %6793 = vmatmul.mubr.msk.bf16.vlgmr.msra.gmra.mxu0 %vm1340_vm2, %v8026_v38 }
 0x2aa   : > { %6813 = vmatpush3.bf16.msra.mxu0 %v7278_v49  ;;  %6820 = vmatprep.mubr.msk.bf16.mxu0 %vm7601_vm1, %v7600_v20 }
 0x2ab   : > { %6814 = vmatprep.subr.bf16.mxu0 %v7600_v20 }
 0x2ae   : > { %6815 = vmatpush3.bf16.msra.mxu0 %v7279_v50 }
 0x2af   : > { %6816 = vmatprep.subr.bf16.mxu0 %v7600_v20 }
 0x2b2   : > { %6817 = vmatpush3.bf16.msra.mxu0 %v7280_v51 }
 0x2b3   : > { %6818 = vmatprep.subr.bf16.mxu0 %v7600_v20 }
 0x2b6   : > { %6819 = vmatpush3.bf16.msra.mxu0 %v7281_v52 }
 0x2b7   : > { %6836 = vmatprep.subr.bf16.mxu0 %v7600_v20 }
 0x2b9   : > { %6821 = vmatmul.mubr.msk.bf16.vlgmr.msra.gmra.mxu0 %vm1340_vm2, %v8026_v38 }
 0x2ba   : > { %6837 = vmatpush3.bf16.msra.mxu0 %v7282_v53  ;;  %6844 = vmatprep.mubr.msk.bf16.mxu0 %vm7601_vm1, %v7600_v20 }
 0x2bb   : > { %6838 = vmatprep.subr.bf16.mxu0 %v7600_v20 }
 0x2be   : > { %6839 = vmatpush3.bf16.msra.mxu0 %v7283_v54 }
 0x2bf   : > { %6840 = vmatprep.subr.bf16.mxu0 %v7600_v20 }
 0x2c2   : > { %6841 = vmatpush3.bf16.msra.mxu0 %v7284_v55 }
 0x2c3   : > { %6842 = vmatprep.subr.bf16.mxu0 %v7600_v20 }
 0x2c6   : > { %6843 = vmatpush3.bf16.msra.mxu0 %v7285_v56 }
 0x2c7   : > { %6864 = vmatprep.subr.bf16.mxu0 %v7600_v20 }
 0x2c9   : > { %6845 = vmatmul.mubr.msk.bf16.vlgmr.msra.gmra.mxu0 %vm1340_vm2, %v8026_v38 }
 0x2ca   : > { %6865 = vmatpush3.bf16.msra.mxu0 %v7286_v57  ;;  %6872 = vmatprep.mubr.msk.bf16.mxu0 %vm7601_vm1, %v7600_v20  ;;  %v7294_v57 = vld [vmem:[%s8881_s11] sm:$0xff]  }
 0x2cb   : > { %6866 = vmatprep.subr.bf16.mxu0 %v7600_v20 }
 0x2ce   : > { %6867 = vmatpush3.bf16.msra.mxu0 %v7287_v58 }
 0x2cf   : > { %6868 = vmatprep.subr.bf16.mxu0 %v7600_v20 }
 0x2d2   : > { %6869 = vmatpush3.bf16.msra.mxu0 %v7288_v59 }
 0x2d3   : > { %6870 = vmatprep.subr.bf16.mxu0 %v7600_v20 }
 0x2d6   : > { %6871 = vmatpush3.bf16.msra.mxu0 %v7289_v60  ;;  %v7295_v60 = vld [vmem:[%s8947_s15 + $0x38] sm:$0xff]  }
 0x2d7   : > { %6888 = vmatprep.subr.bf16.mxu0 %v7600_v20 }
 0x2d9   : > { %6873 = vmatmul.mubr.msk.bf16.vlgmr.msra.gmra.mxu0 %vm1340_vm2, %v8026_v38 }
 0x2da   : > { %6889 = vmatpush3.bf16.msra.mxu0 %v7290_v61  ;;  %6896 = vmatprep.mubr.msk.bf16.mxu0 %vm7601_vm1, %v7600_v20 }
 0x2db   : > { %6890 = vmatprep.subr.bf16.mxu0 %v7600_v20 }
 0x2de   : > { %6891 = vmatpush3.bf16.msra.mxu0 %v7291_v62 }
 0x2df   : > { %6892 = vmatprep.subr.bf16.mxu0 %v7600_v20 }
 0x2e2   : > { %6893 = vmatpush3.bf16.msra.mxu0 %v7292_v63  ;;  %v7296_v63 = vld [vmem:[%s8947_s15 + $0x30] sm:$0xff]  }
 0x2e3   : > { %6894 = vmatprep.subr.bf16.mxu0 %v7600_v20 }
 0x2e6   : > { %6895 = vmatpush3.bf16.msra.mxu0 %v7293_v0  ;;  %v7297_v0 = vld [vmem:[%s8947_s15 + $0x28] sm:$0xff]  }
 0x2e9   : > { %6897 = vmatmul.mubr.msk.bf16.vlgmr.msra.gmra.mxu0 %vm1340_vm2, %v8026_v38 }
 0x349   : > { %v1378_v1 = vpop.f32.mrf.mxu1  ;;  %v1536_v2 = vpop.f32.mrf.mxu0 }
 0x34a   : > { %v1379_v18 = vadd.f32 %v5953_v13, %v1378_v1  ;;  %v1537_v22 = vadd.f32 %v5965_v15, %v1536_v2  ;;  %v7298_v1 = vld [vmem:[%s8947_s15 + $0x20] sm:$0xff]  }
 0x34b   : > { %v6718_v3 = vpop.f32.mrf.mxu1  ;;  %v6742_v4 = vpop.f32.mrf.mxu0 }
 0x34d   : > { %v1381_v5 = vpop.f32.mrf.mxu1  ;;  %v1539_v6 = vpop.f32.mrf.mxu0 }
 0x34e   : > { %v6002_v6 = vld [vmem:[%s8879_s9 + $0x1] ss:$0 sm:$0xff] }
 0x34f   : > { %v6719_v7 = vpop.f32.mrf.mxu1  ;;  %v6743_v8 = vpop.f32.mrf.mxu0 }
 0x350   : > { %v5987_v8 = vld [vmem:[%s8948_s8 + $0x1] ss:$0 sm:$0xff] }
 0x359   : > { %v1457_v11 = vpop.f32.mrf.mxu1  ;;  %v8170_v12 = vpop.f32.mrf.mxu0 }
 0x35a   : > { %v1458_v14 = vadd.f32 %v5959_v9, %v1457_v11  ;;  %v6017_v11 = vld [vmem:[%s8880_s10 + $0x1] ss:$0 sm:$0xff] }
 0x35b   : > { %v6730_v16 = vpop.f32.mrf.mxu1  ;;  %v6770_v17 = vpop.f32.mrf.mxu0 }
 0x35c   : > { %6745 = vmatpush3.xpose.msk.msra.mxu1 %vm1542_vm3, %v1458_v14  ;;  %v1845_v14 = vadd.f32 %v5987_v8, %v8170_v12  ;;  %v7305_v8 = vld [vmem:[%s8947_s15 + $0x78] sm:$0xff]  }
 0x35d   : > { %v1460_v19 = vpop.f32.mrf.mxu1  ;;  %v1847_v21 = vpop.f32.mrf.mxu0  ;;  %6749 = vmatprep.subr.mxu1 %v7600_v20 }
 0x35f   : > { %v6731_v23 = vpop.f32.mrf.mxu1  ;;  %6747 = vmatmul.mubr.msk.f32.vlgmr.msra.gmra.mxu1 %vm1542_vm3, %v1379_v18  ;;  %v6771_v24 = vpop.f32.mrf.mxu0 }
 0x360   : > { %6750 = vmatpush3.msk.msra.mxu1 %vm1636_vm4, %v1537_v22  ;;  %6751 = vmatprep.mubr.msk.f32.mxu1 %vm7601_vm1, %v7600_v20 }
 0x361   : > { %6754 = vmatprep.subr.bf16.mxu1 %v7600_v20 }
 0x369   : > { %v8185_v25 = vpop.f32.mrf.mxu0 }
 0x36a   : > { %v2007_v16 = vadd.f32 %v6017_v11, %v8185_v25 }
 0x36b   : > { %v6794_v26 = vpop.f32.mrf.mxu0 }
 0x36d   : > { %v2009_v27 = vpop.f32.mrf.mxu0 }
 0x36f   : > { %v6795_v28 = vpop.f32.mrf.mxu0 }
 0x379   : > { %v8187_v29 = vpop.f32.mrf.mxu0 }
 0x37b   : > { %v6822_v30 = vpop.f32.mrf.mxu0 }
 0x37c   : > { %v7299_v30 = vld [vmem:[%s8881_s11 + $0x8] sm:$0xff]  }
 0x37d   : > { %v2308_v31 = vpop.f32.mrf.mxu0 }
 0x37f   : > { %v6823_v32 = vpop.f32.mrf.mxu0 }
 0x389   : > { %v8189_v33 = vpop.f32.mrf.mxu0 }
 0x38b   : > { %v6846_v34 = vpop.f32.mrf.mxu0 }
 0x38c   : > { %v7300_v34 = vld [vmem:[%s8947_s15 + $0x58] sm:$0xff]  }
 0x38d   : > { %v2470_v35 = vpop.f32.mrf.mxu0 }
 0x38f   : > { %v6847_v36 = vpop.f32.mrf.mxu0 }
 0x399   : > { %v8191_v37 = vpop.f32.mrf.mxu0 }
 0x39b   : > { %v6874_v39 = vpop.f32.mrf.mxu0 }
 0x39c   : > { %v7301_v39 = vld [vmem:[%s8947_s15 + $0x50] sm:$0xff]  }
 0x39d   : > { %v2769_v40 = vpop.f32.mrf.mxu0 }
 0x39e   : > { %v7302_v40 = vld [vmem:[%s8947_s15 + $0x48] sm:$0xff]  }
 0x39f   : > { %v6875_v41 = vpop.f32.mrf.mxu0 }
 0x3a0   : > { %v7303_v41 = vld [vmem:[%s8947_s15 + $0x40] sm:$0xff]  }
 0x3a9   : > { %v8193_v42 = vpop.f32.mrf.mxu0 }
 0x3ab   : > { %v6898_v43 = vpop.f32.mrf.mxu0 }
 0x3ac   : > { %v5977_v43 = vld [vmem:[%s8882_s12] ss:$0 sm:$0xff] }
 0x3ad   : > { %v2931_v44 = vpop.f32.mrf.mxu0 }
 0x3af   : > { %v6899_v45 = vpop.f32.mrf.mxu0 }
 0x41f   : > { %v1615_v46 = vpop.f32.mrf.mxu1 }
 0x420   : > { %v1619_v47 = vmul.f32 0.25, %v1615_v46 }
 0x421   : > { %v6748_v48 = vpop.f32.mrf.mxu1 }
 0x422   : > { %v1621_v49 = vsel %vm1620_vm5, %v1619_v47, -inf }
 0x423   : > { %1622 = vmax.xlane.f32.xlu1 %v1621_v49 }
 0x4ac   : > { %v1623_v50 = vpop.xlane.xlu1 %1622 }
 0x4ad   : > { %v1624_v51 = vsub.f32 %v1619_v47, %v1623_v50  ;;  %v6055_v50 = vld [vmem:[%s8879_s9 + $0x2] ss:$0 sm:$0xff] }
 0x4af   : > { %v1625_v52 = vmul.f32 1.442695, %v1624_v51 }
 0x4b1   : > { %7424 = vpow2.f32 %v1625_v52  ;;  %v6040_v52 = vld [vmem:[%s8948_s8 + $0x2] ss:$0 sm:$0xff] }
 0x4be   : > { %v7425_v53 = vpop.eup %7424 }
 0x4bf   : > { %v1627_v54 = vsel %vm1620_vm5, %v7425_v53, 0.0 }
 0x4c0   : > { %1628 = vadd.xlane.f32.xlu1 %v1627_v54  ;;  %v6070_v54 = vld [vmem:[%s8880_s10 + $0x2] ss:$0 sm:$0xff] }
 0x549   : > { %v1629_v55 = vpop.xlane.xlu1 %1628 }
 0x54a   : > { %7426 = vrcp.f32 %v1629_v55 }
 0x557   : > { %v7427_v56 = vpop.eup %7426 }
 0x558   : > { %v1631_v58 = vmul.f32 %v7427_v56, %v7425_v53  ;;  %v2306_v56 = vadd.f32 %v6040_v52, %v8187_v29 }
 0x55a   : > { %6752 = vmatmul.mubr.msk.f32.vlgmr.msra.gmra.mxu1 %vm1632_vm6, %v1631_v58  ;;  %v2468_v58 = vadd.f32 %v6070_v54, %v8189_v33 }
 0x55b   : > { %6755 = vmatpush3.bf16.msra.mxu1 %v7294_v57  ;;  %6756 = vmatprep.mubr.msk.bf16.mxu1 %vm7601_vm1, %v7600_v20 }
 0x55c   : > { %6772 = vmatprep.subr.bf16.mxu1 %v7600_v20 }
 0x61a   : > { %v1706_v59 = vpop.f32.mrf.mxu1 }
 0x61b   : > { %v1710_v61 = vpack.c.bf16 %v1706_v59, %v1706_v59 }
 0x61c   : > { %v6753_v62 = vpop.f32.mrf.mxu1 }
 0x61d   : > { %6757 = vmatmul.mubr.msk.bf16.vlgmr.msra.gmra.mxu1 %vm1542_vm3, %v1710_v61 }
 0x61e   : > { %6773 = vmatpush3.bf16.msra.mxu1 %v7295_v60  ;;  %6780 = vmatprep.mubr.msk.bf16.mxu1 %vm7601_vm1, %v7600_v20 }
 0x61f   : > { %6774 = vmatprep.subr.bf16.mxu1 %v7600_v20 }
 0x622   : > { %6775 = vmatpush3.bf16.msra.mxu1 %v7296_v63 }
 0x623   : > { %6776 = vmatprep.subr.bf16.mxu1 %v7600_v20 }
 0x626   : > { %6777 = vmatpush3.bf16.msra.mxu1 %v7297_v0 }
 0x627   : > { %6778 = vmatprep.subr.bf16.mxu1 %v7600_v20 }
 0x62a   : > { %6779 = vmatpush3.bf16.msra.mxu1 %v7298_v1 }
 0x62b   : > { %6796 = vmatprep.subr.mxu1 %v7600_v20 }
 0x62d   : > { %6781 = vmatmul.mubr.msk.bf16.vlgmr.msra.gmra.mxu1 %vm1340_vm2, %v8026_v38 }
 0x62e   : > { %6798 = vmatprep.mubr.msk.f32.mxu1 %vm7601_vm1, %v7600_v20 }
 0x6dd   : > { %v1756_v2 = vpop.f32.mrf.mxu1 }
 0x6de   : > { %v1768_v44 = vadd.f32 %v5977_v43, %v1756_v2 }
 0x6df   : > { %v6758_v3 = vpop.f32.mrf.mxu1 }
 0x6e1   : > { %v1759_v4 = vpop.f32.mrf.mxu1 }
 0x6e3   : > { %v6759_v5 = vpop.f32.mrf.mxu1 }
 0x6e4   : > { %v7304_v5 = vld [vmem:[%s8881_s11 + $0x10] sm:$0xff]  }
 0x6ed   : > { %v1925_v7 = vpop.f32.mrf.mxu1 }
 0x6ee   : > { %v1926_v9 = vadd.f32 %v6002_v6, %v1925_v7 }
 0x6ef   : > { %v6782_v13 = vpop.f32.mrf.mxu1 }
 0x6f0   : > { %6797 = vmatpush3.xpose.msk.msra.mxu1 %vm1542_vm3, %v1926_v9  ;;  %v7306_v13 = vld [vmem:[%s8947_s15 + $0x70] sm:$0xff]  }
 0x6f1   : > { %v1928_v15 = vpop.f32.mrf.mxu1  ;;  %6801 = vmatprep.subr.mxu1 %v7600_v20 }
 0x6f2   : > { %v7308_v15 = vld [vmem:[%s8947_s15 + $0x60] sm:$0xff]  }
 0x6f3   : > { %v6783_v17 = vpop.f32.mrf.mxu1  ;;  %6799 = vmatmul.mubr.msk.f32.vlgmr.msra.gmra.mxu1 %vm1542_vm3, %v1845_v14  ;;  %v7307_v14 = vld [vmem:[%s8947_s15 + $0x68] sm:$0xff]  }
 0x6f4   : > { %6802 = vmatpush3.msk.msra.mxu1 %vm1636_vm4, %v2007_v16  ;;  %6803 = vmatprep.mubr.msk.f32.mxu1 %vm7601_vm1, %v7600_v20 }
 0x6f5   : > { %6806 = vmatprep.subr.bf16.mxu1 %v7600_v20 }
 0x7b3   : > { %v2084_v18 = vpop.f32.mrf.mxu1 }
 0x7b4   : > { %v2088_v19 = vmul.f32 0.25, %v2084_v18 }
 0x7b5   : > { %v6800_v21 = vpop.f32.mrf.mxu1 }
 0x7b6   : > { %v2089_v12 = vsel %vm1620_vm5, %v2088_v19, -inf }
 0x7b7   : > { %2090 = vmax.xlane.f32.xlu0 %v2089_v12  ;;  %v6108_v12 = vld [vmem:[%s8879_s9 + $0x3] ss:$0 sm:$0xff] }
 0x840   : > { %v2091_v22 = vpop.xlane.xlu0 %2090 }
 0x841   : > { %v2092_v23 = vsub.f32 %v2088_v19, %v2091_v22 }
 0x843   : > { %v2093_v24 = vmul.f32 1.442695, %v2092_v23  ;;  %v6093_v23 = vld [vmem:[%s8948_s8 + $0x3] ss:$0 sm:$0xff] }
 0x845   : > { %7428 = vpow2.f32 %v2093_v24 }
 0x852   : > { %v7429_v25 = vpop.eup %7428 }
 0x853   : > { %v2095_v26 = vsel %vm1620_vm5, %v7429_v25, 0.0 }
 0x854   : > { %2096 = vadd.xlane.f32.xlu1 %v2095_v26  ;;  %v2767_v26 = vadd.f32 %v6093_v23, %v8191_v37  ;;  %v7330_v23 = vld [vmem:[#allocation5 + $0x58] sm:$0xff]  }
 0x8dd   : > { %v2097_v27 = vpop.xlane.xlu1 %2096 }
 0x8de   : > { %7430 = vrcp.f32 %v2097_v27 }
 0x8eb   : > { %v7431_v28 = vpop.eup %7430 }
 0x8ec   : > { %v2099_v31 = vmul.f32 %v7431_v28, %v7429_v25 }
 0x8ee   : > { %6804 = vmatmul.mubr.msk.f32.vlgmr.msra.gmra.mxu1 %vm1632_vm6, %v2099_v31 }
 0x8ef   : > { %6807 = vmatpush3.bf16.msra.mxu1 %v7299_v30  ;;  %6808 = vmatprep.mubr.msk.bf16.mxu1 %vm7601_vm1, %v7600_v20 }
 0x8f0   : > { %6824 = vmatprep.subr.bf16.mxu1 %v7600_v20 }
 0x9ae   : > { %v2172_v32 = vpop.f32.mrf.mxu1 }
 0x9af   : > { %v2176_v35 = vpack.c.bf16 %v2172_v32, %v2172_v32 }
 0x9b0   : > { %v6805_v36 = vpop.f32.mrf.mxu1 }
 0x9b1   : > { %6809 = vmatmul.mubr.msk.bf16.vlgmr.msra.gmra.mxu1 %vm1542_vm3, %v2176_v35 }
 0x9b2   : > { %6825 = vmatpush3.bf16.msra.mxu1 %v7300_v34  ;;  %6832 = vmatprep.mubr.msk.bf16.mxu1 %vm7601_vm1, %v7600_v20 }
 0x9b3   : > { %6826 = vmatprep.subr.bf16.mxu1 %v7600_v20 }
 0x9b6   : > { %6827 = vmatpush3.bf16.msra.mxu1 %v7301_v39 }
 0x9b7   : > { %6828 = vmatprep.subr.bf16.mxu1 %v7600_v20 }
 0x9ba   : > { %6829 = vmatpush3.bf16.msra.mxu1 %v7302_v40 }
 0x9bb   : > { %6830 = vmatprep.subr.bf16.mxu1 %v7600_v20 }
 0x9be   : > { %6831 = vmatpush3.bf16.msra.mxu1 %v7303_v41 }
 0x9bf   : > { %6848 = vmatprep.subr.mxu1 %v7600_v20 }
 0x9c1   : > { %6833 = vmatmul.mubr.msk.bf16.vlgmr.msra.gmra.mxu1 %vm1340_vm2, %v8026_v38 }
 0x9c2   : > { %6850 = vmatprep.mubr.msk.f32.mxu1 %vm7601_vm1, %v7600_v20 }
 0xa71   : > { %v2223_v45 = vpop.f32.mrf.mxu1 }
 0xa72   : > { %v2229_v46 = vadd.f32 %v2223_v45, %v1768_v44  ;;  %v7309_v45 = vld [vmem:[%s8881_s11 + $0x18] sm:$0xff]  }
 0xa73   : > { %v6810_v47 = vpop.f32.mrf.mxu1 }
 0xa75   : > { %v2226_v48 = vpop.f32.mrf.mxu1 }
 0xa77   : > { %v6811_v49 = vpop.f32.mrf.mxu1 }
 0xa81   : > { %v2386_v51 = vpop.f32.mrf.mxu1 }
 0xa82   : > { %v2387_v53 = vadd.f32 %v6055_v50, %v2386_v51 }
 0xa83   : > { %v6834_v55 = vpop.f32.mrf.mxu1 }
 0xa84   : > { %6849 = vmatpush3.xpose.msk.msra.mxu1 %vm1542_vm3, %v2387_v53 }
 0xa85   : > { %v2389_v57 = vpop.f32.mrf.mxu1  ;;  %6853 = vmatprep.subr.mxu1 %v7600_v20 }
 0xa87   : > { %v6835_v59 = vpop.f32.mrf.mxu1  ;;  %6851 = vmatmul.mubr.msk.f32.vlgmr.msra.gmra.mxu1 %vm1542_vm3, %v2306_v56 }
 0xa88   : > { %6854 = vmatpush3.msk.msra.mxu1 %vm1636_vm4, %v2468_v58  ;;  %6855 = vmatprep.mubr.msk.f32.mxu1 %vm7601_vm1, %v7600_v20 }
 0xa89   : > { %6858 = vmatprep.subr.bf16.mxu1 %v7600_v20 }
 0xb47   : > { %v2545_v60 = vpop.f32.mrf.mxu1 }
 0xb48   : > { %v2549_v61 = vmul.f32 0.25, %v2545_v60 }
 0xb49   : > { %v6852_v62 = vpop.f32.mrf.mxu1 }
 0xb4a   : > { %v2550_v29 = vsel %vm1620_vm5, %v2549_v61, -inf  ;;  %v7310_v62 = vld [vmem:[#allocation2 + $0x30] ss:$8 sps:$4 sm:$0xff]  }
 0xb4b   : > { %2551 = vmax.xlane.f32.xlu0 %v2550_v29  ;;  %v7313_v29 = vld [vmem:[#allocation2 + $0x20] ss:$8 sps:$4 sm:$0xff]  }
 0xbd4   : > { %v2552_v63 = vpop.xlane.xlu0 %2551 }
 0xbd5   : > { %v2553_v0 = vsub.f32 %v2549_v61, %v2552_v63  ;;  %v7312_v61 = vld [vmem:[#allocation2 + $0x34] ss:$8 sps:$4 sm:$0xff]  }
 0xbd6   : > { %3254 = vmatprep.subr.bf16.mxu0 %v7312_v61  ;;  %v7318_v63 = vld [vmem:[#allocation2 + $0x14] ss:$8 sps:$4 sm:$0xff]  }
 0xbd7   : > { %v2554_v1 = vmul.f32 1.442695, %v2553_v0  ;;  %3255 = vmatpush1.bf16.msra.mxu0 %v7310_v62  ;;  %v7316_v0 = vld [vmem:[#allocation2 + $0x10] ss:$8 sps:$4 sm:$0xff]  }
 0xbd9   : > { %7432 = vpow2.f32 %v2554_v1  ;;  %v7321_v1 = vld [vmem:[#allocation2 + $0x4] ss:$8 sps:$4 sm:$0xff]  }
 0xbe6   : > { %v7433_v33 = vpop.eup %7432 }
 0xbe7   : > { %v2556_v2 = vsel %vm1620_vm5, %v7433_v33, 0.0 }
 0xbe8   : > { %2557 = vadd.xlane.f32.xlu1 %v2556_v2  ;;  %v7602_v2 = vmov 0  }
 0xbe9   : > { %3278 = vmatprep.mubr.bf16.mxu0 %v7602_v2 }
 0xc71   : > { %v2558_v3 = vpop.xlane.xlu1 %2557 }
 0xc72   : > { %7434 = vrcp.f32 %v2558_v3  ;;  %v7322_v3 = vld [vmem:[#allocation5 + $0x78] sm:$0xff]  }
 0xc7f   : > { %v7435_v4 = vpop.eup %7434 }
 0xc80   : > { %v2560_v6 = vmul.f32 %v7435_v4, %v7433_v33  ;;  %v7319_v33 = vld [vmem:[#allocation2] ss:$8 sps:$4 sm:$0xff]   ;;  %v7323_v4 = vld [vmem:[#allocation5 + $0x38] sm:$0xff]  }
 0xc82   : > { %6856 = vmatmul.mubr.msk.f32.vlgmr.msra.gmra.mxu1 %vm1632_vm6, %v2560_v6 }
 0xc83   : > { %6859 = vmatpush3.bf16.msra.mxu1 %v7304_v5  ;;  %6860 = vmatprep.mubr.msk.bf16.mxu1 %vm7601_vm1, %v7600_v20 }
 0xc84   : > { %6876 = vmatprep.subr.bf16.mxu1 %v7600_v20 }
 0xd42   : > { %v2633_v7 = vpop.f32.mrf.mxu1 }
 0xd43   : > { %v2637_v9 = vpack.c.bf16 %v2633_v7, %v2633_v7 }
 0xd44   : > { %v6857_v11 = vpop.f32.mrf.mxu1 }
 0xd45   : > { %6861 = vmatmul.mubr.msk.bf16.vlgmr.msra.gmra.mxu1 %vm1542_vm3, %v2637_v9  ;;  %v6137_v9 = vld [vmem:[%s8883_s13] ss:$0 sm:$0xff] }
 0xd46   : > { %6877 = vmatpush3.bf16.msra.mxu1 %v7305_v8  ;;  %6884 = vmatprep.mubr.msk.bf16.mxu1 %vm7601_vm1, %v7600_v20 }
 0xd47   : > { %6878 = vmatprep.subr.bf16.mxu1 %v7600_v20 }
 0xd4a   : > { %6879 = vmatpush3.bf16.msra.mxu1 %v7306_v13  ;;  %v6138_v13 = vld [vmem:[%s8884_s14] ss:$0 sm:$0xff] }
 0xd4b   : > { %6880 = vmatprep.subr.bf16.mxu1 %v7600_v20 }
 0xd4e   : > { %6881 = vmatpush3.bf16.msra.mxu1 %v7307_v14 }
 0xd4f   : > { %6882 = vmatprep.subr.bf16.mxu1 %v7600_v20 }
 0xd52   : > { %6883 = vmatpush3.bf16.msra.mxu1 %v7308_v15 }
 0xd53   : > { %6900 = vmatprep.subr.mxu1 %v7600_v20 }
 0xd55   : > { %6885 = vmatmul.mubr.msk.bf16.vlgmr.msra.gmra.mxu1 %vm1340_vm2, %v8026_v38  ;;  %v6123_v38 = vld [vmem:[%s8880_s10 + $0x3] ss:$0 sm:$0xff] }
 0xd56   : > { %6902 = vmatprep.mubr.msk.f32.mxu1 %vm7601_vm1, %v7600_v20  ;;  %v2929_v28 = vadd.f32 %v6123_v38, %v8193_v42  ;;  %v7332_v38 = vld [vmem:[#allocation5 + $0x50] sm:$0xff]  }
 0xe05   : > { %v2684_v16 = vpop.f32.mrf.mxu1 }
 0xe06   : > { %v2690_v17 = vadd.f32 %v2684_v16, %v2229_v46 }
 0xe07   : > { %v6862_v18 = vpop.f32.mrf.mxu1 }
 0xe08   : > { %v7325_v18 = vld [vmem:[#allocation5 + $0x30] sm:$0xff]  }
 0xe09   : > { %v2687_v19 = vpop.f32.mrf.mxu1 }
 0xe0a   : > { %v7326_v19 = vld [vmem:[#allocation5 + $0x68] sm:$0xff]  }
 0xe0b   : > { %v6863_v21 = vpop.f32.mrf.mxu1 }
 0xe0c   : > { %v7327_v21 = vld [vmem:[#allocation5 + $0x28] sm:$0xff]  }
 0xe15   : > { %v2847_v22 = vpop.f32.mrf.mxu1 }
 0xe16   : > { %v2848_v24 = vadd.f32 %v6108_v12, %v2847_v22  ;;  %v7328_v12 = vld [vmem:[#allocation5 + $0x60] sm:$0xff]  }
 0xe17   : > { %v6886_v25 = vpop.f32.mrf.mxu1  ;;  %v7329_v22 = vld [vmem:[#allocation5 + $0x20] sm:$0xff]  }
 0xe18   : > { %6901 = vmatpush3.xpose.msk.msra.mxu1 %vm1542_vm3, %v2848_v24  ;;  %v7331_v24 = vld [vmem:[#allocation5 + $0x18] sm:$0xff]   ;;  %v7333_v25 = vld [vmem:[#allocation5 + $0x10] sm:$0xff]  }
 0xe19   : > { %v2850_v27 = vpop.f32.mrf.mxu1  ;;  %6905 = vmatprep.subr.mxu1 %v7600_v20 }
 0xe1a   : > { %v7335_v27 = vld [vmem:[#allocation5 + $0x8] sm:$0xff]  }
 0xe1b   : > { %v6887_v30 = vpop.f32.mrf.mxu1  ;;  %6903 = vmatmul.mubr.msk.f32.vlgmr.msra.gmra.mxu1 %vm1542_vm3, %v2767_v26  ;;  %v7334_v26 = vld [vmem:[#allocation5 + $0x48] sm:$0xff]  }
 0xe1c   : > { %6906 = vmatpush3.msk.msra.mxu1 %vm1636_vm4, %v2929_v28  ;;  %6907 = vmatprep.mubr.msk.f32.mxu1 %vm7601_vm1, %v7600_v20  ;;  %v7336_v28 = vld [vmem:[#allocation5 + $0x40] sm:$0xff]  }
 0xe1d   : > { %6910 = vmatprep.subr.bf16.mxu1 %v7600_v20  ;;  %v7337_v30 = vld [vmem:[#allocation5] sm:$0xff]  }
 0xedb   : > { %v3006_v31 = vpop.f32.mrf.mxu1 }
 0xedc   : > { %v3010_v32 = vmul.f32 0.25, %v3006_v31  ;;  %v3193_v31 = vlaneseq }
 0xedd   : > { %v6904_v34 = vpop.f32.mrf.mxu1 }
 0xede   : > { %v3011_v37 = vsel %vm1620_vm5, %v3010_v32, -inf }
 0xedf   : > { %3012 = vmax.xlane.f32.xlu0 %v3011_v37  ;;  %v3190_v37 = vld [vmem:[%s8886_s16] sm:$0x3] }
 0xf68   : > { %v3013_v35 = vpop.xlane.xlu0 %3012 }
 0xf69   : > { %v3014_v36 = vsub.f32 %v3010_v32, %v3013_v35  ;;  %v8376_v32 = vshrl.u32 %v3193_v31, 7 }
 0xf6b   : > { %v3015_v39 = vmul.f32 1.442695, %v3014_v36  ;;  %v3195_v34 = vsub.s32 0, %v8376_v32  ;;  %v3199_v35 = vsub.s32 1, %v8376_v32 }
 0xf6d   : > { %7436 = vpow2.f32 %v3015_v39  ;;  %v3196_v36 = vrot.slane %v3190_v37, %v3195_v34  ;;  %v3200_v39 = vrot.slane %v3190_v37, %v3199_v35 }
 0xf7a   : > { %v7437_v42 = vpop.eup %7436 }
 0xf7b   : > { %v3017_v40 = vsel %vm1620_vm5, %v7437_v42, 0.0 }
 0xf7c   : > { %3018 = vadd.xlane.f32.xlu1 %v3017_v40 }
0x1005   : > { %v3019_v41 = vpop.xlane.xlu1 %3018 }
0x1006   : > { %7438 = vrcp.f32 %v3019_v41 }
0x1013   : > { %v7439_v43 = vpop.eup %7438 }
0x1014   : > { %v3021_v44 = vmul.f32 %v7439_v43, %v7437_v42 }
0x1016   : > { %6908 = vmatmul.mubr.msk.f32.vlgmr.msra.gmra.mxu1 %vm1632_vm6, %v3021_v44 }
0x1017   : > { %6912 = vmatprep.mubr.msk.bf16.mxu1 %vm7601_vm1, %v7600_v20  ;;  %6911 = vmatpush3.bf16.msra.mxu1 %v7309_v45 }
0x1018   : > { %6575 = vmatprep.subr.bf16.mxu1 %v7322_v3 }
0x10d6   : > { %v3094_v46 = vpop.f32.mrf.mxu1 }
0x10d7   : > { %v3098_v47 = vpack.c.bf16 %v3094_v46, %v3094_v46 }
0x10d8   : > { %v6909_v48 = vpop.f32.mrf.mxu1 }
0x10d9   : > { %6913 = vmatmul.mubr.msk.bf16.vlgmr.msra.gmra.mxu1 %vm1542_vm3, %v3098_v47 }
0x10da   : > { %6576 = vmatpush3.bf16.msra.mxu1 %v7323_v4 }
0x1199   : > { %v3145_v49 = vpop.f32.mrf.mxu1 }
0x119a   : > { %v3151_v50 = vadd.f32 %v3145_v49, %v2690_v17  ;;  %v7324_v17 = vld [vmem:[#allocation5 + $0x70] sm:$0xff]  }
0x119b   : > { %v6914_v51 = vpop.f32.mrf.mxu1  ;;  %6577 = vmatprep.subr.bf16.mxu1 %v7324_v17 }
0x119c   : > { %v8358_v52 = vadd.f32 %v3151_v50, %v7970_v10  ;;  %v7315_v10 = vld [vmem:[#allocation2 + $0x24] ss:$8 sps:$4 sm:$0xff]   ;;  %6578 = vmatpush3.bf16.msra.mxu1 %v7325_v18 }
0x119d   : > { %v3148_v53 = vpop.f32.mrf.mxu1  ;;  %3256 = vmatprep.subr.bf16.mxu0 %v7315_v10  ;;  %6579 = vmatprep.subr.bf16.mxu1 %v7326_v19 }
0x119e   : > { %v3155_v54 = vsel %vm1270_vm0, %v8358_v52, 0.0  ;;  %3257 = vmatpush1.bf16.msra.mxu0 %v7313_v29 }
0x119f   : > { %3156 = vadd.xlane.f32.xlu0 %v3155_v54  ;;  %v6915_v55 = vpop.f32.mrf.mxu1  ;;  %3258 = vmatprep.subr.bf16.mxu0 %v7318_v63 }
0x11a0   : > { %6580 = vmatpush3.bf16.msra.mxu1 %v7327_v21  ;;  %v6167_v21 = vld [vmem:[%s8944_s27 + $0x1] ss:$0 sm:$0xff] }
0x11a1   : > { %6581 = vmatprep.subr.bf16.mxu1 %v7328_v12 }
0x11a2   : > { %3259 = vmatpush1.bf16.msra.mxu0 %v7316_v0 }
0x11a3   : > { %3260 = vmatprep.subr.bf16.mxu0 %v7321_v1 }
0x11a4   : > { %6582 = vmatpush3.bf16.msra.mxu1 %v7329_v22  ;;  %v6168_v22 = vld [vmem:[%s8945_s23 + $0x1] ss:$0 sm:$0xff] }
0x11a5   : > { %6583 = vmatprep.subr.bf16.mxu1 %v7330_v23 }
0x11a6   : > { %3261 = vmatpush1.bf16.msra.mxu0 %v7319_v33 }
0x11a7   : > { %6916 = vmatprep.subr.bf16.mxu0 %v7600_v20 }
0x11a8   : > { %6584 = vmatpush3.bf16.msra.mxu1 %v7331_v24 }
0x11a9   : > { %6585 = vmatprep.subr.bf16.mxu1 %v7332_v38  ;;  %v7346_v38 = vld [vmem:[%s8947_s15 + $0x98] sm:$0xff]  }
0x11ac   : > { %6586 = vmatpush3.bf16.msra.mxu1 %v7333_v25 }
0x11ad   : > { %6587 = vmatprep.subr.bf16.mxu1 %v7334_v26  ;;  %v7347_v26 = vld [vmem:[%s8947_s15 + $0x90] sm:$0xff]  }
0x11b0   : > { %6588 = vmatpush3.bf16.msra.mxu1 %v7335_v27  ;;  %v7348_v27 = vld [vmem:[%s8947_s15 + $0x88] sm:$0xff]  }
0x11b1   : > { %6589 = vmatprep.subr.bf16.mxu1 %v7336_v28  ;;  %v7349_v28 = vld [vmem:[%s8947_s15 + $0x80] sm:$0xff]  }
0x11b4   : > { %6590 = vmatpush3.bf16.msra.mxu1 %v7337_v30  ;;  %v6209_v30 = vld [vmem:[%s8880_s10 + $0x4] ss:$0 sm:$0xff] }
0x11b5   : > { %6940 = vmatprep.subr.bf16.mxu1 %v7600_v20 }
0x1228   : > { %v3157_v56 = vpop.xlane.xlu0 %3156 }
0x1229   : > { %v3158_v57 = vmul.f32 0.015625, %v3157_v56 }
0x122b   : > { %v3159_v58 = vsub.f32 %v8358_v52, %v3158_v57 }
0x122d   : > { %v3160_v59 = vmul.f32 %v3159_v58, %v3159_v58 }
0x122f   : > { %v3161_v60 = vsel %vm1270_vm0, %v3160_v59, 0.0 }
0x1230   : > { %3162 = vadd.xlane.f32.xlu1 %v3161_v60  ;;  %v6148_v60 = vld [vmem:[%s8888_s18] ss:$0 sm:$0xff] }
0x12b9   : > { %v3163_v5 = vpop.xlane.xlu1 %3162 }
0x12ba   : > { %v3164_v6 = vmul.f32 0.015625, %v3163_v5 }
0x12bc   : > { %v3165_v7 = vadd.f32 1e-06, %v3164_v6 }
0x12be   : > { %7440 = vrsqrt.f32 %v3165_v7  ;;  %v7338_v7 = vld [vmem:[%s8941_s26 + $0x98] sm:$0xff]  }
0x12cb   : > { %v7441_v8 = vpop.eup %7440 }
0x12cc   : > { %v3167_v11 = vmul.f32 %v7441_v8, %v3159_v58  ;;  %v7340_v8 = vld [vmem:[%s8941_s26 + $0x90] sm:$0xff]  }
0x12ce   : > { %v3174_v14 = vmul.f32 %v6137_v9, %v3167_v11  ;;  %v7341_v9 = vld [vmem:[%s8942_s1 + $0x90] sm:$0xff]   ;;  %v7342_v11 = vld [vmem:[%s8941_s26 + $0x88] sm:$0xff]  }
0x12d0   : > { %v3181_v15 = vadd.f32 %v6138_v13, %v3174_v14  ;;  %v7343_v13 = vld [vmem:[%s8942_s1 + $0x88] sm:$0xff]   ;;  %v7344_v14 = vld [vmem:[%s8941_s26 + $0x80] sm:$0xff]  }
0x12d2   : > { %v3191_v16 = vpack.c.bf16 %v3181_v15, %v3181_v15  ;;  %v7345_v15 = vld [vmem:[%s8942_s1 + $0x80] sm:$0xff]  }
0x12d4   : > { %6147 = vmatmul.mubr.msk.bf16.vlgmr.msra.gmra.mxu0 %vm1340_vm2, %v3191_v16 }
0x12d5   : > { %6924 = vmatprep.mubr.msk.bf16.mxu0 %vm7601_vm1, %v7600_v20  ;;  %6917 = vmatpush3.bf16.msra.mxu0 %v7338_v7  ;;  %v7355_v7 = vld [vmem:[%s8942_s1 + $0xb0] sm:$0xff]  }
0x12d6   : > { %6918 = vmatprep.subr.bf16.mxu0 %v7600_v20 }
0x12d9   : > { %6919 = vmatpush3.bf16.msra.mxu0 %v7340_v8  ;;  %v7357_v8 = vld [vmem:[%s8942_s1 + $0xa0] sm:$0xff]  }
0x12da   : > { %6920 = vmatprep.subr.bf16.mxu0 %v7600_v20 }
0x12dd   : > { %6921 = vmatpush3.bf16.msra.mxu0 %v7342_v11  ;;  %v7359_v11 = vld [vmem:[%s8941_s26 + $0xd0] sm:$0xff]  }
0x12de   : > { %6922 = vmatprep.subr.bf16.mxu0 %v7600_v20 }
0x12e1   : > { %6923 = vmatpush3.bf16.msra.mxu0 %v7344_v14  ;;  %v7361_v14 = vld [vmem:[%s8941_s26 + $0xc0] sm:$0xff]  }
0x12e2   : > { %6928 = vmatprep.subr.bf16.mxu0 %v7600_v20 }
0x1394   : > { %v3280_v42 = vpop.f32.mrf.mxu0 }
0x1395   : > { %v3281_v40 = vadd.f32 %v3280_v42, %v3196_v36 }
0x1396   : > { %v3282_v41 = vpop.f32.mrf.mxu0 }
0x1397   : > { %v3289_v43 = vmul.f32 0.70710677, %v3281_v40  ;;  %v3283_v44 = vadd.f32 %v3282_v41, %v3200_v39  ;;  %v3287_v51 = vmul.f32 0.5, %v3281_v40 }
0x1398   : > { %v3284_v45 = vpop.f32.mrf.mxu0 }
0x1399   : > { %7442 = verf.f32 %v3289_v43  ;;  %v3290_v46 = vmul.f32 0.70710677, %v3283_v44  ;;  %v3288_v53 = vmul.f32 0.5, %v3283_v44  ;;  %v6194_v45 = vld [vmem:[%s8879_s9 + $0x4] ss:$0 sm:$0xff] }
0x139a   : > { %v3285_v47 = vpop.f32.mrf.mxu0 }
0x139b   : > { %7444 = verf.f32 %v3290_v46  ;;  %v6179_v47 = vld [vmem:[%s8948_s8 + $0x4] ss:$0 sm:$0xff] }
0x13a6   : > { %v7443_v48 = vpop.eup %7442 }
0x13a7   : > { %v3293_v49 = vadd.f32 1.0, %v7443_v48 }
0x13a8   : > { %v7445_v50 = vpop.eup %7444 }
0x13a9   : > { %v3294_v54 = vadd.f32 1.0, %v7445_v50  ;;  %v3295_v55 = vmul.f32 %v3293_v49, %v3287_v51 }
0x13ab   : > { %v3296_v56 = vmul.f32 %v3294_v54, %v3288_v53  ;;  %v3330_v58 = vpack.c.bf16 %v3295_v55, %v3295_v55 }
0x13ad   : > { %v3331_v57 = vpack.c.bf16 %v3296_v56, %v3296_v56 }
0x13af   : > { %3466 = vmatprep.mubr.bf16.mxu1 %v3331_v57 }
0x13b0   : > { %3467 = vmatmul.mubr.bf16.vlgmr.msra.gmra.mxu1 %v3330_v58 }
0x13b1   : > { %6948 = vmatprep.mubr.msk.bf16.mxu1 %vm7601_vm1, %v7600_v20 }
0x1470   : > { %v6591_v59 = vpop.f32.mrf.mxu1 }
0x1472   : > { %v6592_v61 = vpop.f32.mrf.mxu1 }
0x1473   : > { %v6593_v62 = vadd.f32 %v6592_v61, %v6591_v59 }
0x1474   : > { %v6594_v10 = vpop.f32.mrf.mxu1 }
0x1475   : > { %v3469_v29 = vadd.f32 %v6593_v62, %v6148_v60  ;;  %v7374_v10 = vld [vmem:[%s8881_s11 + $0x20] sm:$0xff]  }
0x1476   : > { %v6595_v63 = vpop.f32.mrf.mxu1 }
0x1477   : > { %v8393_v0 = vadd.f32 %v3469_v29, %v8358_v52  ;;  %v7339_v52 = vld [vmem:[%s8942_s1 + $0x98] sm:$0xff]  }
0x1478   : > { %6941 = vmatpush3.bf16.msra.mxu1 %v7339_v52  ;;  %v7356_v52 = vld [vmem:[%s8942_s1 + $0xa8] sm:$0xff]  }
0x1479   : > { %v3479_v1 = vsel %vm1270_vm0, %v8393_v0, 0.0  ;;  %6942 = vmatprep.subr.bf16.mxu1 %v7600_v20 }
0x147a   : > { %3480 = vadd.xlane.f32.xlu0 %v3479_v1  ;;  %v7350_v1 = vld [vmem:[%s8941_s26 + $0xb8] sm:$0xff]  }
0x147c   : > { %6943 = vmatpush3.bf16.msra.mxu1 %v7341_v9  ;;  %v7358_v9 = vld [vmem:[%s8941_s26 + $0xd8] sm:$0xff]  }
0x147d   : > { %6944 = vmatprep.subr.bf16.mxu1 %v7600_v20 }
0x1480   : > { %6945 = vmatpush3.bf16.msra.mxu1 %v7343_v13  ;;  %v7360_v13 = vld [vmem:[%s8941_s26 + $0xc8] sm:$0xff]  }
0x1481   : > { %6946 = vmatprep.subr.bf16.mxu1 %v7600_v20 }
0x1484   : > { %6947 = vmatpush3.bf16.msra.mxu1 %v7345_v15  ;;  %v7362_v15 = vld [vmem:[%s8942_s1 + $0xd8] sm:$0xff]  }
0x1485   : > { %6957 = vmatprep.subr.mxu1 %v7600_v20 }
0x1503   : > { %v3481_v33 = vpop.xlane.xlu0 %3480 }
0x1504   : > { %v3482_v3 = vmul.f32 0.015625, %v3481_v33 }
0x1506   : > { %v3483_v4 = vsub.f32 %v8393_v0, %v3482_v3  ;;  %v7351_v3 = vld [vmem:[%s8941_s26 + $0xb0] sm:$0xff]  }
0x1508   : > { %v3484_v5 = vmul.f32 %v3483_v4, %v3483_v4 }
0x150a   : > { %v3485_v6 = vsel %vm1270_vm0, %v3484_v5, 0.0  ;;  %v7353_v5 = vld [vmem:[%s8941_s26 + $0xa0] sm:$0xff]  }
0x150b   : > { %3486 = vadd.xlane.f32.xlu1 %v3485_v6  ;;  %v7354_v6 = vld [vmem:[%s8942_s1 + $0xb8] sm:$0xff]  }
0x1594   : > { %v3487_v16 = vpop.xlane.xlu1 %3486 }
0x1595   : > { %v3488_v17 = vmul.f32 0.015625, %v3487_v16  ;;  %v7363_v16 = vld [vmem:[%s8942_s1 + $0xd0] sm:$0xff]  }
0x1597   : > { %v3489_v18 = vadd.f32 1e-06, %v3488_v17  ;;  %v7364_v17 = vld [vmem:[%s8942_s1 + $0xc8] sm:$0xff]  }
0x1599   : > { %7446 = vrsqrt.f32 %v3489_v18  ;;  %v7365_v18 = vld [vmem:[%s8942_s1 + $0xc0] sm:$0xff]  }
0x15a6   : > { %v7447_v19 = vpop.eup %7446 }
0x15a7   : > { %v3491_v12 = vmul.f32 %v7447_v19, %v3483_v4  ;;  %v7352_v4 = vld [vmem:[%s8941_s26 + $0xa8] sm:$0xff]   ;;  %v7366_v19 = vld [vmem:[%s8941_s26 + $0xf8] sm:$0xff]  }
0x15a9   : > { %v3498_v23 = vmul.f32 %v6167_v21, %v3491_v12  ;;  %v7367_v21 = vld [vmem:[%s8941_s26 + $0xf0] sm:$0xff]   ;;  %v7368_v12 = vld [vmem:[%s8941_s26 + $0xe8] sm:$0xff]  }
0x15ab   : > { %v3505_v24 = vadd.f32 %v6168_v22, %v3498_v23  ;;  %v7369_v22 = vld [vmem:[%s8941_s26 + $0xe0] sm:$0xff]   ;;  %v7370_v23 = vld [vmem:[%s8942_s1 + $0xf8] sm:$0xff]  }
0x15ad   : > { %v8440_v25 = vpack.c.bf16 %v3505_v24, %v3505_v24  ;;  %v7371_v24 = vld [vmem:[%s8942_s1 + $0xf0] sm:$0xff]  }
0x15af   : > { %6925 = vmatmul.mubr.msk.bf16.vlgmr.msra.gmra.mxu0 %vm1340_vm2, %v8440_v25  ;;  %6949 = vmatmul.mubr.msk.bf16.vlgmr.msra.gmra.mxu1 %vm1340_vm2, %v8440_v25 }
0x15b0   : > { %6929 = vmatpush3.bf16.msra.mxu0 %v7346_v38  ;;  %6936 = vmatprep.mubr.msk.bf16.mxu0 %vm7601_vm1, %v7600_v20  ;;  %v7372_v38 = vld [vmem:[%s8942_s1 + $0xe8] sm:$0xff]  }
0x15b1   : > { %6930 = vmatprep.subr.bf16.mxu0 %v7600_v20  ;;  %6959 = vmatprep.mubr.msk.f32.mxu1 %vm7601_vm1, %v7600_v20 }
0x15b4   : > { %6931 = vmatpush3.bf16.msra.mxu0 %v7347_v26  ;;  %v7373_v26 = vld [vmem:[%s8942_s1 + $0xe0] sm:$0xff]   ;;  %s7528_s1 = sshll.u32 %s7603_s5, 4  ;;  %s7529_s1 = int_to_ptr.vmem [resolvable:$false] %s7528_s1 }
0x15b5   : > { %6932 = vmatprep.subr.bf16.mxu0 %v7600_v20  ;;  %s7530_s6 = scalar_lea.vmem %s7529_s1, 32  ;;  %p7531_p11 = scmp.lt.s32.totalorder %s8831_s29, %s7529_s1 }
0x15b6   : > { %p7532_p0 = scmp.lt.s32.totalorder %s7530_s6, %s7524_s17 }
0x15b8   : > { %6933 = vmatpush3.bf16.msra.mxu0 %v7348_v27  ;;  %p7533_p1 = por %p7532_p0, %p7531_p11 }
0x15b9   : > { %6934 = vmatprep.subr.bf16.mxu0 %v7600_v20 }
0x15ba   : > { %p7534_p3 = pnand %p7533_p1, %p7527_p8 }
0x15bc   : > { %6935 = vmatpush3.bf16.msra.mxu0 %v7349_v28  ;;  %v7375_v28 = vld [vmem:[%s8947_s15 + $0xb8] sm:$0xff]  }
0x15bd   : > { %6952 = vmatprep.subr.mxu0 %v7600_v20 }
0x15bf   : > { %6937 = vmatmul.mubr.msk.bf16.vlgmr.msra.gmra.mxu0 %vm1340_vm2, %v8440_v25 }
0x15c0   : > { %6954 = vmatprep.mubr.msk.f32.mxu0 %vm7601_vm1, %v7600_v20 }
0x166f   : > { %v3587_v31 = vpop.f32.mrf.mxu0  ;;  %v3749_v37 = vpop.f32.mrf.mxu1 }
0x1670   : > { %v3750_v36 = vadd.f32 %v6209_v30, %v3749_v37  ;;  %v3588_v50 = vadd.f32 %v6179_v47, %v3587_v31  ;;  %v7376_v37 = vld [vmem:[%s8947_s15 + $0xb0] sm:$0xff]  }
0x1671   : > { %v6926_v39 = vpop.f32.mrf.mxu0  ;;  %v6950_v42 = vpop.f32.mrf.mxu1 }
0x1672   : > { %6958 = vmatpush3.msk.msra.mxu1 %vm1636_vm4, %v3750_v36  ;;  %v7378_v36 = vld [vmem:[%s8947_s15 + $0xa0] sm:$0xff]  }
0x1673   : > { %v3590_v40 = vpop.f32.mrf.mxu0  ;;  %v3752_v41 = vpop.f32.mrf.mxu1  ;;  %6968 = vmatprep.subr.bf16.mxu1 %v7600_v20 }
0x1675   : > { %v6927_v43 = vpop.f32.mrf.mxu0  ;;  %v6951_v44 = vpop.f32.mrf.mxu1 }
0x167f   : > { %v3668_v46 = vpop.f32.mrf.mxu0 }
0x1680   : > { %v3669_v48 = vadd.f32 %v6194_v45, %v3668_v46 }
0x1681   : > { %v6938_v49 = vpop.f32.mrf.mxu0 }
0x1682   : > { %6953 = vmatpush3.xpose.msk.msra.mxu0 %vm1542_vm3, %v3669_v48 }
0x1683   : > { %v3671_v51 = vpop.f32.mrf.mxu0  ;;  %6962 = vmatprep.subr.bf16.mxu0 %v7600_v20 }
0x1685   : > { %v6939_v53 = vpop.f32.mrf.mxu0  ;;  %6955 = vmatmul.mubr.msk.f32.vlgmr.msra.gmra.mxu0 %vm1542_vm3, %v3588_v50 }
0x1686   : > { %6964 = vmatprep.mubr.msk.bf16.mxu0 %vm7601_vm1, %v7600_v20  ;;  %6963 = vmatpush3.bf16.msra.mxu0 %v7374_v10 }
0x1687   : > { %6980 = vmatprep.subr.bf16.mxu0 %v7600_v20 }
0x1745   : > { %v3827_v54 = vpop.f32.mrf.mxu0 }
0x1746   : > { %v3831_v55 = vmul.f32 0.25, %v3827_v54 }
0x1747   : > { %v6956_v56 = vpop.f32.mrf.mxu0 }
0x1748   : > { %v3832_v57 = vsel %vm1620_vm5, %v3831_v55, -inf }
0x1749   : > { %3833 = vmax.xlane.f32.xlu0 %v3832_v57 }
0x17d2   : > { %v3834_v58 = vpop.xlane.xlu0 %3833 }
0x17d3   : > { %v3835_v59 = vsub.f32 %v3831_v55, %v3834_v58 }
0x17d5   : > { %v3836_v60 = vmul.f32 1.442695, %v3835_v59 }
0x17d7   : > { %7448 = vpow2.f32 %v3836_v60 }
0x17e4   : > { %v7449_v61 = vpop.eup %7448 }
0x17e5   : > { %v3838_v62 = vsel %vm1620_vm5, %v7449_v61, 0.0 }
0x17e6   : > { %3839 = vadd.xlane.f32.xlu1 %v3838_v62 }
0x186f   : > { %v3840_v29 = vpop.xlane.xlu1 %3839 }
0x1870   : > { %7450 = vrcp.f32 %v3840_v29 }
0x187d   : > { %v7451_v63 = vpop.eup %7450 }
0x187e   : > { %v3842_v33 = vmul.f32 %v7451_v63, %v7449_v61 }
0x1880   : > { %6960 = vmatmul.mubr.msk.f32.vlgmr.msra.gmra.mxu1 %vm1632_vm6, %v3842_v33 }
0x1881   : > { %6969 = vmatpush3.bf16.msra.mxu1 %v7350_v1  ;;  %6976 = vmatprep.mubr.msk.bf16.mxu1 %vm7601_vm1, %v7600_v20 }
0x1882   : > { %6970 = vmatprep.subr.bf16.mxu1 %v7600_v20 }
0x1885   : > { %6971 = vmatpush3.bf16.msra.mxu1 %v7351_v3  ;;  %v6248_v3 = vld [vmem:[%s8879_s9 + $0x5] ss:$0 sm:$0xff] }
0x1886   : > { %6972 = vmatprep.subr.bf16.mxu1 %v7600_v20 }
0x1889   : > { %6973 = vmatpush3.bf16.msra.mxu1 %v7352_v4 }
0x188a   : > { %6974 = vmatprep.subr.bf16.mxu1 %v7600_v20 }
0x188d   : > { %6975 = vmatpush3.bf16.msra.mxu1 %v7353_v5  ;;  %v6233_v5 = vld [vmem:[%s8948_s8 + $0x5] ss:$0 sm:$0xff] }
0x188e   : > { %6992 = vmatprep.subr.bf16.mxu1 %v7600_v20 }
0x1890   : > { %6977 = vmatmul.mubr.msk.bf16.vlgmr.msra.gmra.mxu1 %vm1340_vm2, %v8440_v25 }
0x1891   : > { %6993 = vmatpush3.bf16.msra.mxu1 %v7354_v6  ;;  %7000 = vmatprep.mubr.msk.bf16.mxu1 %vm7601_vm1, %v7600_v20 }
0x1892   : > { %6994 = vmatprep.subr.bf16.mxu1 %v7600_v20 }
0x1895   : > { %6995 = vmatpush3.bf16.msra.mxu1 %v7355_v7  ;;  %v6263_v7 = vld [vmem:[%s8880_s10 + $0x5] ss:$0 sm:$0xff] }
0x1896   : > { %6996 = vmatprep.subr.bf16.mxu1 %v7600_v20 }
0x1899   : > { %6997 = vmatpush3.bf16.msra.mxu1 %v7356_v52 }
0x189a   : > { %6998 = vmatprep.subr.bf16.mxu1 %v7600_v20 }
0x189d   : > { %6999 = vmatpush3.bf16.msra.mxu1 %v7357_v8 }
0x189e   : > { %7020 = vmatprep.subr.bf16.mxu1 %v7600_v20 }
0x18a0   : > { %7001 = vmatmul.mubr.msk.bf16.vlgmr.msra.gmra.mxu1 %vm1340_vm2, %v8440_v25 }
0x18a1   : > { %7021 = vmatpush3.bf16.msra.mxu1 %v7358_v9  ;;  %7028 = vmatprep.mubr.msk.bf16.mxu1 %vm7601_vm1, %v7600_v20 }
0x18a2   : > { %7022 = vmatprep.subr.bf16.mxu1 %v7600_v20 }
0x18a5   : > { %7023 = vmatpush3.bf16.msra.mxu1 %v7359_v11 }
0x18a6   : > { %7024 = vmatprep.subr.bf16.mxu1 %v7600_v20 }
0x18a9   : > { %7025 = vmatpush3.bf16.msra.mxu1 %v7360_v13 }
0x18aa   : > { %7026 = vmatprep.subr.bf16.mxu1 %v7600_v20 }
0x18ad   : > { %7027 = vmatpush3.bf16.msra.mxu1 %v7361_v14 }
0x18ae   : > { %7044 = vmatprep.subr.bf16.mxu1 %v7600_v20 }
0x18b0   : > { %7029 = vmatmul.mubr.msk.bf16.vlgmr.msra.gmra.mxu1 %vm1340_vm2, %v8440_v25 }
0x18b1   : > { %7045 = vmatpush3.bf16.msra.mxu1 %v7362_v15  ;;  %7052 = vmatprep.mubr.msk.bf16.mxu1 %vm7601_vm1, %v7600_v20 }
0x18b2   : > { %7046 = vmatprep.subr.bf16.mxu1 %v7600_v20 }
0x18b5   : > { %7047 = vmatpush3.bf16.msra.mxu1 %v7363_v16 }
0x18b6   : > { %7048 = vmatprep.subr.bf16.mxu1 %v7600_v20 }
0x18b9   : > { %7049 = vmatpush3.bf16.msra.mxu1 %v7364_v17 }
0x18ba   : > { %7050 = vmatprep.subr.bf16.mxu1 %v7600_v20 }
0x18bd   : > { %7051 = vmatpush3.bf16.msra.mxu1 %v7365_v18 }
0x18be   : > { %7072 = vmatprep.subr.bf16.mxu1 %v7600_v20 }
0x18c0   : > { %7053 = vmatmul.mubr.msk.bf16.vlgmr.msra.gmra.mxu1 %vm1340_vm2, %v8440_v25 }
0x18c1   : > { %7073 = vmatpush3.bf16.msra.mxu1 %v7366_v19  ;;  %7080 = vmatprep.mubr.msk.bf16.mxu1 %vm7601_vm1, %v7600_v20 }
0x18c2   : > { %7074 = vmatprep.subr.bf16.mxu1 %v7600_v20 }
0x18c5   : > { %7075 = vmatpush3.bf16.msra.mxu1 %v7367_v21 }
0x18c6   : > { %7076 = vmatprep.subr.bf16.mxu1 %v7600_v20 }
0x18c9   : > { %7077 = vmatpush3.bf16.msra.mxu1 %v7368_v12 }
0x18ca   : > { %7078 = vmatprep.subr.bf16.mxu1 %v7600_v20 }
0x18cd   : > { %7079 = vmatpush3.bf16.msra.mxu1 %v7369_v22 }
0x18ce   : > { %7096 = vmatprep.subr.bf16.mxu1 %v7600_v20 }
0x18d0   : > { %7081 = vmatmul.mubr.msk.bf16.vlgmr.msra.gmra.mxu1 %vm1340_vm2, %v8440_v25 }
0x18d1   : > { %7097 = vmatpush3.bf16.msra.mxu1 %v7370_v23  ;;  %7104 = vmatprep.mubr.msk.bf16.mxu1 %vm7601_vm1, %v7600_v20 }
0x18d2   : > { %7098 = vmatprep.subr.bf16.mxu1 %v7600_v20 }
0x18d5   : > { %7099 = vmatpush3.bf16.msra.mxu1 %v7371_v24 }
0x18d6   : > { %7100 = vmatprep.subr.bf16.mxu1 %v7600_v20 }
0x18d9   : > { %7101 = vmatpush3.bf16.msra.mxu1 %v7372_v38  ;;  %v7379_v38 = vld [vmem:[%s8881_s11 + $0x28] sm:$0xff]  }
0x18da   : > { %7102 = vmatprep.subr.bf16.mxu1 %v7600_v20 }
0x18dd   : > { %7103 = vmatpush3.bf16.msra.mxu1 %v7373_v26 }
0x18e0   : > { %7105 = vmatmul.mubr.msk.bf16.vlgmr.msra.gmra.mxu1 %vm1340_vm2, %v8440_v25 }
0x18e1   : > { %5492 = vmatprep.mubr.bf16.mxu1 %v7602_v2  ;;  %v7377_v2 = vld [vmem:[%s8947_s15 + $0xa8] sm:$0xff]  }
0x1940   : > { %v3915_v27 = vpop.f32.mrf.mxu1 }
0x1941   : > { %v3919_v30 = vpack.c.bf16 %v3915_v27, %v3915_v27 }
0x1942   : > { %v6961_v31 = vpop.f32.mrf.mxu1 }
0x1943   : > { %6965 = vmatmul.mubr.msk.bf16.vlgmr.msra.gmra.mxu0 %vm1542_vm3, %v3919_v30 }
0x1944   : > { %6981 = vmatpush3.bf16.msra.mxu0 %v7375_v28  ;;  %6988 = vmatprep.mubr.msk.bf16.mxu0 %vm7601_vm1, %v7600_v20  ;;  %v7380_v28 = vld [vmem:[%s8947_s15 + $0xd8] sm:$0xff]  }
0x1945   : > { %6982 = vmatprep.subr.bf16.mxu0 %v7600_v20 }
0x1948   : > { %6983 = vmatpush3.bf16.msra.mxu0 %v7376_v37  ;;  %v7381_v37 = vld [vmem:[%s8947_s15 + $0xd0] sm:$0xff]  }
0x1949   : > { %6984 = vmatprep.subr.bf16.mxu0 %v7600_v20 }
0x194c   : > { %6985 = vmatpush3.bf16.msra.mxu0 %v7377_v2  ;;  %v7382_v2 = vld [vmem:[%s8947_s15 + $0xc8] sm:$0xff]  }
0x194d   : > { %6986 = vmatprep.subr.bf16.mxu0 %v7600_v20 }
0x1950   : > { %v4054_v39 = vpop.f32.mrf.mxu1  ;;  %6987 = vmatpush3.bf16.msra.mxu0 %v7378_v36  ;;  %v7383_v36 = vld [vmem:[%s8947_s15 + $0xc0] sm:$0xff]  }
0x1951   : > { %7004 = vmatprep.subr.mxu0 %v7600_v20  ;;  %v4055_v8 = vadd.f32 %v6233_v5, %v4054_v39  ;;  %v6223_v39 = vld [vmem:[%s8882_s12 + $0x1] ss:$0 sm:$0xff]  ;;  %v7384_v5 = vld [vmem:[%s8881_s11 + $0x30] sm:$0xff]  }
0x1952   : > { %v6978_v42 = vpop.f32.mrf.mxu1 }
0x1953   : > { %6989 = vmatmul.mubr.msk.bf16.vlgmr.msra.gmra.mxu0 %vm1340_vm2, %v8440_v25 }
0x1954   : > { %v4057_v40 = vpop.f32.mrf.mxu1  ;;  %7006 = vmatprep.mubr.msk.f32.mxu0 %vm7601_vm1, %v7600_v20 }
0x1956   : > { %v6979_v41 = vpop.f32.mrf.mxu1 }
0x1960   : > { %v4216_v43 = vpop.f32.mrf.mxu1 }
0x1961   : > { %v4217_v11 = vadd.f32 %v6263_v7, %v4216_v43 }
0x1962   : > { %v7002_v44 = vpop.f32.mrf.mxu1 }
0x1964   : > { %v4219_v45 = vpop.f32.mrf.mxu1 }
0x1966   : > { %v7003_v46 = vpop.f32.mrf.mxu1 }
0x1967   : > { %v6301_v46 = vld [vmem:[%s8879_s9 + $0x6] ss:$0 sm:$0xff] }
0x1970   : > { %v8633_v47 = vpop.f32.mrf.mxu1 }
0x1972   : > { %v7030_v48 = vpop.f32.mrf.mxu1 }
0x1974   : > { %v4518_v49 = vpop.f32.mrf.mxu1 }
0x1975   : > { %v6286_v49 = vld [vmem:[%s8948_s8 + $0x6] ss:$0 sm:$0xff] }
0x1976   : > { %v7031_v50 = vpop.f32.mrf.mxu1 }
0x1980   : > { %v8635_v51 = vpop.f32.mrf.mxu1 }
0x1982   : > { %v7054_v53 = vpop.f32.mrf.mxu1 }
0x1983   : > { %v6316_v53 = vld [vmem:[%s8880_s10 + $0x6] ss:$0 sm:$0xff] }
0x1984   : > { %v4680_v54 = vpop.f32.mrf.mxu1 }
0x1986   : > { %v7055_v55 = vpop.f32.mrf.mxu1 }
0x1987   : > { %v4516_v55 = vadd.f32 %v6286_v49, %v8633_v47 }
0x1990   : > { %v8637_v56 = vpop.f32.mrf.mxu1 }
0x1992   : > { %v7082_v57 = vpop.f32.mrf.mxu1 }
0x1994   : > { %v4979_v58 = vpop.f32.mrf.mxu1 }
0x1995   : > { %v4678_v58 = vadd.f32 %v6316_v53, %v8635_v51 }
0x1996   : > { %v7083_v59 = vpop.f32.mrf.mxu1 }
0x19a0   : > { %v8639_v60 = vpop.f32.mrf.mxu1 }
0x19a2   : > { %v7106_v61 = vpop.f32.mrf.mxu1 }
0x19a4   : > { %v5141_v62 = vpop.f32.mrf.mxu1 }
0x19a6   : > { %v7107_v10 = vpop.f32.mrf.mxu1 }
0x1a03   : > { %v3966_v29 = vpop.f32.mrf.mxu0 }
0x1a04   : > { %v3978_v42 = vadd.f32 %v6223_v39, %v3966_v29 }
0x1a05   : > { %v6966_v63 = vpop.f32.mrf.mxu0 }
0x1a07   : > { %v3969_v1 = vpop.f32.mrf.mxu0 }
0x1a09   : > { %v6967_v33 = vpop.f32.mrf.mxu0 }
0x1a13   : > { %v4135_v4 = vpop.f32.mrf.mxu0 }
0x1a14   : > { %v4136_v6 = vadd.f32 %v6248_v3, %v4135_v4 }
0x1a15   : > { %v6990_v52 = vpop.f32.mrf.mxu0 }
0x1a16   : > { %7005 = vmatpush3.xpose.msk.msra.mxu0 %vm1542_vm3, %v4136_v6  ;;  %v7385_v52 = vld [vmem:[%s8947_s15 + $0xf8] sm:$0xff]  }
0x1a17   : > { %v4138_v9 = vpop.f32.mrf.mxu0  ;;  %7009 = vmatprep.subr.mxu0 %v7600_v20 }
0x1a19   : > { %v6991_v13 = vpop.f32.mrf.mxu0  ;;  %7007 = vmatmul.mubr.msk.f32.vlgmr.msra.gmra.mxu0 %vm1542_vm3, %v4055_v8 }
0x1a1a   : > { %7010 = vmatpush3.msk.msra.mxu0 %vm1636_vm4, %v4217_v11  ;;  %7011 = vmatprep.mubr.msk.f32.mxu0 %vm7601_vm1, %v7600_v20  ;;  %v7386_v11 = vld [vmem:[%s8947_s15 + $0xf0] sm:$0xff]   ;;  %v7387_v13 = vld [vmem:[%s8947_s15 + $0xe8] sm:$0xff]  }
0x1a1b   : > { %7014 = vmatprep.subr.bf16.mxu0 %v7600_v20 }
0x1ad9   : > { %v4294_v14 = vpop.f32.mrf.mxu0 }
0x1ada   : > { %v4298_v15 = vmul.f32 0.25, %v4294_v14  ;;  %v7388_v14 = vld [vmem:[%s8947_s15 + $0xe0] sm:$0xff]  }
0x1adb   : > { %v7008_v16 = vpop.f32.mrf.mxu0 }
0x1adc   : > { %v4299_v17 = vsel %vm1620_vm5, %v4298_v15, -inf }
0x1add   : > { %4300 = vmax.xlane.f32.xlu0 %v4299_v17 }
0x1b66   : > { %v4301_v18 = vpop.xlane.xlu0 %4300 }
0x1b67   : > { %v4302_v19 = vsub.f32 %v4298_v15, %v4301_v18 }
0x1b69   : > { %v4303_v21 = vmul.f32 1.442695, %v4302_v19 }
0x1b6b   : > { %7452 = vpow2.f32 %v4303_v21  ;;  %v6354_v21 = vld [vmem:[%s8879_s9 + $0x7] ss:$0 sm:$0xff] }
0x1b78   : > { %v7453_v12 = vpop.eup %7452 }
0x1b79   : > { %v4305_v22 = vsel %vm1620_vm5, %v7453_v12, 0.0 }
0x1b7a   : > { %4306 = vadd.xlane.f32.xlu1 %v4305_v22  ;;  %v6339_v22 = vld [vmem:[%s8948_s8 + $0x7] ss:$0 sm:$0xff] }
0x1c03   : > { %v4307_v23 = vpop.xlane.xlu1 %4306 }
0x1c04   : > { %7454 = vrcp.f32 %v4307_v23 }
0x1c11   : > { %v7455_v24 = vpop.eup %7454 }
0x1c12   : > { %v4309_v26 = vmul.f32 %v7455_v24, %v7453_v12 }
0x1c14   : > { %7012 = vmatmul.mubr.msk.f32.vlgmr.msra.gmra.mxu0 %vm1632_vm6, %v4309_v26 }
0x1c15   : > { %7015 = vmatpush3.bf16.msra.mxu0 %v7379_v38  ;;  %7016 = vmatprep.mubr.msk.bf16.mxu0 %vm7601_vm1, %v7600_v20  ;;  %v4977_v38 = vadd.f32 %v6339_v22, %v8637_v56  ;;  %v7408_v22 = vld [vmem:[#allocation5 + $0xe0] sm:$0xff]  }
0x1c16   : > { %7032 = vmatprep.subr.bf16.mxu0 %v7600_v20 }
0x1cd4   : > { %v4382_v27 = vpop.f32.mrf.mxu0 }
0x1cd5   : > { %v4386_v30 = vpack.c.bf16 %v4382_v27, %v4382_v27 }
0x1cd6   : > { %v7013_v31 = vpop.f32.mrf.mxu0 }
0x1cd7   : > { %7017 = vmatmul.mubr.msk.bf16.vlgmr.msra.gmra.mxu0 %vm1542_vm3, %v4386_v30 }
0x1cd8   : > { %7033 = vmatpush3.bf16.msra.mxu0 %v7380_v28  ;;  %7040 = vmatprep.mubr.msk.bf16.mxu0 %vm7601_vm1, %v7600_v20 }
0x1cd9   : > { %7034 = vmatprep.subr.bf16.mxu0 %v7600_v20 }
0x1cdc   : > { %7035 = vmatpush3.bf16.msra.mxu0 %v7381_v37 }
0x1cdd   : > { %7036 = vmatprep.subr.bf16.mxu0 %v7600_v20 }
0x1ce0   : > { %7037 = vmatpush3.bf16.msra.mxu0 %v7382_v2 }
0x1ce1   : > { %7038 = vmatprep.subr.bf16.mxu0 %v7600_v20 }
0x1ce4   : > { %7039 = vmatpush3.bf16.msra.mxu0 %v7383_v36 }
0x1ce5   : > { %7056 = vmatprep.subr.mxu0 %v7600_v20 }
0x1ce7   : > { %7041 = vmatmul.mubr.msk.bf16.vlgmr.msra.gmra.mxu0 %vm1340_vm2, %v8440_v25 }
0x1ce8   : > { %7058 = vmatprep.mubr.msk.f32.mxu0 %vm7601_vm1, %v7600_v20 }
0x1d97   : > { %v4433_v40 = vpop.f32.mrf.mxu0 }
0x1d98   : > { %v4439_v41 = vadd.f32 %v4433_v40, %v3978_v42 }
0x1d99   : > { %v7018_v43 = vpop.f32.mrf.mxu0 }
0x1d9b   : > { %v4436_v44 = vpop.f32.mrf.mxu0 }
0x1d9c   : > { %v7389_v44 = vld [vmem:[%s8881_s11 + $0x38] sm:$0xff]  }
0x1d9d   : > { %v7019_v45 = vpop.f32.mrf.mxu0 }
0x1da7   : > { %v4596_v48 = vpop.f32.mrf.mxu0 }
0x1da8   : > { %v4597_v50 = vadd.f32 %v6301_v46, %v4596_v48 }
0x1da9   : > { %v7042_v54 = vpop.f32.mrf.mxu0 }
0x1daa   : > { %7057 = vmatpush3.xpose.msk.msra.mxu0 %vm1542_vm3, %v4597_v50 }
0x1dab   : > { %v4599_v57 = vpop.f32.mrf.mxu0  ;;  %7061 = vmatprep.subr.mxu0 %v7600_v20 }
0x1dad   : > { %v7043_v59 = vpop.f32.mrf.mxu0  ;;  %7059 = vmatmul.mubr.msk.f32.vlgmr.msra.gmra.mxu0 %vm1542_vm3, %v4516_v55 }
0x1dae   : > { %7062 = vmatpush3.msk.msra.mxu0 %vm1636_vm4, %v4678_v58  ;;  %7063 = vmatprep.mubr.msk.f32.mxu0 %vm7601_vm1, %v7600_v20 }
0x1daf   : > { %7066 = vmatprep.subr.bf16.mxu0 %v7600_v20 }
0x1e6d   : > { %v4755_v61 = vpop.f32.mrf.mxu0 }
0x1e6e   : > { %v4759_v62 = vmul.f32 0.25, %v4755_v61 }
0x1e6f   : > { %v7060_v10 = vpop.f32.mrf.mxu0 }
0x1e70   : > { %v4760_v47 = vsel %vm1620_vm5, %v4759_v62, -inf }
0x1e71   : > { %4761 = vmax.xlane.f32.xlu0 %v4760_v47 }
0x1efa   : > { %v4762_v29 = vpop.xlane.xlu0 %4761 }
0x1efb   : > { %v4763_v63 = vsub.f32 %v4759_v62, %v4762_v29  ;;  %v7392_v29 = vld [vmem:[#allocation2 + $0x74] ss:$8 sps:$4 sm:$0xff]  }
0x1efc   : > { %5468 = vmatprep.subr.bf16.mxu1 %v7392_v29 }
0x1efd   : > { %v4764_v1 = vmul.f32 1.442695, %v4763_v63  ;;  %v7390_v63 = vld [vmem:[#allocation2 + $0x70] ss:$8 sps:$4 sm:$0xff]  }
0x1efe   : > { %5469 = vmatpush1.bf16.msra.mxu1 %v7390_v63 }
0x1eff   : > { %7456 = vpow2.f32 %v4764_v1  ;;  %v7393_v1 = vld [vmem:[#allocation2 + $0x60] ss:$8 sps:$4 sm:$0xff]  }
0x1f0c   : > { %v7457_v51 = vpop.eup %7456 }
0x1f0d   : > { %v4766_v33 = vsel %vm1620_vm5, %v7457_v51, 0.0 }
0x1f0e   : > { %4767 = vadd.xlane.f32.xlu1 %v4766_v33  ;;  %v7396_v33 = vld [vmem:[#allocation2 + $0x50] ss:$8 sps:$4 sm:$0xff]  }
0x1f97   : > { %v4768_v3 = vpop.xlane.xlu1 %4767 }
0x1f98   : > { %7458 = vrcp.f32 %v4768_v3  ;;  %v7401_v3 = vld [vmem:[#allocation2 + $0x44] ss:$8 sps:$4 sm:$0xff]  }
0x1fa5   : > { %v7459_v4 = vpop.eup %7458 }
0x1fa6   : > { %v4770_v6 = vmul.f32 %v7459_v4, %v7457_v51  ;;  %v7398_v51 = vld [vmem:[#allocation2 + $0x54] ss:$8 sps:$4 sm:$0xff]   ;;  %v7399_v4 = vld [vmem:[#allocation2 + $0x40] ss:$8 sps:$4 sm:$0xff]  }
0x1fa8   : > { %7064 = vmatmul.mubr.msk.f32.vlgmr.msra.gmra.mxu0 %vm1632_vm6, %v4770_v6  ;;  %v7403_v6 = vld [vmem:[#allocation5 + $0xb8] sm:$0xff]  }
0x1fa9   : > { %7067 = vmatpush3.bf16.msra.mxu0 %v7384_v5  ;;  %7068 = vmatprep.mubr.msk.bf16.mxu0 %vm7601_vm1, %v7600_v20  ;;  %v7402_v5 = vld [vmem:[#allocation5 + $0xf8] sm:$0xff]  }
0x1faa   : > { %7084 = vmatprep.subr.bf16.mxu0 %v7600_v20 }
0x2068   : > { %v4843_v7 = vpop.f32.mrf.mxu0 }
0x2069   : > { %v4847_v8 = vpack.c.bf16 %v4843_v7, %v4843_v7 }
0x206a   : > { %v7065_v9 = vpop.f32.mrf.mxu0 }
0x206b   : > { %7069 = vmatmul.mubr.msk.bf16.vlgmr.msra.gmra.mxu0 %vm1542_vm3, %v4847_v8 }
0x206c   : > { %7085 = vmatpush3.bf16.msra.mxu0 %v7385_v52  ;;  %7092 = vmatprep.mubr.msk.bf16.mxu0 %vm7601_vm1, %v7600_v20 }
0x206d   : > { %7086 = vmatprep.subr.bf16.mxu0 %v7600_v20 }
0x2070   : > { %7087 = vmatpush3.bf16.msra.mxu0 %v7386_v11  ;;  %v6385_v11 = vld [vmem:[%s8883_s13 + $0x1] ss:$0 sm:$0xff] }
0x2071   : > { %7088 = vmatprep.subr.bf16.mxu0 %v7600_v20 }
0x2074   : > { %7089 = vmatpush3.bf16.msra.mxu0 %v7387_v13 }
0x2075   : > { %7090 = vmatprep.subr.bf16.mxu0 %v7600_v20 }
0x2078   : > { %7091 = vmatpush3.bf16.msra.mxu0 %v7388_v14  ;;  %v6386_v14 = vld [vmem:[%s8884_s14 + $0x1] ss:$0 sm:$0xff] }
0x2079   : > { %7108 = vmatprep.subr.mxu0 %v7600_v20 }
0x207b   : > { %7093 = vmatmul.mubr.msk.bf16.vlgmr.msra.gmra.mxu0 %vm1340_vm2, %v8440_v25  ;;  %v6369_v25 = vld [vmem:[%s8880_s10 + $0x7] ss:$0 sm:$0xff] }
0x207c   : > { %7110 = vmatprep.mubr.msk.f32.mxu0 %vm7601_vm1, %v7600_v20  ;;  %v5139_v27 = vadd.f32 %v6369_v25, %v8639_v60  ;;  %v7410_v25 = vld [vmem:[#allocation5 + $0xd8] sm:$0xff]  }
0x212b   : > { %v4894_v15 = vpop.f32.mrf.mxu0 }
0x212c   : > { %v4900_v16 = vadd.f32 %v4894_v15, %v4439_v41 }
0x212d   : > { %v7070_v17 = vpop.f32.mrf.mxu0 }
0x212f   : > { %v4897_v18 = vpop.f32.mrf.mxu0 }
0x2130   : > { %v7404_v18 = vld [vmem:[#allocation5 + $0xf0] sm:$0xff]  }
0x2131   : > { %v7071_v19 = vpop.f32.mrf.mxu0 }
0x2132   : > { %v7405_v19 = vld [vmem:[#allocation5 + $0xb0] sm:$0xff]  }
0x213b   : > { %v5057_v12 = vpop.f32.mrf.mxu0 }
0x213c   : > { %v5058_v23 = vadd.f32 %v6354_v21, %v5057_v12  ;;  %v7406_v21 = vld [vmem:[#allocation5 + $0xe8] sm:$0xff]  }
0x213d   : > { %v7094_v24 = vpop.f32.mrf.mxu0  ;;  %v7407_v12 = vld [vmem:[#allocation5 + $0xa8] sm:$0xff]  }
0x213e   : > { %7109 = vmatpush3.xpose.msk.msra.mxu0 %vm1542_vm3, %v5058_v23  ;;  %v7409_v23 = vld [vmem:[#allocation5 + $0xa0] sm:$0xff]   ;;  %v7411_v24 = vld [vmem:[#allocation5 + $0x98] sm:$0xff]  }
0x213f   : > { %v5060_v26 = vpop.f32.mrf.mxu0  ;;  %7113 = vmatprep.subr.mxu0 %v7600_v20 }
0x2140   : > { %v7413_v26 = vld [vmem:[#allocation5 + $0x90] sm:$0xff]  }
0x2141   : > { %v7095_v28 = vpop.f32.mrf.mxu0  ;;  %7111 = vmatmul.mubr.msk.f32.vlgmr.msra.gmra.mxu0 %vm1542_vm3, %v4977_v38  ;;  %v7412_v38 = vld [vmem:[#allocation5 + $0xd0] sm:$0xff]  }
0x2142   : > { %7114 = vmatpush3.msk.msra.mxu0 %vm1636_vm4, %v5139_v27  ;;  %7115 = vmatprep.mubr.msk.f32.mxu0 %vm7601_vm1, %v7600_v20  ;;  %v7414_v27 = vld [vmem:[#allocation5 + $0xc8] sm:$0xff]  }
0x2143   : > { %7118 = vmatprep.subr.bf16.mxu0 %v7600_v20  ;;  %v7415_v28 = vld [vmem:[#allocation5 + $0x88] sm:$0xff]  }
0x2201   : > { %v5216_v30 = vpop.f32.mrf.mxu0 }
0x2202   : > { %v5220_v31 = vmul.f32 0.25, %v5216_v30  ;;  %v7416_v30 = vld [vmem:[#allocation5 + $0xc0] sm:$0xff]  }
0x2203   : > { %v7112_v37 = vpop.f32.mrf.mxu0 }
0x2204   : > { %v5221_v56 = vsel %vm1620_vm5, %v5220_v31, -inf  ;;  %v6387_v37 = vld [vmem:[%s8886_s16 + $0x2] sm:$0x3] }
0x2205   : > { %5222 = vmax.xlane.f32.xlu0 %v5221_v56  ;;  %v5410_v56 = vrot.slane %v6387_v37, %v3195_v34 }
0x228e   : > { %v5223_v2 = vpop.xlane.xlu0 %5222 }
0x228f   : > { %v5224_v36 = vsub.f32 %v5220_v31, %v5223_v2  ;;  %v7417_v31 = vld [vmem:[#allocation5 + $0x80] sm:$0xff]   ;;  %v5414_v2 = vrot.slane %v6387_v37, %v3199_v35 }
0x2291   : > { %v5225_v39 = vmul.f32 1.442695, %v5224_v36 }
0x2293   : > { %7460 = vpow2.f32 %v5225_v39 }
0x22a0   : > { %v7461_v60 = vpop.eup %7460 }
0x22a1   : > { %v5227_v42 = vsel %vm1620_vm5, %v7461_v60, 0.0 }
0x22a2   : > { %5228 = vadd.xlane.f32.xlu1 %v5227_v42 }
0x232b   : > { %v5229_v40 = vpop.xlane.xlu1 %5228 }
0x232c   : > { %7462 = vrcp.f32 %v5229_v40 }
0x2339   : > { %v7463_v41 = vpop.eup %7462 }
0x233a   : > { %v5231_v43 = vmul.f32 %v7463_v41, %v7461_v60 }
0x233c   : > { %7116 = vmatmul.mubr.msk.f32.vlgmr.msra.gmra.mxu0 %vm1632_vm6, %v5231_v43 }
0x233d   : > { %7120 = vmatprep.mubr.msk.bf16.mxu0 %vm7601_vm1, %v7600_v20  ;;  %7119 = vmatpush3.bf16.msra.mxu0 %v7389_v44 }
0x233e   : > { %6681 = vmatprep.subr.bf16.mxu0 %v7402_v5  ;;  %v7420_v5 = vld [vmem:[%s8891_s21 + $0x8] sm:$0xff]  }
0x23fc   : > { %v5304_v45 = vpop.f32.mrf.mxu0 }
0x23fd   : > { %v5308_v46 = vpack.c.bf16 %v5304_v45, %v5304_v45 }
0x23fe   : > { %v7117_v48 = vpop.f32.mrf.mxu0 }
0x23ff   : > { %7121 = vmatmul.mubr.msk.bf16.vlgmr.msra.gmra.mxu0 %vm1542_vm3, %v5308_v46 }
0x2400   : > { %6682 = vmatpush3.bf16.msra.mxu0 %v7403_v6  ;;  %v7421_v6 = vld [vmem:[%s8891_s21] sm:$0xff]  }
0x2401   : > { %6683 = vmatprep.subr.bf16.mxu0 %v7404_v18 }
0x2404   : > { %6684 = vmatpush3.bf16.msra.mxu0 %v7405_v19 }
0x2405   : > { %6685 = vmatprep.subr.bf16.mxu0 %v7406_v21 }
0x2408   : > { %6686 = vmatpush3.bf16.msra.mxu0 %v7407_v12 }
0x2409   : > { %6687 = vmatprep.subr.bf16.mxu0 %v7408_v22 }
0x240c   : > { %6688 = vmatpush3.bf16.msra.mxu0 %v7409_v23 }
0x240d   : > { %6689 = vmatprep.subr.bf16.mxu0 %v7410_v25 }
0x2410   : > { %6690 = vmatpush3.bf16.msra.mxu0 %v7411_v24 }
0x2411   : > { %6691 = vmatprep.subr.bf16.mxu0 %v7412_v38 }
0x2414   : > { %6692 = vmatpush3.bf16.msra.mxu0 %v7413_v26 }
0x2415   : > { %6693 = vmatprep.subr.bf16.mxu0 %v7414_v27 }
0x2418   : > { %6694 = vmatpush3.bf16.msra.mxu0 %v7415_v28 }
0x2419   : > { %6695 = vmatprep.subr.bf16.mxu0 %v7416_v30 }
0x241c   : > { %6696 = vmatpush3.bf16.msra.mxu0 %v7417_v31 }
0x24bf   : > { %v5355_v49 = vpop.f32.mrf.mxu0 }
0x24c0   : > { %v5361_v50 = vadd.f32 %v5355_v49, %v4900_v16 }
0x24c1   : > { %v7122_v53 = vpop.f32.mrf.mxu0 }
0x24c2   : > { %v8770_v54 = vadd.f32 %v5361_v50, %v8393_v0  ;;  %v7395_v0 = vld [vmem:[#allocation2 + $0x64] ss:$8 sps:$4 sm:$0xff]  }
0x24c3   : > { %v5358_v55 = vpop.f32.mrf.mxu0  ;;  %5470 = vmatprep.subr.bf16.mxu1 %v7395_v0 }
0x24c4   : > { %v5367_v57 = vsel %vm1270_vm0, %v8770_v54, 0.0  ;;  %5471 = vmatpush1.bf16.msra.mxu1 %v7393_v1 }
0x24c5   : > { %5368 = vadd.xlane.f32.xlu0 %v5367_v57  ;;  %v7123_v58 = vpop.f32.mrf.mxu0  ;;  %5472 = vmatprep.subr.bf16.mxu1 %v7398_v51 }
0x24c6   : > { %v6398_v58 = vld [vmem:[%s8888_s18 + $0x1] ss:$0 sm:$0xff] }
0x24c8   : > { %5473 = vmatpush1.bf16.msra.mxu1 %v7396_v33 }
0x24c9   : > { %5474 = vmatprep.subr.bf16.mxu1 %v7401_v3 }
0x24cc   : > { %5475 = vmatpush1.bf16.msra.mxu1 %v7399_v4  ;;  %v7418_v4 = vld [vmem:[%s8891_s21 + $0x18] sm:$0xff]  }
0x24cd   : > { %7124 = vmatprep.subr.bf16.mxu1 %v7600_v20 }
0x254e   : > { %v5369_v59 = vpop.xlane.xlu0 %5368 }
0x254f   : > { %v5370_v61 = vmul.f32 0.015625, %v5369_v59 }
0x2551   : > { %v5371_v62 = vsub.f32 %v8770_v54, %v5370_v61 }
0x2553   : > { %v5372_v10 = vmul.f32 %v5371_v62, %v5371_v62 }
0x2555   : > { %v5373_v47 = vsel %vm1270_vm0, %v5372_v10, 0.0 }
0x2556   : > { %5374 = vadd.xlane.f32.xlu1 %v5373_v47 }
0x25df   : > { %v5375_v7 = vpop.xlane.xlu1 %5374 }
0x25e0   : > { %v5376_v52 = vmul.f32 0.015625, %v5375_v7 }
0x25e2   : > { %v5377_v8 = vadd.f32 1e-06, %v5376_v52 }
0x25e4   : > { %7464 = vrsqrt.f32 %v5377_v8 }
0x25f1   : > { %v7465_v9 = vpop.eup %7464 }
0x25f2   : > { %v5379_v13 = vmul.f32 %v7465_v9, %v5371_v62 }
0x25f4   : > { %v5386_v15 = vmul.f32 %v6385_v11, %v5379_v13  ;;  %v6415_v11 = vld [vmem:[%s8889_s19] ss:$0 sm:$0xff] }
0x25f6   : > { %v5393_v16 = vadd.f32 %v6386_v14, %v5386_v15  ;;  %v6416_v14 = vld [vmem:[%s8890_s20] ss:$0 sm:$0xff] }
0x25f8   : > { %v5405_v17 = vpack.c.bf16 %v5393_v16, %v5393_v16 }
0x25fa   : > { %6396 = vmatmul.mubr.msk.bf16.vlgmr.msra.gmra.mxu1 %vm1340_vm2, %v5405_v17 }
0x25fb   : > { %7132 = vmatprep.mubr.msk.bf16.mxu1 %vm7601_vm1, %v7600_v20  ;;  %7125 = vmatpush3.bf16.msra.mxu1 %v7418_v4 }
0x25fc   : > { %7126 = vmatprep.subr.bf16.mxu1 %v7600_v20 }
0x26ba   : > { %v5494_v36 = vpop.f32.mrf.mxu1 }
0x26bb   : > { %v5495_v39 = vadd.f32 %v5494_v36, %v5410_v56 }
0x26bc   : > { %v5496_v60 = vpop.f32.mrf.mxu1 }
0x26bd   : > { %v5503_v42 = vmul.f32 0.70710677, %v5495_v39  ;;  %v5497_v40 = vadd.f32 %v5496_v60, %v5414_v2  ;;  %v5501_v49 = vmul.f32 0.5, %v5495_v39 }
0x26be   : > { %v5498_v41 = vpop.f32.mrf.mxu1 }
0x26bf   : > { %7466 = verf.f32 %v5503_v42  ;;  %v5504_v43 = vmul.f32 0.70710677, %v5497_v40  ;;  %v5502_v50 = vmul.f32 0.5, %v5497_v40 }
0x26c0   : > { %v5499_v44 = vpop.f32.mrf.mxu1 }
0x26c1   : > { %7468 = verf.f32 %v5504_v43 }
0x26cc   : > { %v7467_v45 = vpop.eup %7466 }
0x26cd   : > { %v5507_v46 = vadd.f32 1.0, %v7467_v45 }
0x26ce   : > { %v7469_v48 = vpop.eup %7468 }
0x26cf   : > { %v5508_v53 = vadd.f32 1.0, %v7469_v48  ;;  %v5509_v34 = vmul.f32 %v5507_v46, %v5501_v49 }
0x26d1   : > { %v5510_v55 = vmul.f32 %v5508_v53, %v5502_v50  ;;  %v5546_v35 = vpack.c.bf16 %v5509_v34, %v5509_v34 }
0x26d3   : > { %v5547_v32 = vpack.c.bf16 %v5510_v55, %v5510_v55 }
0x26d5   : > { %5682 = vmatprep.mubr.bf16.mxu0 %v5547_v32 }
0x26d6   : > { %5683 = vmatmul.mubr.bf16.vlgmr.msra.gmra.mxu0 %v5546_v35 }
0x2796   : > { %v6697_v57 = vpop.f32.mrf.mxu0 }
0x2798   : > { %v6698_v59 = vpop.f32.mrf.mxu0 }
0x2799   : > { %v6699_v61 = vadd.f32 %v6698_v59, %v6697_v57 }
0x279a   : > { %v6700_v62 = vpop.f32.mrf.mxu0 }
0x279b   : > { %v5685_v10 = vadd.f32 %v6699_v61, %v6398_v58 }
0x279c   : > { %v6701_v47 = vpop.f32.mrf.mxu0 }
0x279d   : > { %v5690_v29 = vadd.f32 %v5685_v10, %v8770_v54  ;;  %v7419_v54 = vld [vmem:[%s8891_s21 + $0x10] sm:$0xff]  }
0x279e   : > { %7127 = vmatpush3.bf16.msra.mxu1 %v7419_v54 }
0x279f   : > { %v5693_v63 = vsel %vm1270_vm0, %v5690_v29, 0.0  ;;  %7128 = vmatprep.subr.bf16.mxu1 %v7600_v20 }
0x27a0   : > { %5694 = vadd.xlane.f32.xlu0 %v5693_v63 }
0x27a2   : > { %7129 = vmatpush3.bf16.msra.mxu1 %v7420_v5 }
0x27a3   : > { %7130 = vmatprep.subr.bf16.mxu1 %v7600_v20  ;;  %v5728_v20 = vld [vmem:[%s8892_s22] sm:$0x1] }
0x27a6   : > { %7131 = vmatpush3.bf16.msra.mxu1 %v7421_v6 }
0x2829   : > { %v5695_v0 = vpop.xlane.xlu0 %5694 }
0x282a   : > { %v5696_v1 = vmul.f32 0.015625, %v5695_v0 }
0x282c   : > { %v5697_v51 = vsub.f32 %v5690_v29, %v5696_v1 }
0x282e   : > { %v5698_v33 = vmul.f32 %v5697_v51, %v5697_v51 }
0x2830   : > { %v5699_v3 = vsel %vm1270_vm0, %v5698_v33, 0.0 }
0x2831   : > { %5700 = vadd.xlane.f32.xlu1 %v5699_v3 }
0x28ba   : > { %v5701_v7 = vpop.xlane.xlu1 %5700 }
0x28bb   : > { %v5702_v52 = vmul.f32 0.015625, %v5701_v7 }
0x28bd   : > { %v5703_v8 = vadd.f32 1e-06, %v5702_v52 }
0x28bf   : > { %7470 = vrsqrt.f32 %v5703_v8 }
0x28cc   : > { %v7471_v9 = vpop.eup %7470 }
0x28cd   : > { %v5705_v13 = vmul.f32 %v7471_v9, %v5697_v51 }
0x28cf   : > { %v5712_v15 = vmul.f32 %v6415_v11, %v5705_v13 }
0x28d1   : > { %v5719_v16 = vadd.f32 %v6416_v14, %v5712_v15 }
0x28d3   : > { %v5729_v17 = vpack.c.bf16 %v5719_v16, %v5719_v16 }
0x28d5   : > { %7133 = vmatmul.mubr.msk.bf16.vlgmr.msra.gmra.mxu1 %vm1340_vm2, %v5729_v17 }
0x2995   : > { %v5791_v18 = vpop.f32.mrf.mxu1 }
0x2996   : > { %v5792_v19 = vadd.f32 %v5791_v18, %v5728_v20 }
0x2997   : > { %v7134_v21 = vpop.f32.mrf.mxu1 }
0x2998   : > { %5797 = vst [vmem:[%s732_s0] sm:$0x1] %v5792_v19 }
0x2999   : > { %v5794_v12 = vpop.f32.mrf.mxu1 }
0x299a   : > { %7537 = shalt.err (!%p7534_p3)
}
0x299b   : > { %s7538_s28 = scalar_lea.hbm %s8829_s2, 16  ;;  %s7542_s25 = scalar_lea.hbm %s8949_s3, 32 }
0x299c   : > { %p7539_p2 = scmp.ne.s32.totalorder %s8829_s2, %s7538_s28  ;;  %p7543_p6 = scmp.lt.s32.totalorder %s8829_s2, %s8949_s3 }
0x299d   : > { %p7544_p9 = scmp.lt.s32.totalorder %s7542_s25, %s7538_s28 }
0x299e   : > { %p7540_p4 = pnand %p7539_p2, %p7762_p5 }
0x299f   : > { %p7545_p10 = por %p7544_p9, %p7543_p6 }
0x29a0   : > { %p7541_p13 = pneg %p7540_p4 }
0x29a2   : > { %p7546_p12 = pnand %p7545_p10, %p7541_p13 }
0x29a4   : > { %7549 = shalt.err (!%p7546_p12)
}
0x29a5   : > { %7145 = dma.vmem_to_hbm [thread:$0]  (%p7762_p5), %s8831_s29, 16, %s8829_s2, %s5799_s24   ;;  %v7135_v22 = vpop.f32.mrf.mxu1 }
0x29a6 PF: > { %s8950_s1 = sld [smem:[#allocation13_spill]] }
0x29a7   : > { %s8951_s17 = sld [smem:[#allocation11_spill]] }
0x29a8   : > { %s8952_s6 = sld [smem:[#allocation16_spill]] }
0x29ac   : > { %p7162_p7 = scmp.ge.s32.totalorder %s8950_s1, 2 }
0x29ad   : > { %s5823_s4 = sand.u32 1, %s8951_s17  }
0x29ae   : > { %p8953_p8 = scmp.ne.s32.totalorder %s8952_s6, 0  ;;  %s5824_s8 = scalar_lea.sflag [#allocation4], %s5823_s4 }
0x29b0   : > { %p7155_p11 = pnand %p7162_p7, %p8953_p8 }
0x29b2   : > { %p7156_p0 = pneg %p7155_p11 }
0x29b4   : > { %7575 = dma.done.wait (%p7156_p0), %s5824_s8, 16  }
0x29b5   : > { %7577 = vsyncadd (%p7156_p0), %s5824_s8, 4294967280  ;;  %s8954_s25 = sld [smem:[#allocation14_spill]]  ;;  %s8957_s4 = smov %s7584_s30 }
0x29b6   : > { %s8955_s28 = sld [smem:[#allocation12_spill]] }
0x29b7   : > { %s8956_s24 = sld [smem:[#allocation15_spill]] }
0x29bb   : > { %p35_p1 = scmp.ge.s32.totalorder %s8954_s25, 4  }
0x29bc   : > { %s8958_s30 = smov %s8955_s28 }
0x29bd   :  { %37 = sbr.rel (!%p35_p1) target bundleno = 18 (0x12), region = 214 }
0x29c2   :  { %5828 = vsyncpa [#allocation3], 1 }
0x29c3   :  { %5830 = vsyncpa [#allocation3 + $0x1], 1 }
0x29c4   :  { %5831 = vsyncpa [#allocation6], 1 }
0x29c5   :  { %5832 = vsyncpa [#allocation4], 1 }
0x29c6   :  { %5834 = vsyncpa [#allocation4 + $0x1], 1 }

</bundles_post_ra>
